<compile_context>
chip_gen: v7x
topology: tpu7x:2x2x1
jax: 0.10.0
libtpu: 0.0.40
codegen_flags: <defaults>
</compile_context>

<pallas_src>
import functools

import jax
import jax.numpy as jnp
from jax.experimental import pallas as pl
from jax.experimental.pallas import tpu as pltpu

K1_PAD = 32          # conv1 folded K (25 taps) padded to a sublane multiple


# ----------------------------- fused Pallas kernel ---------------------------

def _espcn_kernel(x_ref, mask_ref, w1_ref, b1_ref, w2_ref, b2_ref,
                  w3_ref, b3_ref, w4_ref, b4_ref, w5_ref, b5_ref,
                  o_ref, s1_ref, *, img_w):
    """Whole forward for one batch block; activations are (C, pixels) lane-dense."""
    bm = x_ref.shape[-1]                       # B_tile * H * W pixels on the lane axis

    def leaky(v):
        return jnp.where(v >= 0, v, 0.01 * v)  # PyTorch default negative_slope

    def tap(a, dr, dc):
        # result[:, p] = a[:, p + dr*W + dc], zero outside the image (border mask).
        # Roll wrap-around / cross-image bleed lands only on masked-out positions.
        s = dr * img_w + dc
        rolled = pltpu.roll(a, (-s) % bm, 1) if s != 0 else a
        i = (dr + 2) * 5 + (dc + 2)
        return rolled * mask_ref[i:i + 1, :]

    # ---- conv1 (5x5, Cin=1): stack the 25 masked shifts into K, one MXU dot ----
    x = x_ref[...]                                              # (1, bm)
    s1_ref[25:K1_PAD, :] = jnp.zeros((K1_PAD - 25, bm), jnp.float32)
    for dr in range(-2, 3):
        for dc in range(-2, 3):
            t = (dr + 2) * 5 + (dc + 2)
            s1_ref[t:t + 1, :] = tap(x, dr, dc)
    a = leaky(jnp.dot(w1_ref[...], s1_ref[...],
                      preferred_element_type=jnp.float32) + b1_ref[...])   # (64, bm)

    # ---- conv2..conv5 (3x3): fold the 9 taps into K -> one MXU matmul each ----
    def conv3x3(a, wk_ref, b_ref):
        pieces = [tap(a, dr, dc) for dr in (-1, 0, 1) for dc in (-1, 0, 1)]
        stacked = jnp.concatenate(pieces, axis=0)               # (9*Cin, bm)
        return jnp.dot(wk_ref[...], stacked,
                       preferred_element_type=jnp.float32) + b_ref[...]

    a = leaky(conv3x3(a, w2_ref, b2_ref))                       # (64, bm)
    a = leaky(conv3x3(a, w3_ref, b3_ref))                       # (32, bm)
    a = leaky(conv3x3(a, w4_ref, b4_ref))                       # (16, bm)
    a = jax.nn.sigmoid(conv3x3(a, w5_ref, b5_ref))              # (r2p, bm)

    o_ref[...] = a.astype(o_ref.dtype)                          # lane-dense store


# --------------------------------- glue --------------------------------------

def _pick_batch_tile(n):
    # A few images per grid step amortizes the ~0.35us per-step overhead, but keep
    # the grid length >= 2 so the "parallel" batch axis still shards across both
    # TensorCores on v7x.
    for bt in (4, 2):
        if n % bt == 0 and n // bt >= 2:
            return bt
    return 1


@functools.partial(jax.jit, static_argnums=(2,))
def espcn_forward(x_nchw, params, upscale_factor):
    """x_nchw: (N, 1, H, W) -> (N, 1, H*r, W*r); matches PyTorch Net.forward."""
    r = int(upscale_factor)
    n, cin, h, w = x_nchw.shape
    assert cin == 1
    m = h * w
    assert m % 128 == 0, "H*W must be a multiple of 128 for lane-dense tiling"
    r2 = r * r
    r2p = -(-r2 // 8) * 8                       # conv5 Cout padded to sublane multiple

    b_tile = _pick_batch_tile(n)
    bm = b_tile * m                             # pixels per grid step (lane axis)
    grid = n // b_tile

    # Batch + pixels flattened onto the lane axis; channels live on sublanes.
    x_flat = x_nchw.reshape(1, n * m)

    # 0/1 border masks, one row per (dr, dc) in [-2, 2]^2, tiled per batch block.
    row = jnp.arange(h)[:, None]
    col = jnp.arange(w)[None, :]
    mask_rows = []
    for dr in range(-2, 3):
        for dc in range(-2, 3):
            valid = ((row + dr >= 0) & (row + dr < h) &
                     (col + dc >= 0) & (col + dc < w))
            mask_rows.append(valid.reshape(m))
    masks = jnp.tile(jnp.stack(mask_rows, 0).astype(jnp.float32), (1, b_tile))

    # Fold spatial taps into the contraction dim: (kh, kw, Cin, Cout) -> (Cout, kh*kw*Cin)
    def fold(wh):
        kh, kw, ci, co = wh.shape
        return jnp.transpose(wh, (3, 0, 1, 2)).reshape(co, kh * kw * ci)

    w1k = jnp.pad(fold(params["w1"]), ((0, 0), (0, K1_PAD - 25)))    # (64, 32)
    w2k = fold(params["w2"])                                         # (64, 576)
    w3k = fold(params["w3"])                                         # (32, 576)
    w4k = fold(params["w4"])                                         # (16, 288)
    w5k = jnp.pad(fold(params["w5"]), ((0, r2p - r2), (0, 0)))       # (r2p, 144)
    b1 = params["b1"].reshape(-1, 1)
    b2 = params["b2"].reshape(-1, 1)
    b3 = params["b3"].reshape(-1, 1)
    b4 = params["b4"].reshape(-1, 1)
    b5 = jnp.pad(params["b5"], (0, r2p - r2)).reshape(-1, 1)

    lane_blk = lambda b: (0, b)      # march along the flattened pixel axis
    const = lambda b: (0, 0)         # weights / masks: fetched once, block idx constant

    out = pl.pallas_call(
        functools.partial(_espcn_kernel, img_w=w),
        out_shape=jax.ShapeDtypeStruct((r2p, n * m), jnp.float32),
        grid=(grid,),
        in_specs=[
            pl.BlockSpec((1, bm), lane_blk),                 # raw input pixels
            pl.BlockSpec((25, bm), const),                   # tap border masks
            pl.BlockSpec((64, K1_PAD), const),               # w1 (folded K, padded)
            pl.BlockSpec((64, 1), const),                    # b1
            pl.BlockSpec((64, 9 * 64), const),               # w2 (folded K)
            pl.BlockSpec((64, 1), const),                    # b2
            pl.BlockSpec((32, 9 * 64), const),               # w3
            pl.BlockSpec((32, 1), const),                    # b3
            pl.BlockSpec((16, 9 * 32), const),               # w4
            pl.BlockSpec((16, 1), const),                    # b4
            pl.BlockSpec((r2p, 9 * 16), const),              # w5 (Cout padded 9->16)
            pl.BlockSpec((r2p, 1), const),                   # b5
        ],
        out_specs=pl.BlockSpec((r2p, bm), lane_blk),
        scratch_shapes=[pltpu.VMEM((K1_PAD, bm), jnp.float32)],
        compiler_params=pltpu.CompilerParams(
            dimension_semantics=("parallel",)),
    )(x_flat, masks, w1k, b1, w2k, b2, w3k, b3, w4k, b4, w5k, b5)

    # Strip the Cout padding, then pixel shuffle (pure layout -> JAX glue).
    z = out[:r2].reshape(r2, n, h, w)
    z = jnp.transpose(z, (1, 0, 2, 3)).reshape(n, r, r, h, w)
    z = jnp.transpose(z, (0, 3, 1, 4, 2)).reshape(n, 1, h * r, w * r)
    return z


# ------------------------------- params / ref --------------------------------

def init_params(key, upscale_factor):
    """Deterministic init mimicking PyTorch Conv2d default U(-1/sqrt(fan_in), .)."""
    specs = [
        (1, 64, 5),                        # conv1
        (64, 64, 3),                       # conv2
        (64, 32, 3),                       # conv3
        (32, 16, 3),                       # conv4
        (16, upscale_factor ** 2, 3),      # conv5
    ]
    params = {}
    for idx, (cin, cout, ks) in enumerate(specs, start=1):
        key, kw_, kb_ = jax.random.split(key, 3)
        bound = 1.0 / (cin * ks * ks) ** 0.5
        params[f"w{idx}"] = jax.random.uniform(
            kw_, (ks, ks, cin, cout), jnp.float32, -bound, bound)   # HWIO
        params[f"b{idx}"] = jax.random.uniform(
            kb_, (cout,), jnp.float32, -bound, bound)
    return params


def _reference_forward(x_nchw, params, upscale_factor):
    """Pure-JAX reference (lax.conv) with identical parameters, for validation."""
    x = jnp.transpose(x_nchw, (0, 2, 3, 1))

    def conv(x, w, b, pad):
        y = jax.lax.conv_general_dilated(
            x, w, window_strides=(1, 1), padding=[(pad, pad), (pad, pad)],
            dimension_numbers=("NHWC", "HWIO", "NHWC"))
        return y + b

    x = jax.nn.leaky_relu(conv(x, params["w1"], params["b1"], 2), 0.01)
    x = jax.nn.leaky_relu(conv(x, params["w2"], params["b2"], 1), 0.01)
    x = jax.nn.leaky_relu(conv(x, params["w3"], params["b3"], 1), 0.01)
    x = jax.nn.leaky_relu(conv(x, params["w4"], params["b4"], 1), 0.01)
    x = conv(x, params["w5"], params["b5"], 1)                       # (n, h, w, r^2)
    n, h, w, _ = x.shape
    r = upscale_factor
    x = x.reshape(n, h, w, r, r)
    x = jnp.transpose(x, (0, 1, 3, 2, 4)).reshape(n, h * r, w * r, 1)
    x = jax.nn.sigmoid(x)                                            # after pixel shuffle
    return jnp.transpose(x, (0, 3, 1, 2))                            # back to NCHW


# ---------------------------------- main --------------------------------------

if __name__ == "__main__":
    upscale_factor = 3
    key = jax.random.PRNGKey(0)
    k_param, k_x = jax.random.split(key)

    params = init_params(k_param, upscale_factor)
    x = jax.random.normal(k_x, (2, 1, 16, 16), jnp.float32)   # NCHW, like PyTorch

    out = jax.block_until_ready(espcn_forward(x, params, upscale_factor))
    ref = jax.block_until_ready(_reference_forward(x, params, upscale_factor))

    assert out.shape == (2, 1, 16 * upscale_factor, 16 * upscale_factor), out.shape
    err = float(jnp.max(jnp.abs(out - ref)))
    assert err < 5e-4, f"max abs err {err}"
    print("KERNEL_OK")
</pallas_src>

<mosaic_0001>
module attributes {stable_mosaic.version = 11 : i64} {
  func.func @_espcn_kernel(%arg0: i32, %arg1: memref<1x256xf32, #tpu.memory_space<vmem>>, %arg2: memref<25x256xf32, #tpu.memory_space<vmem>>, %arg3: memref<64x32xf32, #tpu.memory_space<vmem>>, %arg4: memref<64x1xf32, #tpu.memory_space<vmem>>, %arg5: memref<64x576xf32, #tpu.memory_space<vmem>>, %arg6: memref<64x1xf32, #tpu.memory_space<vmem>>, %arg7: memref<32x576xf32, #tpu.memory_space<vmem>>, %arg8: memref<32x1xf32, #tpu.memory_space<vmem>>, %arg9: memref<16x288xf32, #tpu.memory_space<vmem>>, %arg10: memref<16x1xf32, #tpu.memory_space<vmem>>, %arg11: memref<16x144xf32, #tpu.memory_space<vmem>>, %arg12: memref<16x1xf32, #tpu.memory_space<vmem>>, %arg13: memref<16x256xf32, #tpu.memory_space<vmem>>, %arg14: memref<32x256xf32, #tpu.memory_space<vmem>>) attributes {dimension_semantics = [#tpu.dimension_semantics<parallel>], iteration_bounds = array<i64: 2>, scalar_prefetch = 0 : i64, scratch_operands = 1 : i64, tpu.core_type = #tpu.core_type<tc>, window_params = [{transform_indices = @transform_0, window_bounds = array<i64: 1, 256>}, {pipeline_mode = #tpu.pipeline_mode<synchronous>, transform_indices = @transform_1, window_bounds = array<i64: 25, 256>}, {pipeline_mode = #tpu.pipeline_mode<synchronous>, transform_indices = @transform_2, window_bounds = array<i64: 64, 32>}, {pipeline_mode = #tpu.pipeline_mode<synchronous>, transform_indices = @transform_3, window_bounds = array<i64: 64, 1>}, {pipeline_mode = #tpu.pipeline_mode<synchronous>, transform_indices = @transform_4, window_bounds = array<i64: 64, 576>}, {pipeline_mode = #tpu.pipeline_mode<synchronous>, transform_indices = @transform_5, window_bounds = array<i64: 64, 1>}, {pipeline_mode = #tpu.pipeline_mode<synchronous>, transform_indices = @transform_6, window_bounds = array<i64: 32, 576>}, {pipeline_mode = #tpu.pipeline_mode<synchronous>, transform_indices = @transform_7, window_bounds = array<i64: 32, 1>}, {pipeline_mode = #tpu.pipeline_mode<synchronous>, transform_indices = @transform_8, window_bounds = array<i64: 16, 288>}, {pipeline_mode = #tpu.pipeline_mode<synchronous>, transform_indices = @transform_9, window_bounds = array<i64: 16, 1>}, {pipeline_mode = #tpu.pipeline_mode<synchronous>, transform_indices = @transform_10, window_bounds = array<i64: 16, 144>}, {pipeline_mode = #tpu.pipeline_mode<synchronous>, transform_indices = @transform_11, window_bounds = array<i64: 16, 1>}, {transform_indices = @transform_12, window_bounds = array<i64: 16, 256>}]} {
    %c0 = arith.constant 0 : index
    %c0_0 = arith.constant 0 : index
    %0 = vector.load %arg1[%c0, %c0_0] : memref<1x256xf32, #tpu.memory_space<vmem>>, vector<1x256xf32>
    %cst = arith.constant 0.000000e+00 : f32
    %1 = vector.broadcast %cst : f32 to vector<7x256xf32>
    %c25 = arith.constant 25 : index
    %c0_1 = arith.constant 0 : index
    %2 = vector.load %arg14[%c25, %c0_1] : memref<32x256xf32, #tpu.memory_space<vmem>>, vector<7x256xf32>
    tpu.vector_store %arg14[%c25, %c0_1], %1 {strides = array<i32>} : memref<32x256xf32, #tpu.memory_space<vmem>>, vector<7x256xf32>,
    %c34_i32 = arith.constant 34 : i32
    %3 = tpu.dynamic_rotate %0 by %c34_i32 dim 1 : vector<1x256xf32>, i32 -> vector<1x256xf32>
    %c0_2 = arith.constant 0 : index
    %c0_3 = arith.constant 0 : index
    %4 = vector.load %arg2[%c0_2, %c0_3] : memref<25x256xf32, #tpu.memory_space<vmem>>, vector<1x256xf32>
    %5 = arith.mulf %3, %4 : vector<1x256xf32>
    %c0_4 = arith.constant 0 : index
    %c0_5 = arith.constant 0 : index
    %6 = vector.load %arg14[%c0_4, %c0_5] : memref<32x256xf32, #tpu.memory_space<vmem>>, vector<1x256xf32>
    tpu.vector_store %arg14[%c0_4, %c0_5], %5 {strides = array<i32>} : memref<32x256xf32, #tpu.memory_space<vmem>>, vector<1x256xf32>,
    %c33_i32 = arith.constant 33 : i32
    %7 = tpu.dynamic_rotate %0 by %c33_i32 dim 1 : vector<1x256xf32>, i32 -> vector<1x256xf32>
    %c1 = arith.constant 1 : index
    %c0_6 = arith.constant 0 : index
    %8 = vector.load %arg2[%c1, %c0_6] : memref<25x256xf32, #tpu.memory_space<vmem>>, vector<1x256xf32>
    %9 = arith.mulf %7, %8 : vector<1x256xf32>
    %c1_7 = arith.constant 1 : index
    %c0_8 = arith.constant 0 : index
    %10 = vector.load %arg14[%c1_7, %c0_8] : memref<32x256xf32, #tpu.memory_space<vmem>>, vector<1x256xf32>
    tpu.vector_store %arg14[%c1_7, %c0_8], %9 {strides = array<i32>} : memref<32x256xf32, #tpu.memory_space<vmem>>, vector<1x256xf32>,
    %c32_i32 = arith.constant 32 : i32
    %11 = tpu.dynamic_rotate %0 by %c32_i32 dim 1 : vector<1x256xf32>, i32 -> vector<1x256xf32>
    %c2 = arith.constant 2 : index
    %c0_9 = arith.constant 0 : index
    %12 = vector.load %arg2[%c2, %c0_9] : memref<25x256xf32, #tpu.memory_space<vmem>>, vector<1x256xf32>
    %13 = arith.mulf %11, %12 : vector<1x256xf32>
    %c2_10 = arith.constant 2 : index
    %c0_11 = arith.constant 0 : index
    %14 = vector.load %arg14[%c2_10, %c0_11] : memref<32x256xf32, #tpu.memory_space<vmem>>, vector<1x256xf32>
    tpu.vector_store %arg14[%c2_10, %c0_11], %13 {strides = array<i32>} : memref<32x256xf32, #tpu.memory_space<vmem>>, vector<1x256xf32>,
    %c31_i32 = arith.constant 31 : i32
    %15 = tpu.dynamic_rotate %0 by %c31_i32 dim 1 : vector<1x256xf32>, i32 -> vector<1x256xf32>
    %c3 = arith.constant 3 : index
    %c0_12 = arith.constant 0 : index
    %16 = vector.load %arg2[%c3, %c0_12] : memref<25x256xf32, #tpu.memory_space<vmem>>, vector<1x256xf32>
    %17 = arith.mulf %15, %16 : vector<1x256xf32>
    %c3_13 = arith.constant 3 : index
    %c0_14 = arith.constant 0 : index
    %18 = vector.load %arg14[%c3_13, %c0_14] : memref<32x256xf32, #tpu.memory_space<vmem>>, vector<1x256xf32>
    tpu.vector_store %arg14[%c3_13, %c0_14], %17 {strides = array<i32>} : memref<32x256xf32, #tpu.memory_space<vmem>>, vector<1x256xf32>,
    %c30_i32 = arith.constant 30 : i32
    %19 = tpu.dynamic_rotate %0 by %c30_i32 dim 1 : vector<1x256xf32>, i32 -> vector<1x256xf32>
    %c4 = arith.constant 4 : index
    %c0_15 = arith.constant 0 : index
    %20 = vector.load %arg2[%c4, %c0_15] : memref<25x256xf32, #tpu.memory_space<vmem>>, vector<1x256xf32>
    %21 = arith.mulf %19, %20 : vector<1x256xf32>
    %c4_16 = arith.constant 4 : index
    %c0_17 = arith.constant 0 : index
    %22 = vector.load %arg14[%c4_16, %c0_17] : memref<32x256xf32, #tpu.memory_space<vmem>>, vector<1x256xf32>
    tpu.vector_store %arg14[%c4_16, %c0_17], %21 {strides = array<i32>} : memref<32x256xf32, #tpu.memory_space<vmem>>, vector<1x256xf32>,
    %c18_i32 = arith.constant 18 : i32
    %23 = tpu.dynamic_rotate %0 by %c18_i32 dim 1 : vector<1x256xf32>, i32 -> vector<1x256xf32>
    %c5 = arith.constant 5 : index
    %c0_18 = arith.constant 0 : index
    %24 = vector.load %arg2[%c5, %c0_18] : memref<25x256xf32, #tpu.memory_space<vmem>>, vector<1x256xf32>
    %25 = arith.mulf %23, %24 : vector<1x256xf32>
    %c5_19 = arith.constant 5 : index
    %c0_20 = arith.constant 0 : index
    %26 = vector.load %arg14[%c5_19, %c0_20] : memref<32x256xf32, #tpu.memory_space<vmem>>, vector<1x256xf32>
    tpu.vector_store %arg14[%c5_19, %c0_20], %25 {strides = array<i32>} : memref<32x256xf32, #tpu.memory_space<vmem>>, vector<1x256xf32>,
    %c17_i32 = arith.constant 17 : i32
    %27 = tpu.dynamic_rotate %0 by %c17_i32 dim 1 : vector<1x256xf32>, i32 -> vector<1x256xf32>
    %c6 = arith.constant 6 : index
    %c0_21 = arith.constant 0 : index
    %28 = vector.load %arg2[%c6, %c0_21] : memref<25x256xf32, #tpu.memory_space<vmem>>, vector<1x256xf32>
    %29 = arith.mulf %27, %28 : vector<1x256xf32>
    %c6_22 = arith.constant 6 : index
    %c0_23 = arith.constant 0 : index
    %30 = vector.load %arg14[%c6_22, %c0_23] : memref<32x256xf32, #tpu.memory_space<vmem>>, vector<1x256xf32>
    tpu.vector_store %arg14[%c6_22, %c0_23], %29 {strides = array<i32>} : memref<32x256xf32, #tpu.memory_space<vmem>>, vector<1x256xf32>,
    %c16_i32 = arith.constant 16 : i32
    %31 = tpu.dynamic_rotate %0 by %c16_i32 dim 1 : vector<1x256xf32>, i32 -> vector<1x256xf32>
    %c7 = arith.constant 7 : index
    %c0_24 = arith.constant 0 : index
    %32 = vector.load %arg2[%c7, %c0_24] : memref<25x256xf32, #tpu.memory_space<vmem>>, vector<1x256xf32>
    %33 = arith.mulf %31, %32 : vector<1x256xf32>
    %c7_25 = arith.constant 7 : index
    %c0_26 = arith.constant 0 : index
    %34 = vector.load %arg14[%c7_25, %c0_26] : memref<32x256xf32, #tpu.memory_space<vmem>>, vector<1x256xf32>
    tpu.vector_store %arg14[%c7_25, %c0_26], %33 {strides = array<i32>} : memref<32x256xf32, #tpu.memory_space<vmem>>, vector<1x256xf32>,
    %c15_i32 = arith.constant 15 : i32
    %35 = tpu.dynamic_rotate %0 by %c15_i32 dim 1 : vector<1x256xf32>, i32 -> vector<1x256xf32>
    %c8 = arith.constant 8 : index
    %c0_27 = arith.constant 0 : index
    %36 = vector.load %arg2[%c8, %c0_27] : memref<25x256xf32, #tpu.memory_space<vmem>>, vector<1x256xf32>
    %37 = arith.mulf %35, %36 : vector<1x256xf32>
    %c8_28 = arith.constant 8 : index
    %c0_29 = arith.constant 0 : index
    %38 = vector.load %arg14[%c8_28, %c0_29] : memref<32x256xf32, #tpu.memory_space<vmem>>, vector<1x256xf32>
    tpu.vector_store %arg14[%c8_28, %c0_29], %37 {strides = array<i32>} : memref<32x256xf32, #tpu.memory_space<vmem>>, vector<1x256xf32>,
    %c14_i32 = arith.constant 14 : i32
    %39 = tpu.dynamic_rotate %0 by %c14_i32 dim 1 : vector<1x256xf32>, i32 -> vector<1x256xf32>
    %c9 = arith.constant 9 : index
    %c0_30 = arith.constant 0 : index
    %40 = vector.load %arg2[%c9, %c0_30] : memref<25x256xf32, #tpu.memory_space<vmem>>, vector<1x256xf32>
    %41 = arith.mulf %39, %40 : vector<1x256xf32>
    %c9_31 = arith.constant 9 : index
    %c0_32 = arith.constant 0 : index
    %42 = vector.load %arg14[%c9_31, %c0_32] : memref<32x256xf32, #tpu.memory_space<vmem>>, vector<1x256xf32>
    tpu.vector_store %arg14[%c9_31, %c0_32], %41 {strides = array<i32>} : memref<32x256xf32, #tpu.memory_space<vmem>>, vector<1x256xf32>,
    %c2_i32 = arith.constant 2 : i32
    %43 = tpu.dynamic_rotate %0 by %c2_i32 dim 1 : vector<1x256xf32>, i32 -> vector<1x256xf32>
    %c10 = arith.constant 10 : index
    %c0_33 = arith.constant 0 : index
    %44 = vector.load %arg2[%c10, %c0_33] : memref<25x256xf32, #tpu.memory_space<vmem>>, vector<1x256xf32>
    %45 = arith.mulf %43, %44 : vector<1x256xf32>
    %c10_34 = arith.constant 10 : index
    %c0_35 = arith.constant 0 : index
    %46 = vector.load %arg14[%c10_34, %c0_35] : memref<32x256xf32, #tpu.memory_space<vmem>>, vector<1x256xf32>
    tpu.vector_store %arg14[%c10_34, %c0_35], %45 {strides = array<i32>} : memref<32x256xf32, #tpu.memory_space<vmem>>, vector<1x256xf32>,
    %c1_i32 = arith.constant 1 : i32
    %47 = tpu.dynamic_rotate %0 by %c1_i32 dim 1 : vector<1x256xf32>, i32 -> vector<1x256xf32>
    %c11 = arith.constant 11 : index
    %c0_36 = arith.constant 0 : index
    %48 = vector.load %arg2[%c11, %c0_36] : memref<25x256xf32, #tpu.memory_space<vmem>>, vector<1x256xf32>
    %49 = arith.mulf %47, %48 : vector<1x256xf32>
    %c11_37 = arith.constant 11 : index
    %c0_38 = arith.constant 0 : index
    %50 = vector.load %arg14[%c11_37, %c0_38] : memref<32x256xf32, #tpu.memory_space<vmem>>, vector<1x256xf32>
    tpu.vector_store %arg14[%c11_37, %c0_38], %49 {strides = array<i32>} : memref<32x256xf32, #tpu.memory_space<vmem>>, vector<1x256xf32>,
    %c12 = arith.constant 12 : index
    %c0_39 = arith.constant 0 : index
    %51 = vector.load %arg2[%c12, %c0_39] : memref<25x256xf32, #tpu.memory_space<vmem>>, vector<1x256xf32>
    %52 = arith.mulf %0, %51 : vector<1x256xf32>
    %c12_40 = arith.constant 12 : index
    %c0_41 = arith.constant 0 : index
    %53 = vector.load %arg14[%c12_40, %c0_41] : memref<32x256xf32, #tpu.memory_space<vmem>>, vector<1x256xf32>
    tpu.vector_store %arg14[%c12_40, %c0_41], %52 {strides = array<i32>} : memref<32x256xf32, #tpu.memory_space<vmem>>, vector<1x256xf32>,
    %c255_i32 = arith.constant 255 : i32
    %54 = tpu.dynamic_rotate %0 by %c255_i32 dim 1 : vector<1x256xf32>, i32 -> vector<1x256xf32>
    %c13 = arith.constant 13 : index
    %c0_42 = arith.constant 0 : index
    %55 = vector.load %arg2[%c13, %c0_42] : memref<25x256xf32, #tpu.memory_space<vmem>>, vector<1x256xf32>
    %56 = arith.mulf %54, %55 : vector<1x256xf32>
    %c13_43 = arith.constant 13 : index
    %c0_44 = arith.constant 0 : index
    %57 = vector.load %arg14[%c13_43, %c0_44] : memref<32x256xf32, #tpu.memory_space<vmem>>, vector<1x256xf32>
    tpu.vector_store %arg14[%c13_43, %c0_44], %56 {strides = array<i32>} : memref<32x256xf32, #tpu.memory_space<vmem>>, vector<1x256xf32>,
    %c254_i32 = arith.constant 254 : i32
    %58 = tpu.dynamic_rotate %0 by %c254_i32 dim 1 : vector<1x256xf32>, i32 -> vector<1x256xf32>
    %c14 = arith.constant 14 : index
    %c0_45 = arith.constant 0 : index
    %59 = vector.load %arg2[%c14, %c0_45] : memref<25x256xf32, #tpu.memory_space<vmem>>, vector<1x256xf32>
    %60 = arith.mulf %58, %59 : vector<1x256xf32>
    %c14_46 = arith.constant 14 : index
    %c0_47 = arith.constant 0 : index
    %61 = vector.load %arg14[%c14_46, %c0_47] : memref<32x256xf32, #tpu.memory_space<vmem>>, vector<1x256xf32>
    tpu.vector_store %arg14[%c14_46, %c0_47], %60 {strides = array<i32>} : memref<32x256xf32, #tpu.memory_space<vmem>>, vector<1x256xf32>,
    %c242_i32 = arith.constant 242 : i32
    %62 = tpu.dynamic_rotate %0 by %c242_i32 dim 1 : vector<1x256xf32>, i32 -> vector<1x256xf32>
    %c15 = arith.constant 15 : index
    %c0_48 = arith.constant 0 : index
    %63 = vector.load %arg2[%c15, %c0_48] : memref<25x256xf32, #tpu.memory_space<vmem>>, vector<1x256xf32>
    %64 = arith.mulf %62, %63 : vector<1x256xf32>
    %c15_49 = arith.constant 15 : index
    %c0_50 = arith.constant 0 : index
    %65 = vector.load %arg14[%c15_49, %c0_50] : memref<32x256xf32, #tpu.memory_space<vmem>>, vector<1x256xf32>
    tpu.vector_store %arg14[%c15_49, %c0_50], %64 {strides = array<i32>} : memref<32x256xf32, #tpu.memory_space<vmem>>, vector<1x256xf32>,
    %c241_i32 = arith.constant 241 : i32
    %66 = tpu.dynamic_rotate %0 by %c241_i32 dim 1 : vector<1x256xf32>, i32 -> vector<1x256xf32>
    %c16 = arith.constant 16 : index
    %c0_51 = arith.constant 0 : index
    %67 = vector.load %arg2[%c16, %c0_51] : memref<25x256xf32, #tpu.memory_space<vmem>>, vector<1x256xf32>
    %68 = arith.mulf %66, %67 : vector<1x256xf32>
    %c16_52 = arith.constant 16 : index
    %c0_53 = arith.constant 0 : index
    %69 = vector.load %arg14[%c16_52, %c0_53] : memref<32x256xf32, #tpu.memory_space<vmem>>, vector<1x256xf32>
    tpu.vector_store %arg14[%c16_52, %c0_53], %68 {strides = array<i32>} : memref<32x256xf32, #tpu.memory_space<vmem>>, vector<1x256xf32>,
    %c240_i32 = arith.constant 240 : i32
    %70 = tpu.dynamic_rotate %0 by %c240_i32 dim 1 : vector<1x256xf32>, i32 -> vector<1x256xf32>
    %c17 = arith.constant 17 : index
    %c0_54 = arith.constant 0 : index
    %71 = vector.load %arg2[%c17, %c0_54] : memref<25x256xf32, #tpu.memory_space<vmem>>, vector<1x256xf32>
    %72 = arith.mulf %70, %71 : vector<1x256xf32>
    %c17_55 = arith.constant 17 : index
    %c0_56 = arith.constant 0 : index
    %73 = vector.load %arg14[%c17_55, %c0_56] : memref<32x256xf32, #tpu.memory_space<vmem>>, vector<1x256xf32>
    tpu.vector_store %arg14[%c17_55, %c0_56], %72 {strides = array<i32>} : memref<32x256xf32, #tpu.memory_space<vmem>>, vector<1x256xf32>,
    %c239_i32 = arith.constant 239 : i32
    %74 = tpu.dynamic_rotate %0 by %c239_i32 dim 1 : vector<1x256xf32>, i32 -> vector<1x256xf32>
    %c18 = arith.constant 18 : index
    %c0_57 = arith.constant 0 : index
    %75 = vector.load %arg2[%c18, %c0_57] : memref<25x256xf32, #tpu.memory_space<vmem>>, vector<1x256xf32>
    %76 = arith.mulf %74, %75 : vector<1x256xf32>
    %c18_58 = arith.constant 18 : index
    %c0_59 = arith.constant 0 : index
    %77 = vector.load %arg14[%c18_58, %c0_59] : memref<32x256xf32, #tpu.memory_space<vmem>>, vector<1x256xf32>
    tpu.vector_store %arg14[%c18_58, %c0_59], %76 {strides = array<i32>} : memref<32x256xf32, #tpu.memory_space<vmem>>, vector<1x256xf32>,
    %c238_i32 = arith.constant 238 : i32
    %78 = tpu.dynamic_rotate %0 by %c238_i32 dim 1 : vector<1x256xf32>, i32 -> vector<1x256xf32>
    %c19 = arith.constant 19 : index
    %c0_60 = arith.constant 0 : index
    %79 = vector.load %arg2[%c19, %c0_60] : memref<25x256xf32, #tpu.memory_space<vmem>>, vector<1x256xf32>
    %80 = arith.mulf %78, %79 : vector<1x256xf32>
    %c19_61 = arith.constant 19 : index
    %c0_62 = arith.constant 0 : index
    %81 = vector.load %arg14[%c19_61, %c0_62] : memref<32x256xf32, #tpu.memory_space<vmem>>, vector<1x256xf32>
    tpu.vector_store %arg14[%c19_61, %c0_62], %80 {strides = array<i32>} : memref<32x256xf32, #tpu.memory_space<vmem>>, vector<1x256xf32>,
    %c226_i32 = arith.constant 226 : i32
    %82 = tpu.dynamic_rotate %0 by %c226_i32 dim 1 : vector<1x256xf32>, i32 -> vector<1x256xf32>
    %c20 = arith.constant 20 : index
    %c0_63 = arith.constant 0 : index
    %83 = vector.load %arg2[%c20, %c0_63] : memref<25x256xf32, #tpu.memory_space<vmem>>, vector<1x256xf32>
    %84 = arith.mulf %82, %83 : vector<1x256xf32>
    %c20_64 = arith.constant 20 : index
    %c0_65 = arith.constant 0 : index
    %85 = vector.load %arg14[%c20_64, %c0_65] : memref<32x256xf32, #tpu.memory_space<vmem>>, vector<1x256xf32>
    tpu.vector_store %arg14[%c20_64, %c0_65], %84 {strides = array<i32>} : memref<32x256xf32, #tpu.memory_space<vmem>>, vector<1x256xf32>,
    %c225_i32 = arith.constant 225 : i32
    %86 = tpu.dynamic_rotate %0 by %c225_i32 dim 1 : vector<1x256xf32>, i32 -> vector<1x256xf32>
    %c21 = arith.constant 21 : index
    %c0_66 = arith.constant 0 : index
    %87 = vector.load %arg2[%c21, %c0_66] : memref<25x256xf32, #tpu.memory_space<vmem>>, vector<1x256xf32>
    %88 = arith.mulf %86, %87 : vector<1x256xf32>
    %c21_67 = arith.constant 21 : index
    %c0_68 = arith.constant 0 : index
    %89 = vector.load %arg14[%c21_67, %c0_68] : memref<32x256xf32, #tpu.memory_space<vmem>>, vector<1x256xf32>
    tpu.vector_store %arg14[%c21_67, %c0_68], %88 {strides = array<i32>} : memref<32x256xf32, #tpu.memory_space<vmem>>, vector<1x256xf32>,
    %c224_i32 = arith.constant 224 : i32
    %90 = tpu.dynamic_rotate %0 by %c224_i32 dim 1 : vector<1x256xf32>, i32 -> vector<1x256xf32>
    %c22 = arith.constant 22 : index
    %c0_69 = arith.constant 0 : index
    %91 = vector.load %arg2[%c22, %c0_69] : memref<25x256xf32, #tpu.memory_space<vmem>>, vector<1x256xf32>
    %92 = arith.mulf %90, %91 : vector<1x256xf32>
    %c22_70 = arith.constant 22 : index
    %c0_71 = arith.constant 0 : index
    %93 = vector.load %arg14[%c22_70, %c0_71] : memref<32x256xf32, #tpu.memory_space<vmem>>, vector<1x256xf32>
    tpu.vector_store %arg14[%c22_70, %c0_71], %92 {strides = array<i32>} : memref<32x256xf32, #tpu.memory_space<vmem>>, vector<1x256xf32>,
    %c223_i32 = arith.constant 223 : i32
    %94 = tpu.dynamic_rotate %0 by %c223_i32 dim 1 : vector<1x256xf32>, i32 -> vector<1x256xf32>
    %c23 = arith.constant 23 : index
    %c0_72 = arith.constant 0 : index
    %95 = vector.load %arg2[%c23, %c0_72] : memref<25x256xf32, #tpu.memory_space<vmem>>, vector<1x256xf32>
    %96 = arith.mulf %94, %95 : vector<1x256xf32>
    %c23_73 = arith.constant 23 : index
    %c0_74 = arith.constant 0 : index
    %97 = vector.load %arg14[%c23_73, %c0_74] : memref<32x256xf32, #tpu.memory_space<vmem>>, vector<1x256xf32>
    tpu.vector_store %arg14[%c23_73, %c0_74], %96 {strides = array<i32>} : memref<32x256xf32, #tpu.memory_space<vmem>>, vector<1x256xf32>,
    %c222_i32 = arith.constant 222 : i32
    %98 = tpu.dynamic_rotate %0 by %c222_i32 dim 1 : vector<1x256xf32>, i32 -> vector<1x256xf32>
    %c24 = arith.constant 24 : index
    %c0_75 = arith.constant 0 : index
    %99 = vector.load %arg2[%c24, %c0_75] : memref<25x256xf32, #tpu.memory_space<vmem>>, vector<1x256xf32>
    %100 = arith.mulf %98, %99 : vector<1x256xf32>
    %c24_76 = arith.constant 24 : index
    %c0_77 = arith.constant 0 : index
    %101 = vector.load %arg14[%c24_76, %c0_77] : memref<32x256xf32, #tpu.memory_space<vmem>>, vector<1x256xf32>
    tpu.vector_store %arg14[%c24_76, %c0_77], %100 {strides = array<i32>} : memref<32x256xf32, #tpu.memory_space<vmem>>, vector<1x256xf32>,
    %c0_78 = arith.constant 0 : index
    %c0_79 = arith.constant 0 : index
    %102 = vector.load %arg3[%c0_78, %c0_79] : memref<64x32xf32, #tpu.memory_space<vmem>>, vector<64x32xf32>
    %c0_80 = arith.constant 0 : index
    %c0_81 = arith.constant 0 : index
    %103 = vector.load %arg14[%c0_80, %c0_81] : memref<32x256xf32, #tpu.memory_space<vmem>>, vector<32x256xf32>
    %cst_82 = arith.constant dense<0.000000e+00> : vector<64x256xf32>
    %104 = tpu.matmul %102, %103, %cst_82 {dimension_numbers = #tpu.dot_dimension_numbers<[1], [0], [0], [1], [0, 0, 1, 1], [], []>} : vector<64x32xf32>, vector<32x256xf32>, vector<64x256xf32> -> vector<64x256xf32>
    %c0_83 = arith.constant 0 : index
    %c0_84 = arith.constant 0 : index
    %105 = vector.load %arg4[%c0_83, %c0_84] : memref<64x1xf32, #tpu.memory_space<vmem>>, vector<64x1xf32>
    %106 = vector.broadcast %105 : vector<64x1xf32> to vector<64x256xf32>
    %107 = arith.addf %104, %106 : vector<64x256xf32>
    %cst_85 = arith.constant 0.000000e+00 : f32
    %108 = vector.broadcast %cst_85 : f32 to vector<64x256xf32>
    %109 = arith.cmpf oge, %107, %108 : vector<64x256xf32>
    %cst_86 = arith.constant 0.00999999977 : f32
    %110 = vector.broadcast %cst_86 : f32 to vector<64x256xf32>
    %111 = arith.mulf %110, %107 : vector<64x256xf32>
    %112 = arith.select %109, %107, %111 : vector<64x256xi1>, vector<64x256xf32>
    %c17_i32_87 = arith.constant 17 : i32
    %113 = tpu.dynamic_rotate %112 by %c17_i32_87 dim 1 : vector<64x256xf32>, i32 -> vector<64x256xf32>
    %c6_88 = arith.constant 6 : index
    %c0_89 = arith.constant 0 : index
    %114 = vector.load %arg2[%c6_88, %c0_89] : memref<25x256xf32, #tpu.memory_space<vmem>>, vector<1x256xf32>
    %115 = vector.broadcast %114 : vector<1x256xf32> to vector<64x256xf32>
    %116 = arith.mulf %113, %115 : vector<64x256xf32>
    %c16_i32_90 = arith.constant 16 : i32
    %117 = tpu.dynamic_rotate %112 by %c16_i32_90 dim 1 : vector<64x256xf32>, i32 -> vector<64x256xf32>
    %c7_91 = arith.constant 7 : index
    %c0_92 = arith.constant 0 : index
    %118 = vector.load %arg2[%c7_91, %c0_92] : memref<25x256xf32, #tpu.memory_space<vmem>>, vector<1x256xf32>
    %119 = vector.broadcast %118 : vector<1x256xf32> to vector<64x256xf32>
    %120 = arith.mulf %117, %119 : vector<64x256xf32>
    %c15_i32_93 = arith.constant 15 : i32
    %121 = tpu.dynamic_rotate %112 by %c15_i32_93 dim 1 : vector<64x256xf32>, i32 -> vector<64x256xf32>
    %c8_94 = arith.constant 8 : index
    %c0_95 = arith.constant 0 : index
    %122 = vector.load %arg2[%c8_94, %c0_95] : memref<25x256xf32, #tpu.memory_space<vmem>>, vector<1x256xf32>
    %123 = vector.broadcast %122 : vector<1x256xf32> to vector<64x256xf32>
    %124 = arith.mulf %121, %123 : vector<64x256xf32>
    %c1_i32_96 = arith.constant 1 : i32
    %125 = tpu.dynamic_rotate %112 by %c1_i32_96 dim 1 : vector<64x256xf32>, i32 -> vector<64x256xf32>
    %c11_97 = arith.constant 11 : index
    %c0_98 = arith.constant 0 : index
    %126 = vector.load %arg2[%c11_97, %c0_98] : memref<25x256xf32, #tpu.memory_space<vmem>>, vector<1x256xf32>
    %127 = vector.broadcast %126 : vector<1x256xf32> to vector<64x256xf32>
    %128 = arith.mulf %125, %127 : vector<64x256xf32>
    %c12_99 = arith.constant 12 : index
    %c0_100 = arith.constant 0 : index
    %129 = vector.load %arg2[%c12_99, %c0_100] : memref<25x256xf32, #tpu.memory_space<vmem>>, vector<1x256xf32>
    %130 = vector.broadcast %129 : vector<1x256xf32> to vector<64x256xf32>
    %131 = arith.mulf %112, %130 : vector<64x256xf32>
    %c255_i32_101 = arith.constant 255 : i32
    %132 = tpu.dynamic_rotate %112 by %c255_i32_101 dim 1 : vector<64x256xf32>, i32 -> vector<64x256xf32>
    %c13_102 = arith.constant 13 : index
    %c0_103 = arith.constant 0 : index
    %133 = vector.load %arg2[%c13_102, %c0_103] : memref<25x256xf32, #tpu.memory_space<vmem>>, vector<1x256xf32>
    %134 = vector.broadcast %133 : vector<1x256xf32> to vector<64x256xf32>
    %135 = arith.mulf %132, %134 : vector<64x256xf32>
    %c241_i32_104 = arith.constant 241 : i32
    %136 = tpu.dynamic_rotate %112 by %c241_i32_104 dim 1 : vector<64x256xf32>, i32 -> vector<64x256xf32>
    %c16_105 = arith.constant 16 : index
    %c0_106 = arith.constant 0 : index
    %137 = vector.load %arg2[%c16_105, %c0_106] : memref<25x256xf32, #tpu.memory_space<vmem>>, vector<1x256xf32>
    %138 = vector.broadcast %137 : vector<1x256xf32> to vector<64x256xf32>
    %139 = arith.mulf %136, %138 : vector<64x256xf32>
    %c240_i32_107 = arith.constant 240 : i32
    %140 = tpu.dynamic_rotate %112 by %c240_i32_107 dim 1 : vector<64x256xf32>, i32 -> vector<64x256xf32>
    %c17_108 = arith.constant 17 : index
    %c0_109 = arith.constant 0 : index
    %141 = vector.load %arg2[%c17_108, %c0_109] : memref<25x256xf32, #tpu.memory_space<vmem>>, vector<1x256xf32>
    %142 = vector.broadcast %141 : vector<1x256xf32> to vector<64x256xf32>
    %143 = arith.mulf %140, %142 : vector<64x256xf32>
    %c239_i32_110 = arith.constant 239 : i32
    %144 = tpu.dynamic_rotate %112 by %c239_i32_110 dim 1 : vector<64x256xf32>, i32 -> vector<64x256xf32>
    %c18_111 = arith.constant 18 : index
    %c0_112 = arith.constant 0 : index
    %145 = vector.load %arg2[%c18_111, %c0_112] : memref<25x256xf32, #tpu.memory_space<vmem>>, vector<1x256xf32>
    %146 = vector.broadcast %145 : vector<1x256xf32> to vector<64x256xf32>
    %147 = arith.mulf %144, %146 : vector<64x256xf32>
    %148 = tpu.concatenate %116, %120, %124, %128, %131, %135, %139, %143, %147 in 0 : vector<64x256xf32>, vector<64x256xf32>, vector<64x256xf32>, vector<64x256xf32>, vector<64x256xf32>, vector<64x256xf32>, vector<64x256xf32>, vector<64x256xf32>, vector<64x256xf32> -> vector<576x256xf32>
    %c0_113 = arith.constant 0 : index
    %c0_114 = arith.constant 0 : index
    %149 = vector.load %arg5[%c0_113, %c0_114] : memref<64x576xf32, #tpu.memory_space<vmem>>, vector<64x576xf32>
    %cst_115 = arith.constant dense<0.000000e+00> : vector<64x256xf32>
    %150 = tpu.matmul %149, %148, %cst_115 {dimension_numbers = #tpu.dot_dimension_numbers<[1], [0], [0], [1], [0, 0, 1, 1], [], []>} : vector<64x576xf32>, vector<576x256xf32>, vector<64x256xf32> -> vector<64x256xf32>
    %c0_116 = arith.constant 0 : index
    %c0_117 = arith.constant 0 : index
    %151 = vector.load %arg6[%c0_116, %c0_117] : memref<64x1xf32, #tpu.memory_space<vmem>>, vector<64x1xf32>
    %152 = vector.broadcast %151 : vector<64x1xf32> to vector<64x256xf32>
    %153 = arith.addf %150, %152 : vector<64x256xf32>
    %cst_118 = arith.constant 0.000000e+00 : f32
    %154 = vector.broadcast %cst_118 : f32 to vector<64x256xf32>
    %155 = arith.cmpf oge, %153, %154 : vector<64x256xf32>
    %cst_119 = arith.constant 0.00999999977 : f32
    %156 = vector.broadcast %cst_119 : f32 to vector<64x256xf32>
    %157 = arith.mulf %156, %153 : vector<64x256xf32>
    %158 = arith.select %155, %153, %157 : vector<64x256xi1>, vector<64x256xf32>
    %c17_i32_120 = arith.constant 17 : i32
    %159 = tpu.dynamic_rotate %158 by %c17_i32_120 dim 1 : vector<64x256xf32>, i32 -> vector<64x256xf32>
    %c6_121 = arith.constant 6 : index
    %c0_122 = arith.constant 0 : index
    %160 = vector.load %arg2[%c6_121, %c0_122] : memref<25x256xf32, #tpu.memory_space<vmem>>, vector<1x256xf32>
    %161 = vector.broadcast %160 : vector<1x256xf32> to vector<64x256xf32>
    %162 = arith.mulf %159, %161 : vector<64x256xf32>
    %c16_i32_123 = arith.constant 16 : i32
    %163 = tpu.dynamic_rotate %158 by %c16_i32_123 dim 1 : vector<64x256xf32>, i32 -> vector<64x256xf32>
    %c7_124 = arith.constant 7 : index
    %c0_125 = arith.constant 0 : index
    %164 = vector.load %arg2[%c7_124, %c0_125] : memref<25x256xf32, #tpu.memory_space<vmem>>, vector<1x256xf32>
    %165 = vector.broadcast %164 : vector<1x256xf32> to vector<64x256xf32>
    %166 = arith.mulf %163, %165 : vector<64x256xf32>
    %c15_i32_126 = arith.constant 15 : i32
    %167 = tpu.dynamic_rotate %158 by %c15_i32_126 dim 1 : vector<64x256xf32>, i32 -> vector<64x256xf32>
    %c8_127 = arith.constant 8 : index
    %c0_128 = arith.constant 0 : index
    %168 = vector.load %arg2[%c8_127, %c0_128] : memref<25x256xf32, #tpu.memory_space<vmem>>, vector<1x256xf32>
    %169 = vector.broadcast %168 : vector<1x256xf32> to vector<64x256xf32>
    %170 = arith.mulf %167, %169 : vector<64x256xf32>
    %c1_i32_129 = arith.constant 1 : i32
    %171 = tpu.dynamic_rotate %158 by %c1_i32_129 dim 1 : vector<64x256xf32>, i32 -> vector<64x256xf32>
    %c11_130 = arith.constant 11 : index
    %c0_131 = arith.constant 0 : index
    %172 = vector.load %arg2[%c11_130, %c0_131] : memref<25x256xf32, #tpu.memory_space<vmem>>, vector<1x256xf32>
    %173 = vector.broadcast %172 : vector<1x256xf32> to vector<64x256xf32>
    %174 = arith.mulf %171, %173 : vector<64x256xf32>
    %c12_132 = arith.constant 12 : index
    %c0_133 = arith.constant 0 : index
    %175 = vector.load %arg2[%c12_132, %c0_133] : memref<25x256xf32, #tpu.memory_space<vmem>>, vector<1x256xf32>
    %176 = vector.broadcast %175 : vector<1x256xf32> to vector<64x256xf32>
    %177 = arith.mulf %158, %176 : vector<64x256xf32>
    %c255_i32_134 = arith.constant 255 : i32
    %178 = tpu.dynamic_rotate %158 by %c255_i32_134 dim 1 : vector<64x256xf32>, i32 -> vector<64x256xf32>
    %c13_135 = arith.constant 13 : index
    %c0_136 = arith.constant 0 : index
    %179 = vector.load %arg2[%c13_135, %c0_136] : memref<25x256xf32, #tpu.memory_space<vmem>>, vector<1x256xf32>
    %180 = vector.broadcast %179 : vector<1x256xf32> to vector<64x256xf32>
    %181 = arith.mulf %178, %180 : vector<64x256xf32>
    %c241_i32_137 = arith.constant 241 : i32
    %182 = tpu.dynamic_rotate %158 by %c241_i32_137 dim 1 : vector<64x256xf32>, i32 -> vector<64x256xf32>
    %c16_138 = arith.constant 16 : index
    %c0_139 = arith.constant 0 : index
    %183 = vector.load %arg2[%c16_138, %c0_139] : memref<25x256xf32, #tpu.memory_space<vmem>>, vector<1x256xf32>
    %184 = vector.broadcast %183 : vector<1x256xf32> to vector<64x256xf32>
    %185 = arith.mulf %182, %184 : vector<64x256xf32>
    %c240_i32_140 = arith.constant 240 : i32
    %186 = tpu.dynamic_rotate %158 by %c240_i32_140 dim 1 : vector<64x256xf32>, i32 -> vector<64x256xf32>
    %c17_141 = arith.constant 17 : index
    %c0_142 = arith.constant 0 : index
    %187 = vector.load %arg2[%c17_141, %c0_142] : memref<25x256xf32, #tpu.memory_space<vmem>>, vector<1x256xf32>
    %188 = vector.broadcast %187 : vector<1x256xf32> to vector<64x256xf32>
    %189 = arith.mulf %186, %188 : vector<64x256xf32>
    %c239_i32_143 = arith.constant 239 : i32
    %190 = tpu.dynamic_rotate %158 by %c239_i32_143 dim 1 : vector<64x256xf32>, i32 -> vector<64x256xf32>
    %c18_144 = arith.constant 18 : index
    %c0_145 = arith.constant 0 : index
    %191 = vector.load %arg2[%c18_144, %c0_145] : memref<25x256xf32, #tpu.memory_space<vmem>>, vector<1x256xf32>
    %192 = vector.broadcast %191 : vector<1x256xf32> to vector<64x256xf32>
    %193 = arith.mulf %190, %192 : vector<64x256xf32>
    %194 = tpu.concatenate %162, %166, %170, %174, %177, %181, %185, %189, %193 in 0 : vector<64x256xf32>, vector<64x256xf32>, vector<64x256xf32>, vector<64x256xf32>, vector<64x256xf32>, vector<64x256xf32>, vector<64x256xf32>, vector<64x256xf32>, vector<64x256xf32> -> vector<576x256xf32>
    %c0_146 = arith.constant 0 : index
    %c0_147 = arith.constant 0 : index
    %195 = vector.load %arg7[%c0_146, %c0_147] : memref<32x576xf32, #tpu.memory_space<vmem>>, vector<32x576xf32>
    %cst_148 = arith.constant dense<0.000000e+00> : vector<32x256xf32>
    %196 = tpu.matmul %195, %194, %cst_148 {dimension_numbers = #tpu.dot_dimension_numbers<[1], [0], [0], [1], [0, 0, 1, 1], [], []>} : vector<32x576xf32>, vector<576x256xf32>, vector<32x256xf32> -> vector<32x256xf32>
    %c0_149 = arith.constant 0 : index
    %c0_150 = arith.constant 0 : index
    %197 = vector.load %arg8[%c0_149, %c0_150] : memref<32x1xf32, #tpu.memory_space<vmem>>, vector<32x1xf32>
    %198 = vector.broadcast %197 : vector<32x1xf32> to vector<32x256xf32>
    %199 = arith.addf %196, %198 : vector<32x256xf32>
    %cst_151 = arith.constant 0.000000e+00 : f32
    %200 = vector.broadcast %cst_151 : f32 to vector<32x256xf32>
    %201 = arith.cmpf oge, %199, %200 : vector<32x256xf32>
    %cst_152 = arith.constant 0.00999999977 : f32
    %202 = vector.broadcast %cst_152 : f32 to vector<32x256xf32>
    %203 = arith.mulf %202, %199 : vector<32x256xf32>
    %204 = arith.select %201, %199, %203 : vector<32x256xi1>, vector<32x256xf32>
    %c17_i32_153 = arith.constant 17 : i32
    %205 = tpu.dynamic_rotate %204 by %c17_i32_153 dim 1 : vector<32x256xf32>, i32 -> vector<32x256xf32>
    %c6_154 = arith.constant 6 : index
    %c0_155 = arith.constant 0 : index
    %206 = vector.load %arg2[%c6_154, %c0_155] : memref<25x256xf32, #tpu.memory_space<vmem>>, vector<1x256xf32>
    %207 = vector.broadcast %206 : vector<1x256xf32> to vector<32x256xf32>
    %208 = arith.mulf %205, %207 : vector<32x256xf32>
    %c16_i32_156 = arith.constant 16 : i32
    %209 = tpu.dynamic_rotate %204 by %c16_i32_156 dim 1 : vector<32x256xf32>, i32 -> vector<32x256xf32>
    %c7_157 = arith.constant 7 : index
    %c0_158 = arith.constant 0 : index
    %210 = vector.load %arg2[%c7_157, %c0_158] : memref<25x256xf32, #tpu.memory_space<vmem>>, vector<1x256xf32>
    %211 = vector.broadcast %210 : vector<1x256xf32> to vector<32x256xf32>
    %212 = arith.mulf %209, %211 : vector<32x256xf32>
    %c15_i32_159 = arith.constant 15 : i32
    %213 = tpu.dynamic_rotate %204 by %c15_i32_159 dim 1 : vector<32x256xf32>, i32 -> vector<32x256xf32>
    %c8_160 = arith.constant 8 : index
    %c0_161 = arith.constant 0 : index
    %214 = vector.load %arg2[%c8_160, %c0_161] : memref<25x256xf32, #tpu.memory_space<vmem>>, vector<1x256xf32>
    %215 = vector.broadcast %214 : vector<1x256xf32> to vector<32x256xf32>
    %216 = arith.mulf %213, %215 : vector<32x256xf32>
    %c1_i32_162 = arith.constant 1 : i32
    %217 = tpu.dynamic_rotate %204 by %c1_i32_162 dim 1 : vector<32x256xf32>, i32 -> vector<32x256xf32>
    %c11_163 = arith.constant 11 : index
    %c0_164 = arith.constant 0 : index
    %218 = vector.load %arg2[%c11_163, %c0_164] : memref<25x256xf32, #tpu.memory_space<vmem>>, vector<1x256xf32>
    %219 = vector.broadcast %218 : vector<1x256xf32> to vector<32x256xf32>
    %220 = arith.mulf %217, %219 : vector<32x256xf32>
    %c12_165 = arith.constant 12 : index
    %c0_166 = arith.constant 0 : index
    %221 = vector.load %arg2[%c12_165, %c0_166] : memref<25x256xf32, #tpu.memory_space<vmem>>, vector<1x256xf32>
    %222 = vector.broadcast %221 : vector<1x256xf32> to vector<32x256xf32>
    %223 = arith.mulf %204, %222 : vector<32x256xf32>
    %c255_i32_167 = arith.constant 255 : i32
    %224 = tpu.dynamic_rotate %204 by %c255_i32_167 dim 1 : vector<32x256xf32>, i32 -> vector<32x256xf32>
    %c13_168 = arith.constant 13 : index
    %c0_169 = arith.constant 0 : index
    %225 = vector.load %arg2[%c13_168, %c0_169] : memref<25x256xf32, #tpu.memory_space<vmem>>, vector<1x256xf32>
    %226 = vector.broadcast %225 : vector<1x256xf32> to vector<32x256xf32>
    %227 = arith.mulf %224, %226 : vector<32x256xf32>
    %c241_i32_170 = arith.constant 241 : i32
    %228 = tpu.dynamic_rotate %204 by %c241_i32_170 dim 1 : vector<32x256xf32>, i32 -> vector<32x256xf32>
    %c16_171 = arith.constant 16 : index
    %c0_172 = arith.constant 0 : index
    %229 = vector.load %arg2[%c16_171, %c0_172] : memref<25x256xf32, #tpu.memory_space<vmem>>, vector<1x256xf32>
    %230 = vector.broadcast %229 : vector<1x256xf32> to vector<32x256xf32>
    %231 = arith.mulf %228, %230 : vector<32x256xf32>
    %c240_i32_173 = arith.constant 240 : i32
    %232 = tpu.dynamic_rotate %204 by %c240_i32_173 dim 1 : vector<32x256xf32>, i32 -> vector<32x256xf32>
    %c17_174 = arith.constant 17 : index
    %c0_175 = arith.constant 0 : index
    %233 = vector.load %arg2[%c17_174, %c0_175] : memref<25x256xf32, #tpu.memory_space<vmem>>, vector<1x256xf32>
    %234 = vector.broadcast %233 : vector<1x256xf32> to vector<32x256xf32>
    %235 = arith.mulf %232, %234 : vector<32x256xf32>
    %c239_i32_176 = arith.constant 239 : i32
    %236 = tpu.dynamic_rotate %204 by %c239_i32_176 dim 1 : vector<32x256xf32>, i32 -> vector<32x256xf32>
    %c18_177 = arith.constant 18 : index
    %c0_178 = arith.constant 0 : index
    %237 = vector.load %arg2[%c18_177, %c0_178] : memref<25x256xf32, #tpu.memory_space<vmem>>, vector<1x256xf32>
    %238 = vector.broadcast %237 : vector<1x256xf32> to vector<32x256xf32>
    %239 = arith.mulf %236, %238 : vector<32x256xf32>
    %240 = tpu.concatenate %208, %212, %216, %220, %223, %227, %231, %235, %239 in 0 : vector<32x256xf32>, vector<32x256xf32>, vector<32x256xf32>, vector<32x256xf32>, vector<32x256xf32>, vector<32x256xf32>, vector<32x256xf32>, vector<32x256xf32>, vector<32x256xf32> -> vector<288x256xf32>
    %c0_179 = arith.constant 0 : index
    %c0_180 = arith.constant 0 : index
    %241 = vector.load %arg9[%c0_179, %c0_180] : memref<16x288xf32, #tpu.memory_space<vmem>>, vector<16x288xf32>
    %cst_181 = arith.constant dense<0.000000e+00> : vector<16x256xf32>
    %242 = tpu.matmul %241, %240, %cst_181 {dimension_numbers = #tpu.dot_dimension_numbers<[1], [0], [0], [1], [0, 0, 1, 1], [], []>} : vector<16x288xf32>, vector<288x256xf32>, vector<16x256xf32> -> vector<16x256xf32>
    %c0_182 = arith.constant 0 : index
    %c0_183 = arith.constant 0 : index
    %243 = vector.load %arg10[%c0_182, %c0_183] : memref<16x1xf32, #tpu.memory_space<vmem>>, vector<16x1xf32>
    %244 = vector.broadcast %243 : vector<16x1xf32> to vector<16x256xf32>
    %245 = arith.addf %242, %244 : vector<16x256xf32>
    %cst_184 = arith.constant 0.000000e+00 : f32
    %246 = vector.broadcast %cst_184 : f32 to vector<16x256xf32>
    %247 = arith.cmpf oge, %245, %246 : vector<16x256xf32>
    %cst_185 = arith.constant 0.00999999977 : f32
    %248 = vector.broadcast %cst_185 : f32 to vector<16x256xf32>
    %249 = arith.mulf %248, %245 : vector<16x256xf32>
    %250 = arith.select %247, %245, %249 : vector<16x256xi1>, vector<16x256xf32>
    %c17_i32_186 = arith.constant 17 : i32
    %251 = tpu.dynamic_rotate %250 by %c17_i32_186 dim 1 : vector<16x256xf32>, i32 -> vector<16x256xf32>
    %c6_187 = arith.constant 6 : index
    %c0_188 = arith.constant 0 : index
    %252 = vector.load %arg2[%c6_187, %c0_188] : memref<25x256xf32, #tpu.memory_space<vmem>>, vector<1x256xf32>
    %253 = vector.broadcast %252 : vector<1x256xf32> to vector<16x256xf32>
    %254 = arith.mulf %251, %253 : vector<16x256xf32>
    %c16_i32_189 = arith.constant 16 : i32
    %255 = tpu.dynamic_rotate %250 by %c16_i32_189 dim 1 : vector<16x256xf32>, i32 -> vector<16x256xf32>
    %c7_190 = arith.constant 7 : index
    %c0_191 = arith.constant 0 : index
    %256 = vector.load %arg2[%c7_190, %c0_191] : memref<25x256xf32, #tpu.memory_space<vmem>>, vector<1x256xf32>
    %257 = vector.broadcast %256 : vector<1x256xf32> to vector<16x256xf32>
    %258 = arith.mulf %255, %257 : vector<16x256xf32>
    %c15_i32_192 = arith.constant 15 : i32
    %259 = tpu.dynamic_rotate %250 by %c15_i32_192 dim 1 : vector<16x256xf32>, i32 -> vector<16x256xf32>
    %c8_193 = arith.constant 8 : index
    %c0_194 = arith.constant 0 : index
    %260 = vector.load %arg2[%c8_193, %c0_194] : memref<25x256xf32, #tpu.memory_space<vmem>>, vector<1x256xf32>
    %261 = vector.broadcast %260 : vector<1x256xf32> to vector<16x256xf32>
    %262 = arith.mulf %259, %261 : vector<16x256xf32>
    %c1_i32_195 = arith.constant 1 : i32
    %263 = tpu.dynamic_rotate %250 by %c1_i32_195 dim 1 : vector<16x256xf32>, i32 -> vector<16x256xf32>
    %c11_196 = arith.constant 11 : index
    %c0_197 = arith.constant 0 : index
    %264 = vector.load %arg2[%c11_196, %c0_197] : memref<25x256xf32, #tpu.memory_space<vmem>>, vector<1x256xf32>
    %265 = vector.broadcast %264 : vector<1x256xf32> to vector<16x256xf32>
    %266 = arith.mulf %263, %265 : vector<16x256xf32>
    %c12_198 = arith.constant 12 : index
    %c0_199 = arith.constant 0 : index
    %267 = vector.load %arg2[%c12_198, %c0_199] : memref<25x256xf32, #tpu.memory_space<vmem>>, vector<1x256xf32>
    %268 = vector.broadcast %267 : vector<1x256xf32> to vector<16x256xf32>
    %269 = arith.mulf %250, %268 : vector<16x256xf32>
    %c255_i32_200 = arith.constant 255 : i32
    %270 = tpu.dynamic_rotate %250 by %c255_i32_200 dim 1 : vector<16x256xf32>, i32 -> vector<16x256xf32>
    %c13_201 = arith.constant 13 : index
    %c0_202 = arith.constant 0 : index
    %271 = vector.load %arg2[%c13_201, %c0_202] : memref<25x256xf32, #tpu.memory_space<vmem>>, vector<1x256xf32>
    %272 = vector.broadcast %271 : vector<1x256xf32> to vector<16x256xf32>
    %273 = arith.mulf %270, %272 : vector<16x256xf32>
    %c241_i32_203 = arith.constant 241 : i32
    %274 = tpu.dynamic_rotate %250 by %c241_i32_203 dim 1 : vector<16x256xf32>, i32 -> vector<16x256xf32>
    %c16_204 = arith.constant 16 : index
    %c0_205 = arith.constant 0 : index
    %275 = vector.load %arg2[%c16_204, %c0_205] : memref<25x256xf32, #tpu.memory_space<vmem>>, vector<1x256xf32>
    %276 = vector.broadcast %275 : vector<1x256xf32> to vector<16x256xf32>
    %277 = arith.mulf %274, %276 : vector<16x256xf32>
    %c240_i32_206 = arith.constant 240 : i32
    %278 = tpu.dynamic_rotate %250 by %c240_i32_206 dim 1 : vector<16x256xf32>, i32 -> vector<16x256xf32>
    %c17_207 = arith.constant 17 : index
    %c0_208 = arith.constant 0 : index
    %279 = vector.load %arg2[%c17_207, %c0_208] : memref<25x256xf32, #tpu.memory_space<vmem>>, vector<1x256xf32>
    %280 = vector.broadcast %279 : vector<1x256xf32> to vector<16x256xf32>
    %281 = arith.mulf %278, %280 : vector<16x256xf32>
    %c239_i32_209 = arith.constant 239 : i32
    %282 = tpu.dynamic_rotate %250 by %c239_i32_209 dim 1 : vector<16x256xf32>, i32 -> vector<16x256xf32>
    %c18_210 = arith.constant 18 : index
    %c0_211 = arith.constant 0 : index
    %283 = vector.load %arg2[%c18_210, %c0_211] : memref<25x256xf32, #tpu.memory_space<vmem>>, vector<1x256xf32>
    %284 = vector.broadcast %283 : vector<1x256xf32> to vector<16x256xf32>
    %285 = arith.mulf %282, %284 : vector<16x256xf32>
    %286 = tpu.concatenate %254, %258, %262, %266, %269, %273, %277, %281, %285 in 0 : vector<16x256xf32>, vector<16x256xf32>, vector<16x256xf32>, vector<16x256xf32>, vector<16x256xf32>, vector<16x256xf32>, vector<16x256xf32>, vector<16x256xf32>, vector<16x256xf32> -> vector<144x256xf32>
    %c0_212 = arith.constant 0 : index
    %c0_213 = arith.constant 0 : index
    %287 = vector.load %arg11[%c0_212, %c0_213] : memref<16x144xf32, #tpu.memory_space<vmem>>, vector<16x144xf32>
    %cst_214 = arith.constant dense<0.000000e+00> : vector<16x256xf32>
    %288 = tpu.matmul %287, %286, %cst_214 {dimension_numbers = #tpu.dot_dimension_numbers<[1], [0], [0], [1], [0, 0, 1, 1], [], []>} : vector<16x144xf32>, vector<144x256xf32>, vector<16x256xf32> -> vector<16x256xf32>
    %c0_215 = arith.constant 0 : index
    %c0_216 = arith.constant 0 : index
    %289 = vector.load %arg12[%c0_215, %c0_216] : memref<16x1xf32, #tpu.memory_space<vmem>>, vector<16x1xf32>
    %290 = vector.broadcast %289 : vector<16x1xf32> to vector<16x256xf32>
    %291 = arith.addf %288, %290 : vector<16x256xf32>
    %292 = arith.negf %291 : vector<16x256xf32>
    %293 = math.exp %292 : vector<16x256xf32>
    %cst_217 = arith.constant 1.000000e+00 : f32
    %294 = vector.broadcast %cst_217 : f32 to vector<16x256xf32>
    %295 = arith.addf %294, %293 : vector<16x256xf32>
    %296 = arith.divf %294, %295 : vector<16x256xf32>
    %c0_218 = arith.constant 0 : index
    %c0_219 = arith.constant 0 : index
    %297 = vector.load %arg13[%c0_218, %c0_219] : memref<16x256xf32, #tpu.memory_space<vmem>>, vector<16x256xf32>
    tpu.vector_store %arg13[%c0_218, %c0_219], %296 {strides = array<i32>} : memref<16x256xf32, #tpu.memory_space<vmem>>, vector<16x256xf32>,
    return
  }
  func.func @transform_0(%arg0: i32) -> (i32, i32) {
    %c0_i32 = arith.constant 0 : i32
    %c0_i32_0 = arith.constant 0 : i32
    return %c0_i32, %arg0 : i32, i32
  }
  func.func @transform_1(%arg0: i32) -> (i32, i32) {
    %c0_i32 = arith.constant 0 : i32
    %c0_i32_0 = arith.constant 0 : i32
    %c0_i32_1 = arith.constant 0 : i32
    return %c0_i32, %c0_i32_0 : i32, i32
  }
  func.func @transform_2(%arg0: i32) -> (i32, i32) {
    %c0_i32 = arith.constant 0 : i32
    %c0_i32_0 = arith.constant 0 : i32
    %c0_i32_1 = arith.constant 0 : i32
    return %c0_i32, %c0_i32_0 : i32, i32
  }
  func.func @transform_3(%arg0: i32) -> (i32, i32) {
    %c0_i32 = arith.constant 0 : i32
    %c0_i32_0 = arith.constant 0 : i32
    %c0_i32_1 = arith.constant 0 : i32
    return %c0_i32, %c0_i32_0 : i32, i32
  }
  func.func @transform_4(%arg0: i32) -> (i32, i32) {
    %c0_i32 = arith.constant 0 : i32
    %c0_i32_0 = arith.constant 0 : i32
    %c0_i32_1 = arith.constant 0 : i32
    return %c0_i32, %c0_i32_0 : i32, i32
  }
  func.func @transform_5(%arg0: i32) -> (i32, i32) {
    %c0_i32 = arith.constant 0 : i32
    %c0_i32_0 = arith.constant 0 : i32
    %c0_i32_1 = arith.constant 0 : i32
    return %c0_i32, %c0_i32_0 : i32, i32
  }
  func.func @transform_6(%arg0: i32) -> (i32, i32) {
    %c0_i32 = arith.constant 0 : i32
    %c0_i32_0 = arith.constant 0 : i32
    %c0_i32_1 = arith.constant 0 : i32
    return %c0_i32, %c0_i32_0 : i32, i32
  }
  func.func @transform_7(%arg0: i32) -> (i32, i32) {
    %c0_i32 = arith.constant 0 : i32
    %c0_i32_0 = arith.constant 0 : i32
    %c0_i32_1 = arith.constant 0 : i32
    return %c0_i32, %c0_i32_0 : i32, i32
  }
  func.func @transform_8(%arg0: i32) -> (i32, i32) {
    %c0_i32 = arith.constant 0 : i32
    %c0_i32_0 = arith.constant 0 : i32
    %c0_i32_1 = arith.constant 0 : i32
    return %c0_i32, %c0_i32_0 : i32, i32
  }
  func.func @transform_9(%arg0: i32) -> (i32, i32) {
    %c0_i32 = arith.constant 0 : i32
    %c0_i32_0 = arith.constant 0 : i32
    %c0_i32_1 = arith.constant 0 : i32
    return %c0_i32, %c0_i32_0 : i32, i32
  }
  func.func @transform_10(%arg0: i32) -> (i32, i32) {
    %c0_i32 = arith.constant 0 : i32
    %c0_i32_0 = arith.constant 0 : i32
    %c0_i32_1 = arith.constant 0 : i32
    return %c0_i32, %c0_i32_0 : i32, i32
  }
  func.func @transform_11(%arg0: i32) -> (i32, i32) {
    %c0_i32 = arith.constant 0 : i32
    %c0_i32_0 = arith.constant 0 : i32
    %c0_i32_1 = arith.constant 0 : i32
    return %c0_i32, %c0_i32_0 : i32, i32
  }
  func.func @transform_12(%arg0: i32) -> (i32, i32) {
    %c0_i32 = arith.constant 0 : i32
    %c0_i32_0 = arith.constant 0 : i32
    return %c0_i32, %arg0 : i32, i32
  }
}

</mosaic_0001>

<bundles_post_ra>
// kernel: espcn_forward.1
= control target key start
LH: loop header
LB: loop body
LE: loop exit
PB: predicated region body
PF: predicated region fallthrough
CT: control target
= control target key end

     0   :  { %s5262_s21 = smov 0   ;;  %s5264_s22 = smov 0   ;;  %s8883_s0 = inlined_call_operand.vmem [shape: f32[1,512], index: 0, kind: input, shape index: {}]   ;;  %s8884_s1 = inlined_call_operand.vmem [shape: f32[25,256], index: 1, kind: input, shape index: {}]   ;;  %s8885_s2 = inlined_call_operand.vmem [shape: f32[64,32], index: 2, kind: input, shape index: {}]   ;;  %s8886_s3 = inlined_call_operand.vmem [shape: f32[64,1], index: 3, kind: input, shape index: {}]   ;;  %s8887_s4 = inlined_call_operand.vmem [shape: f32[64,576], index: 4, kind: input, shape index: {}]   ;;  %s8888_s5 = inlined_call_operand.vmem [shape: f32[64,1], index: 5, kind: input, shape index: {}]   ;;  %s8889_s6 = inlined_call_operand.vmem [shape: f32[32,576], index: 6, kind: input, shape index: {}]   ;;  %s8890_s7 = inlined_call_operand.vmem [shape: f32[32,1], index: 7, kind: input, shape index: {}]   ;;  %s8891_s8 = inlined_call_operand.vmem [shape: f32[16,288], index: 8, kind: input, shape index: {}]   ;;  %s8892_s9 = inlined_call_operand.vmem [shape: f32[16,1], index: 9, kind: input, shape index: {}]   ;;  %s8893_s10 = inlined_call_operand.vmem [shape: f32[16,144], index: 10, kind: input, shape index: {}]   ;;  %s8894_s11 = inlined_call_operand.vmem [shape: f32[16,1], index: 11, kind: input, shape index: {}]   ;;  %s8895_s12 = inlined_call_operand.vmem [shape: f32[16,512], index: 12, kind: output, shape index: {}]  }
   0x1   :  { %s5266_s23 = smov 0  }
   0x2 LB: > { %s5275_s24 = sadd.s32 4294967295, %s5168_s23   ;;  %s5277_s25 = sadd.s32 1, %s5168_s23   ;;  %s5168_s23 = sphi %s5266_s23, %s9110_s23   ;;  %s5164_s22 = sphi %s5264_s22, %s9109_s22   ;;  %s5160_s21 = sphi %s5262_s21, %s9108_s21  }
   0x3   : > { %s283_s26 = ssub.s32 %s5168_s23, %s5277_s25  ;;  %s286_s27 = sadd.s32 1, %s5164_s22 }
   0x4   : > { %p284_p0 = scmp.eq.s32.totalorder %s283_s26, 0  ;;  %p296_p1 = scmp.ne.s32.totalorder %s5164_s22, %s5160_s21 }
   0x5   : > { %p297_p2 = scmp.eq.s32.totalorder %s5275_s24, 1  ;;  %p4523_p3 = scmp.ge.s32.totalorder %s5168_s23, 1 }
   0x6   : > { %s5285_s28 = scalar_select %p284_p0, %s5164_s22, %s286_s27  }
   0x7   : > { %p5287_p4 = por %p297_p2, %p296_p1  ;;  %p362_p5 = scmp.lt.s32.totalorder %s5168_s23, 3 }
   0x9   : > { %p363_p6 = pnand %p4523_p3, %p362_p5 }
   0xb   : > { %366 = sbr.rel (%p363_p6) target bundleno = 2580 (0xa14), region = 68 }
  0x12   : > { %s4525_s30 = sshll.u32 %s5275_s24, 1  ;;  %v412_v0 = vlaneseq  ;;  %s5170_s16 = smov 33   ;;  %v4537_v7 = vld [vmem:[%s8884_s1 + $0x14] ss:$8 sm:$0x3]  ;;  %v8900_v10 = vmov 0.0  }
  0x13   : > { %p403_p7 = scmp.lt.s32.totalorder %s4525_s30, 3  ;;  %s5171_s17 = smov 34   ;;  %410 = vst [vmem:[#allocation2 + $0x38] sm:$0xfe] %v8900_v10  ;;  %409 = vst [vmem:[#allocation2 + $0x30] sm:$0xfe] %v8900_v10  ;;  %1617 = vmatprep.mubr.f32.mxu1 %v8900_v10 }
  0x14   : > { %v5293_v1 = vshrl.u32 %v412_v0, 7  ;;  %s5172_s18 = smov 32   ;;  %s5173_s19 = smov 31   ;;  %vm5350_vm0 = vcmp.lt.s32.totalorder %v412_v0, 256  ;;  %v5195_v11 = vmov 1966171168  }
  0x15   : > { %s9112_s30 = smov (!%p403_p7, %s4525_s30), 3  ;;  %s5174_s20 = smov 30   ;;  %v449_v12 = vunpack.c.l.s4 %v5195_v11  ;;  %v5388_v13 = vand.u32 127, %v412_v0  ;;  %v4526_v14 = vld [vmem:[%s8884_s1 + $0x1] ss:$8 sm:$0x3] }
  0x16   : > { %v5296_v2 = vsub.s32 0, %v5293_v1  ;;  %s405_s15 = scalar_lea.vmem %s8883_s0, %s9112_s30  ;;  %v5302_v3 = vsub.s32 1, %v5293_v1  ;;  %s5175_s23 = smov 18   ;;  %v431_v15 = vld [vmem:[%s8884_s1] ss:$8 sm:$0x3] }
  0x17   : > { %v408_v4 = vld [vmem:[%s405_s15] sm:$0x3]  ;;  %s8982_s26 = smov 17   ;;  %s8980_s27 = smov 16   ;;  %v450_v16 = vunpack.c.0.s8 %v449_v12  ;;  %vm473_vm1 = vcmp.lt.s32.totalorder %v5388_v13, 33  ;;  %vm428_vm2 = vcmp.lt.s32.totalorder %v5388_v13, 34 }
  0x18   : > { %v5305_v5 = vrot.slane %v408_v4, %v5296_v2  ;;  %v5310_v6 = vrot.slane %v408_v4, %v5302_v3  ;;  %s8971_s30 = smov 15   ;;  %s5179_s13 = smov 14   ;;  %v944_v8 = vmul.f32 %v4537_v7, %v408_v4  ;;  %v4527_v19 = vld [vmem:[%s8884_s1 + $0x2] ss:$8 sm:$0x3]  ;;  %v482_v20 = vrot.slane %v4526_v14, %v5296_v2 }
  0x19   : > { %s5180_s14 = smov 2   ;;  %s8969_s15 = smov 1   ;;  %v486_v21 = vrot.slane %v4526_v14, %v5302_v3  ;;  %v436_v22 = vrot.slane %v431_v15, %v5296_v2  ;;  %v440_v23 = vrot.slane %v431_v15, %v5302_v3  ;;  %v5406_v24 = vsub.s32 %v450_v16, %v5293_v1  ;;  %v4528_v37 = vld [vmem:[%s8884_s1 + $0x3] ss:$8 sm:$0x3] }
  0x1a   : > { %469 = vrot.lane.b32.xlu1 %v5305_v5, %s5170_s16  ;;  %422 = vrot.lane.b32.xlu0 %v5305_v5, %s5171_s17  ;;  %946 = vst.msk [vmem:[#allocation2 + $0x14] ss:$8 sm:$0x3] %vm5350_vm0, %v944_v8  ;;  %vm516_vm3 = vcmp.lt.s32.totalorder %v5388_v13, 32  ;;  %v525_v27 = vrot.slane %v4527_v19, %v5296_v2  ;;  %v529_v28 = vrot.slane %v4527_v19, %v5302_v3  ;;  %vm559_vm4 = vcmp.lt.s32.totalorder %v5388_v13, 31  ;;  %v1481_v7 = vld [vmem:[%s8886_s3 + $0x8] sm:$0xff] }
  0x1b   : > { %v568_v44 = vrot.slane %v4528_v37, %v5296_v2  ;;  %v572_v45 = vrot.slane %v4528_v37, %v5302_v3  ;;  %v4529_v50 = vld [vmem:[%s8884_s1 + $0x4] ss:$8 sm:$0x3]  ;;  %vm602_vm5 = vcmp.lt.s32.totalorder %v5388_v13, 30  ;;  %v5196_v15 = vmov 0  }
  0x1c   : > { %v611_v58 = vrot.slane %v4529_v50, %v5296_v2  ;;  %v4530_v59 = vld [vmem:[%s8884_s1 + $0x5] ss:$8 sm:$0x3]  ;;  %v615_v63 = vrot.slane %v4529_v50, %v5302_v3  ;;  %5129 = vset.pattern.permute.xlu1 %v5196_v15  ;;  %5128 = vset.pattern.permute.xlu0 %v5196_v15  ;;  %vm645_vm6 = vcmp.lt.s32.totalorder %v5388_v13, 18  ;;  %vm688_vm7 = vcmp.lt.s32.totalorder %v5388_v13, 17  ;;  %v1487_v50 = vld [vmem:[%s8886_s3 + $0x38] sm:$0xff] }
  0x1d   : > { %v1480_v8 = vld [vmem:[%s8886_s3] sm:$0xff]  ;;  %v658_v14 = vrot.slane %v4530_v59, %v5302_v3  ;;  %vm731_vm8 = vcmp.lt.s32.totalorder %v5388_v13, 16  ;;  %vm774_vm9 = vcmp.lt.s32.totalorder %v5388_v13, 15  ;;  %vm817_vm10 = vcmp.lt.s32.totalorder %v5388_v13, 14  ;;  %v1465_v9 = vld [vmem:[%s8885_s2 + $0x8] sm:$0xff] }
  0x1e   : > { %471 = vrot.lane.b32.xlu1 %v5310_v6, %s5170_s16  ;;  %424 = vrot.lane.b32.xlu0 %v5310_v6, %s5171_s17  ;;  %s8921_s16 = smov 127   ;;  %s5188_s17 = smov 110   ;;  %v4531_v19 = vld [vmem:[%s8884_s1 + $0x6] ss:$8 sm:$0x3]  ;;  %vm860_vm11 = vcmp.lt.s32.totalorder %v5388_v13, 2 }
  0x1f   : > { %v4535_v15 = vld [vmem:[%s8884_s1 + $0x12] ss:$8 sm:$0x3]  ;;  %vm903_vm12 = vcmp.lt.s32.totalorder %v5388_v13, 1  ;;  %vm952_vm13 = vcmp.lt.s32.totalorder %v5388_v13, 127  ;;  %vm995_vm14 = vcmp.lt.s32.totalorder %v5388_v13, 126 }
  0x20   : > { %vm1038_vm15 = vcmp.lt.s32.totalorder %v5388_v13, 114 }
  0x22   : > { %514 = vrot.lane.b32.xlu1 %v5310_v6, %s5172_s18  ;;  %512 = vrot.lane.b32.xlu0 %v5305_v5, %s5172_s18  ;;  %s5189_s18 = smov 98  }
  0x26   : > { %557 = vrot.lane.b32.xlu1 %v5310_v6, %s5173_s19  ;;  %555 = vrot.lane.b32.xlu0 %v5305_v5, %s5173_s19  ;;  %s5183_s19 = smov 126  }
  0x2a   : > { %600 = vrot.lane.b32.xlu1 %v5310_v6, %s5174_s20  ;;  %598 = vrot.lane.b32.xlu0 %v5305_v5, %s5174_s20  ;;  %s5184_s20 = smov 114  }
  0x2e   : > { %643 = vrot.lane.b32.xlu1 %v5310_v6, %s5175_s23  ;;  %641 = vrot.lane.b32.xlu0 %v5305_v5, %s5175_s23  ;;  %s8919_s23 = smov 113  }
  0x32   : > { %686 = vrot.lane.b32.xlu1 %v5310_v6, %s8982_s26  ;;  %684 = vrot.lane.b32.xlu0 %v5305_v5, %s8982_s26 }
  0x36   : > { %729 = vrot.lane.b32.xlu1 %v5310_v6, %s8980_s27  ;;  %727 = vrot.lane.b32.xlu0 %v5305_v5, %s8980_s27 }
  0x3a   : > { %772 = vrot.lane.b32.xlu1 %v5310_v6, %s8971_s30  ;;  %770 = vrot.lane.b32.xlu0 %v5305_v5, %s8971_s30 }
  0x3e   : > { %815 = vrot.lane.b32.xlu1 %v5310_v6, %s5179_s13  ;;  %813 = vrot.lane.b32.xlu0 %v5305_v5, %s5179_s13  ;;  %s8898_s13 = smov 112  }
  0x42   : > { %858 = vrot.lane.b32.xlu1 %v5310_v6, %s5180_s14  ;;  %856 = vrot.lane.b32.xlu0 %v5305_v5, %s5180_s14  ;;  %s8896_s14 = smov 111  }
  0x46   : > { %901 = vrot.lane.b32.xlu1 %v5310_v6, %s8969_s15  ;;  %899 = vrot.lane.b32.xlu0 %v5305_v5, %s8969_s15 }
  0x4a   : > { %950 = vrot.lane.b32.xlu1 %v5310_v6, %s8921_s16  ;;  %948 = vrot.lane.b32.xlu0 %v5305_v5, %s8921_s16 }
  0x4e   : > { %993 = vrot.lane.b32.xlu1 %v5310_v6, %s5183_s19  ;;  %991 = vrot.lane.b32.xlu0 %v5305_v5, %s5183_s19  ;;  %s5190_s19 = smov 97  }
  0x52   : > { %1036 = vrot.lane.b32.xlu1 %v5310_v6, %s5184_s20  ;;  %1034 = vrot.lane.b32.xlu0 %v5305_v5, %s5184_s20  ;;  %s5191_s20 = smov 96  }
  0x56   : > { %1079 = vrot.lane.b32.xlu1 %v5310_v6, %s8919_s23  ;;  %1077 = vrot.lane.b32.xlu0 %v5305_v5, %s8919_s23 }
  0x5a   : > { %1122 = vrot.lane.b32.xlu1 %v5310_v6, %s8898_s13  ;;  %1120 = vrot.lane.b32.xlu0 %v5305_v5, %s8898_s13  ;;  %s8996_s13 = smov 112  }
  0x5e   : > { %1165 = vrot.lane.b32.xlu1 %v5310_v6, %s8896_s14  ;;  %1163 = vrot.lane.b32.xlu0 %v5305_v5, %s8896_s14  ;;  %s5192_s14 = smov 95  }
  0x62   : > { %1208 = vrot.lane.b32.xlu1 %v5310_v6, %s5188_s17  ;;  %1206 = vrot.lane.b32.xlu0 %v5305_v5, %s5188_s17  ;;  %s5194_s17 = smov 94  }
  0x66   : > { %1251 = vrot.lane.b32.xlu1 %v5310_v6, %s5189_s18  ;;  %1249 = vrot.lane.b32.xlu0 %v5305_v5, %s5189_s18 }
  0x6a   : > { %1294 = vrot.lane.b32.xlu1 %v5310_v6, %s5190_s19  ;;  %1292 = vrot.lane.b32.xlu0 %v5305_v5, %s5190_s19 }
  0x6e   : > { %1337 = vrot.lane.b32.xlu1 %v5310_v6, %s5191_s20  ;;  %1335 = vrot.lane.b32.xlu0 %v5305_v5, %s5191_s20  ;;  %s9032_s20 = smov 127  }
  0x72   : > { %1380 = vrot.lane.b32.xlu1 %v5310_v6, %s5192_s14  ;;  %1378 = vrot.lane.b32.xlu0 %v5305_v5, %s5192_s14  ;;  %s9002_s14 = smov 111  }
  0x76   : > { %1423 = vrot.lane.b32.xlu1 %v5310_v6, %s5194_s17  ;;  %1421 = vrot.lane.b32.xlu0 %v5305_v5, %s5194_s17  ;;  %v654_v6 = vrot.slane %v4530_v59, %v5296_v2  ;;  %s9044_s17 = smov 113  }
  0x7a   : > { %1495 = vperm.xlu1 %5129, %v1481_v7   ;;  %1490 = vperm.xlu0 %5128, %v1480_v8  }
  0x8c   : > { %v470_v17 = vpop.permute.xlu1 %469  ;;  %v423_v18 = vpop.permute.xlu0 %422 }
  0x90   : > { %v472_v25 = vpop.permute.xlu1 %471  ;;  %v425_v26 = vpop.permute.xlu0 %424 }
  0x91   : > { %v474_v29 = vsel %vm473_vm1, %v470_v17, %v472_v25  ;;  %v475_v30 = vsel %vm473_vm1, %v472_v25, %v470_v17  ;;  %v429_v31 = vsel %vm428_vm2, %v423_v18, %v425_v26  ;;  %v430_v32 = vsel %vm428_vm2, %v425_v26, %v423_v18 }
  0x92   : > { %v489_v33 = vmul.f32 %v482_v20, %v475_v30  ;;  %v490_v34 = vmul.f32 %v486_v21, %v474_v29  ;;  %v443_v35 = vmul.f32 %v436_v22, %v430_v32  ;;  %v444_v36 = vmul.f32 %v440_v23, %v429_v31  ;;  %v1482_v20 = vld [vmem:[%s8886_s3 + $0x10] sm:$0xff]  ;;  %v1483_v21 = vld [vmem:[%s8886_s3 + $0x18] sm:$0xff] }
  0x93   : > { %v697_v29 = vrot.slane %v4531_v19, %v5296_v2  ;;  %v701_v30 = vrot.slane %v4531_v19, %v5302_v3  ;;  %1500 = vperm.xlu1 %5129, %v1482_v20   ;;  %1505 = vperm.xlu0 %5128, %v1483_v21   ;;  %vm1081_vm1 = vcmp.lt.s32.totalorder %v5388_v13, 113  ;;  %vm1124_vm2 = vcmp.lt.s32.totalorder %v5388_v13, 112 }
  0x94   : > { %v493_v38 = vcombine.low %v489_v33, %v490_v34  ;;  %v447_v39 = vcombine.low %v443_v35, %v444_v36  ;;  %v515_v40 = vpop.permute.xlu1 %514  ;;  %v513_v41 = vpop.permute.xlu0 %512  ;;  %v4532_v34 = vld [vmem:[%s8884_s1 + $0x7] ss:$8 sm:$0x3] }
  0x95   : > { %v517_v42 = vsel %vm516_vm3, %v513_v41, %v515_v40  ;;  %v518_v43 = vsel %vm516_vm3, %v515_v40, %v513_v41  ;;  %v1484_v35 = vld [vmem:[%s8886_s3 + $0x20] sm:$0xff]  ;;  %v1485_v36 = vld [vmem:[%s8886_s3 + $0x28] sm:$0xff]  ;;  %vm1167_vm3 = vcmp.lt.s32.totalorder %v5388_v13, 111 }
  0x96   : > { %v500_v46 = vrot.slane %v493_v38, %v5406_v24  ;;  %v454_v47 = vrot.slane %v447_v39, %v5406_v24  ;;  %v532_v48 = vmul.f32 %v525_v27, %v518_v43  ;;  %v533_v49 = vmul.f32 %v529_v28, %v517_v42 }
  0x97   : > { %v740_v43 = vrot.slane %v4532_v34, %v5296_v2  ;;  %1510 = vperm.xlu1 %5129, %v1484_v35   ;;  %1515 = vperm.xlu0 %5128, %v1485_v36  }
  0x98   : > { %v507_v51 = vrot.slane %v500_v46, %v5406_v24  ;;  %v461_v52 = vrot.slane %v454_v47, %v5406_v24  ;;  %v536_v53 = vcombine.low %v532_v48, %v533_v49  ;;  %v558_v54 = vpop.permute.xlu1 %557  ;;  %v556_v55 = vpop.permute.xlu0 %555  ;;  %v4533_v48 = vld [vmem:[%s8884_s1 + $0x10] ss:$8 sm:$0x3] }
  0x99   : > { %v560_v56 = vsel %vm559_vm4, %v556_v55, %v558_v54  ;;  %v561_v57 = vsel %vm559_vm4, %v558_v54, %v556_v55  ;;  %v1486_v49 = vld [vmem:[%s8886_s3 + $0x30] sm:$0xff]  ;;  %vm1210_vm4 = vcmp.lt.s32.totalorder %v5388_v13, 110 }
  0x9a   : > { %510 = vst.msk [vmem:[#allocation2 + $0x1] ss:$8 sm:$0x3] %vm5350_vm0, %v507_v51  ;;  %467 = vst.msk [vmem:[#allocation2] ss:$8 sm:$0x3] %vm5350_vm0, %v461_v52  ;;  %v543_v60 = vrot.slane %v536_v53, %v5406_v24  ;;  %v575_v61 = vmul.f32 %v568_v44, %v561_v57  ;;  %v576_v62 = vmul.f32 %v572_v45, %v560_v56 }
  0x9b   : > { %v744_v44 = vrot.slane %v4532_v34, %v5302_v3  ;;  %v783_v57 = vrot.slane %v4533_v48, %v5296_v2  ;;  %1520 = vperm.xlu1 %5129, %v1486_v49   ;;  %1525 = vperm.xlu0 %5128, %v1487_v50  }
  0x9c   : > { %v550_v0 = vrot.slane %v543_v60, %v5406_v24  ;;  %v579_v1 = vcombine.low %v575_v61, %v576_v62  ;;  %v601_v4 = vpop.permute.xlu1 %600  ;;  %v599_v5 = vpop.permute.xlu0 %598  ;;  %v4534_v62 = vld [vmem:[%s8884_s1 + $0x11] ss:$8 sm:$0x3] }
  0x9d   : > { %v603_v11 = vsel %vm602_vm5, %v599_v5, %v601_v4  ;;  %v604_v12 = vsel %vm602_vm5, %v601_v4, %v599_v5  ;;  %v826_v7 = vrot.slane %v4534_v62, %v5296_v2  ;;  %vm1253_vm5 = vcmp.lt.s32.totalorder %v5388_v13, 98 }
  0x9e   : > { %553 = vst.msk [vmem:[#allocation2 + $0x2] ss:$8 sm:$0x3] %vm5350_vm0, %v550_v0  ;;  %v586_v16 = vrot.slane %v579_v1, %v5406_v24  ;;  %v618_v17 = vmul.f32 %v611_v58, %v604_v12  ;;  %v619_v18 = vmul.f32 %v615_v63, %v603_v11  ;;  %v787_v58 = vrot.slane %v4533_v48, %v5302_v3 }
  0xa0   : > { %v593_v22 = vrot.slane %v586_v16, %v5406_v24  ;;  %v622_v23 = vcombine.low %v618_v17, %v619_v18  ;;  %v644_v25 = vpop.permute.xlu1 %643  ;;  %v642_v26 = vpop.permute.xlu0 %641 }
  0xa1   : > { %v646_v27 = vsel %vm645_vm6, %v642_v26, %v644_v25  ;;  %v647_v28 = vsel %vm645_vm6, %v644_v25, %v642_v26  ;;  %vm1296_vm6 = vcmp.lt.s32.totalorder %v5388_v13, 97 }
  0xa2   : > { %596 = vst.msk [vmem:[#allocation2 + $0x3] ss:$8 sm:$0x3] %vm5350_vm0, %v593_v22  ;;  %v629_v31 = vrot.slane %v622_v23, %v5406_v24  ;;  %v661_v32 = vmul.f32 %v654_v6, %v647_v28  ;;  %v662_v33 = vmul.f32 %v658_v14, %v646_v27  ;;  %v830_v14 = vrot.slane %v4534_v62, %v5302_v3  ;;  %v4536_v28 = vld [vmem:[%s8884_s1 + $0x13] ss:$8 sm:$0x3] }
  0xa3   : > { %v869_v22 = vrot.slane %v4535_v15, %v5296_v2  ;;  %v873_v27 = vrot.slane %v4535_v15, %v5302_v3  ;;  %v912_v35 = vrot.slane %v4536_v28, %v5296_v2 }
  0xa4   : > { %v636_v37 = vrot.slane %v629_v31, %v5406_v24  ;;  %v665_v38 = vcombine.low %v661_v32, %v662_v33  ;;  %v687_v39 = vpop.permute.xlu1 %686  ;;  %v685_v40 = vpop.permute.xlu0 %684 }
  0xa5   : > { %v689_v41 = vsel %vm688_vm7, %v685_v40, %v687_v39  ;;  %v690_v42 = vsel %vm688_vm7, %v687_v39, %v685_v40  ;;  %v916_v39 = vrot.slane %v4536_v28, %v5302_v3  ;;  %v4538_v40 = vld [vmem:[%s8884_s1 + $0x15] ss:$8 sm:$0x3] }
  0xa6   : > { %639 = vst.msk [vmem:[#allocation2 + $0x4] ss:$8 sm:$0x3] %vm5350_vm0, %v636_v37  ;;  %v672_v45 = vrot.slane %v665_v38, %v5406_v24  ;;  %v704_v46 = vmul.f32 %v697_v29, %v690_v42  ;;  %v705_v47 = vmul.f32 %v701_v30, %v689_v41 }
  0xa8   : > { %v679_v51 = vrot.slane %v672_v45, %v5406_v24  ;;  %v708_v52 = vcombine.low %v704_v46, %v705_v47  ;;  %v730_v53 = vpop.permute.xlu1 %729  ;;  %v728_v54 = vpop.permute.xlu0 %727  ;;  %v961_v47 = vrot.slane %v4538_v40, %v5296_v2 }
  0xa9   : > { %v732_v55 = vsel %vm731_vm8, %v728_v54, %v730_v53  ;;  %v733_v56 = vsel %vm731_vm8, %v730_v53, %v728_v54 }
  0xaa   : > { %682 = vst.msk [vmem:[#allocation2 + $0x5] ss:$8 sm:$0x3] %vm5350_vm0, %v679_v51  ;;  %v715_v59 = vrot.slane %v708_v52, %v5406_v24  ;;  %v747_v60 = vmul.f32 %v740_v43, %v733_v56  ;;  %v748_v61 = vmul.f32 %v744_v44, %v732_v55  ;;  %v965_v51 = vrot.slane %v4538_v40, %v5302_v3  ;;  %v4539_v52 = vld [vmem:[%s8884_s1 + $0x16] ss:$8 sm:$0x3] }
  0xac   : > { %v722_v63 = vrot.slane %v715_v59, %v5406_v24  ;;  %v751_v0 = vcombine.low %v747_v60, %v748_v61  ;;  %v773_v1 = vpop.permute.xlu1 %772  ;;  %v771_v4 = vpop.permute.xlu0 %770  ;;  %v1004_v59 = vrot.slane %v4539_v52, %v5296_v2 }
  0xad   : > { %v775_v5 = vsel %vm774_vm9, %v771_v4, %v773_v1  ;;  %v776_v6 = vsel %vm774_vm9, %v773_v1, %v771_v4 }
  0xae   : > { %725 = vst.msk [vmem:[#allocation2 + $0x6] ss:$8 sm:$0x3] %vm5350_vm0, %v722_v63  ;;  %v758_v8 = vrot.slane %v751_v0, %v5406_v24  ;;  %v790_v11 = vmul.f32 %v783_v57, %v776_v6  ;;  %v791_v12 = vmul.f32 %v787_v58, %v775_v5  ;;  %v1008_v63 = vrot.slane %v4539_v52, %v5302_v3  ;;  %v4540_v0 = vld [vmem:[%s8884_s1 + $0x17] ss:$8 sm:$0x3] }
  0xb0   : > { %v765_v16 = vrot.slane %v758_v8, %v5406_v24  ;;  %v794_v17 = vcombine.low %v790_v11, %v791_v12  ;;  %v816_v18 = vpop.permute.xlu1 %815  ;;  %v814_v19 = vpop.permute.xlu0 %813  ;;  %v1047_v11 = vrot.slane %v4540_v0, %v5296_v2 }
  0xb1   : > { %v818_v20 = vsel %vm817_vm10, %v814_v19, %v816_v18  ;;  %v819_v21 = vsel %vm817_vm10, %v816_v18, %v814_v19  ;;  %vm1339_vm10 = vcmp.lt.s32.totalorder %v5388_v13, 96 }
  0xb2   : > { %768 = vst.msk [vmem:[#allocation2 + $0x7] ss:$8 sm:$0x3] %vm5350_vm0, %v765_v16  ;;  %v801_v23 = vrot.slane %v794_v17, %v5406_v24  ;;  %v833_v25 = vmul.f32 %v826_v7, %v819_v21  ;;  %v834_v26 = vmul.f32 %v830_v14, %v818_v20  ;;  %v1051_v16 = vrot.slane %v4540_v0, %v5302_v3  ;;  %v4541_v17 = vld [vmem:[%s8884_s1 + $0x20] ss:$8 sm:$0x3] }
  0xb4   : > { %v808_v29 = vrot.slane %v801_v23, %v5406_v24  ;;  %v837_v30 = vcombine.low %v833_v25, %v834_v26  ;;  %v859_v31 = vpop.permute.xlu1 %858  ;;  %v857_v32 = vpop.permute.xlu0 %856  ;;  %v1090_v25 = vrot.slane %v4541_v17, %v5296_v2 }
  0xb5   : > { %v861_v33 = vsel %vm860_vm11, %v857_v32, %v859_v31  ;;  %v862_v34 = vsel %vm860_vm11, %v859_v31, %v857_v32  ;;  %vm1382_vm11 = vcmp.lt.s32.totalorder %v5388_v13, 95 }
  0xb6   : > { %811 = vst.msk [vmem:[#allocation2 + $0x10] ss:$8 sm:$0x3] %vm5350_vm0, %v808_v29  ;;  %v844_v36 = vrot.slane %v837_v30, %v5406_v24  ;;  %v876_v37 = vmul.f32 %v869_v22, %v862_v34  ;;  %v877_v38 = vmul.f32 %v873_v27, %v861_v33  ;;  %v1094_v29 = vrot.slane %v4541_v17, %v5302_v3  ;;  %v4542_v30 = vld [vmem:[%s8884_s1 + $0x21] ss:$8 sm:$0x3] }
  0xb8   : > { %v851_v41 = vrot.slane %v844_v36, %v5406_v24  ;;  %v880_v42 = vcombine.low %v876_v37, %v877_v38  ;;  %v902_v43 = vpop.permute.xlu1 %901  ;;  %v900_v44 = vpop.permute.xlu0 %899  ;;  %v1133_v37 = vrot.slane %v4542_v30, %v5296_v2 }
  0xb9   : > { %v904_v45 = vsel %vm903_vm12, %v900_v44, %v902_v43  ;;  %v905_v46 = vsel %vm903_vm12, %v902_v43, %v900_v44 }
  0xba   : > { %854 = vst.msk [vmem:[#allocation2 + $0x11] ss:$8 sm:$0x3] %vm5350_vm0, %v851_v41  ;;  %v887_v48 = vrot.slane %v880_v42, %v5406_v24  ;;  %v919_v49 = vmul.f32 %v912_v35, %v905_v46  ;;  %v920_v50 = vmul.f32 %v916_v39, %v904_v45  ;;  %v1137_v41 = vrot.slane %v4542_v30, %v5302_v3  ;;  %v4543_v42 = vld [vmem:[%s8884_s1 + $0x22] ss:$8 sm:$0x3] }
  0xbc   : > { %v894_v53 = vrot.slane %v887_v48, %v5406_v24  ;;  %v923_v54 = vcombine.low %v919_v49, %v920_v50  ;;  %v951_v55 = vpop.permute.xlu1 %950  ;;  %v949_v56 = vpop.permute.xlu0 %948  ;;  %v1176_v49 = vrot.slane %v4543_v42, %v5296_v2 }
  0xbd   : > { %v953_v57 = vsel %vm952_vm13, %v949_v56, %v951_v55  ;;  %v954_v58 = vsel %vm952_vm13, %v951_v55, %v949_v56 }
  0xbe   : > { %897 = vst.msk [vmem:[#allocation2 + $0x12] ss:$8 sm:$0x3] %vm5350_vm0, %v894_v53  ;;  %v930_v60 = vrot.slane %v923_v54, %v5406_v24  ;;  %v968_v61 = vmul.f32 %v961_v47, %v953_v57  ;;  %v969_v62 = vmul.f32 %v965_v51, %v954_v58  ;;  %v1180_v53 = vrot.slane %v4543_v42, %v5302_v3  ;;  %v4544_v54 = vld [vmem:[%s8884_s1 + $0x23] ss:$8 sm:$0x3] }
  0xc0   : > { %v937_v1 = vrot.slane %v930_v60, %v5406_v24  ;;  %v972_v4 = vcombine.low %v968_v61, %v969_v62  ;;  %v994_v5 = vpop.permute.xlu1 %993  ;;  %v992_v6 = vpop.permute.xlu0 %991  ;;  %v1219_v61 = vrot.slane %v4544_v54, %v5296_v2 }
  0xc1   : > { %v996_v7 = vsel %vm995_vm14, %v992_v6, %v994_v5  ;;  %v997_v8 = vsel %vm995_vm14, %v994_v5, %v992_v6  ;;  %vm1425_vm14 = vcmp.lt.s32.totalorder %v5388_v13, 94  ;;  %v4314_v13 = vld [vmem:[%s8893_s10 + $0x18] sm:$0xff] }
  0xc2   : > { %940 = vst.msk [vmem:[#allocation2 + $0x13] ss:$8 sm:$0x3] %vm5350_vm0, %v937_v1  ;;  %v979_v12 = vrot.slane %v972_v4, %v5406_v24  ;;  %v1011_v14 = vmul.f32 %v1004_v59, %v996_v7  ;;  %v1012_v15 = vmul.f32 %v1008_v63, %v997_v8  ;;  %v1223_v1 = vrot.slane %v4544_v54, %v5302_v3  ;;  %v4545_v4 = vld [vmem:[%s8884_s1 + $0x24] ss:$8 sm:$0x3] }
  0xc3   : > { %v1266_v17 = vrot.slane %v4545_v4, %v5302_v3 }
  0xc4   : > { %v986_v18 = vrot.slane %v979_v12, %v5406_v24  ;;  %v1015_v19 = vcombine.low %v1011_v14, %v1012_v15  ;;  %v1037_v20 = vpop.permute.xlu1 %1036  ;;  %v1035_v21 = vpop.permute.xlu0 %1034  ;;  %v1473_v14 = vld [vmem:[#allocation2 + $0x8] sm:$0xff] }
  0xc5   : > { %v1039_v22 = vsel %vm1038_vm15, %v1035_v21, %v1037_v20  ;;  %v1040_v23 = vsel %vm1038_vm15, %v1037_v20, %v1035_v21  ;;  %vm1528_vm15 = vcmask 261120  }
  0xc6   : > { %989 = vst.msk [vmem:[#allocation2 + $0x15] ss:$8 sm:$0x3] %vm5350_vm0, %v986_v18  ;;  %v1022_v26 = vrot.slane %v1015_v19, %v5406_v24  ;;  %v1054_v27 = vmul.f32 %v1047_v11, %v1039_v22  ;;  %v1055_v28 = vmul.f32 %v1051_v16, %v1040_v23  ;;  %v1262_v16 = vrot.slane %v4545_v4, %v5296_v2  ;;  %v1472_v23 = vld [vmem:[#allocation2] sm:$0xff] }
  0xc8   : > { %v1029_v31 = vrot.slane %v1022_v26, %v5406_v24  ;;  %v1058_v32 = vcombine.low %v1054_v27, %v1055_v28  ;;  %v1080_v33 = vpop.permute.xlu1 %1079  ;;  %v1078_v34 = vpop.permute.xlu0 %1077 }
  0xc9   : > { %v1082_v35 = vsel %vm1081_vm1, %v1078_v34, %v1080_v33  ;;  %v1083_v36 = vsel %vm1081_vm1, %v1080_v33, %v1078_v34 }
  0xca   : > { %1032 = vst.msk [vmem:[#allocation2 + $0x16] ss:$8 sm:$0x3] %vm5350_vm0, %v1029_v31  ;;  %v1065_v38 = vrot.slane %v1058_v32, %v5406_v24  ;;  %v1097_v39 = vmul.f32 %v1090_v25, %v1082_v35  ;;  %v1098_v40 = vmul.f32 %v1094_v29, %v1083_v36  ;;  %v4546_v25 = vld [vmem:[%s8884_s1 + $0x25] ss:$8 sm:$0x3] }
  0xcb   : > { %v1305_v33 = vrot.slane %v4546_v25, %v5296_v2 }
  0xcc   : > { %v1072_v43 = vrot.slane %v1065_v38, %v5406_v24  ;;  %v1101_v44 = vcombine.low %v1097_v39, %v1098_v40  ;;  %v1123_v45 = vpop.permute.xlu1 %1122  ;;  %v1121_v46 = vpop.permute.xlu0 %1120  ;;  %v4547_v38 = vld [vmem:[%s8884_s1 + $0x26] ss:$8 sm:$0x3] }
  0xcd   : > { %v1125_v47 = vsel %vm1124_vm2, %v1121_v46, %v1123_v45  ;;  %v1126_v48 = vsel %vm1124_vm2, %v1123_v45, %v1121_v46  ;;  %v1348_v45 = vrot.slane %v4547_v38, %v5296_v2 }
  0xce   : > { %1075 = vst.msk [vmem:[#allocation2 + $0x17] ss:$8 sm:$0x3] %vm5350_vm0, %v1072_v43  ;;  %v1108_v50 = vrot.slane %v1101_v44, %v5406_v24  ;;  %v1140_v51 = vmul.f32 %v1133_v37, %v1125_v47  ;;  %v1141_v52 = vmul.f32 %v1137_v41, %v1126_v48  ;;  %v1309_v37 = vrot.slane %v4546_v25, %v5302_v3 }
  0xd0   : > { %v1115_v55 = vrot.slane %v1108_v50, %v5406_v24  ;;  %v1144_v56 = vcombine.low %v1140_v51, %v1141_v52  ;;  %v1166_v57 = vpop.permute.xlu1 %1165  ;;  %v1164_v58 = vpop.permute.xlu0 %1163  ;;  %v4548_v50 = vld [vmem:[%s8884_s1 + $0x27] ss:$8 sm:$0x3] }
  0xd1   : > { %v1168_v59 = vsel %vm1167_vm3, %v1164_v58, %v1166_v57  ;;  %v1169_v60 = vsel %vm1167_vm3, %v1166_v57, %v1164_v58  ;;  %v1391_v57 = vrot.slane %v4548_v50, %v5296_v2 }
  0xd2   : > { %1118 = vst.msk [vmem:[#allocation2 + $0x20] ss:$8 sm:$0x3] %vm5350_vm0, %v1115_v55  ;;  %v1151_v62 = vrot.slane %v1144_v56, %v5406_v24  ;;  %v1183_v63 = vmul.f32 %v1176_v49, %v1168_v59  ;;  %v1184_v0 = vmul.f32 %v1180_v53, %v1169_v60  ;;  %v1352_v49 = vrot.slane %v4547_v38, %v5302_v3  ;;  %v1469_v38 = vld [vmem:[%s8885_s2 + $0x28] sm:$0xff] }
  0xd4   : > { %v1158_v5 = vrot.slane %v1151_v62, %v5406_v24  ;;  %v1187_v6 = vcombine.low %v1183_v63, %v1184_v0  ;;  %v1209_v7 = vpop.permute.xlu1 %1208  ;;  %v1207_v8 = vpop.permute.xlu0 %1206  ;;  %v4549_v62 = vld [vmem:[%s8884_s1 + $0x30] ss:$8 sm:$0x3] }
  0xd5   : > { %v1211_v11 = vsel %vm1210_vm4, %v1207_v8, %v1209_v7  ;;  %v1212_v12 = vsel %vm1210_vm4, %v1209_v7, %v1207_v8  ;;  %v1475_v15 = vld [vmem:[#allocation2 + $0x18] sm:$0xff]  ;;  %v1474_v18 = vld [vmem:[#allocation2 + $0x10] sm:$0xff]  ;;  %v1434_v7 = vrot.slane %v4549_v62, %v5296_v2 }
  0xd6   : > { %1161 = vst.msk [vmem:[#allocation2 + $0x21] ss:$8 sm:$0x3] %vm5350_vm0, %v1158_v5  ;;  %v1194_v19 = vrot.slane %v1187_v6, %v5406_v24  ;;  %v1226_v20 = vmul.f32 %v1219_v61, %v1211_v11  ;;  %v1227_v21 = vmul.f32 %v1223_v1, %v1212_v12  ;;  %v4593_v22 = vpack.c.bf16 %v1475_v15, %v1473_v14 }
  0xd7   : > { %v4595_v26 = vpack.c.bf16 %v1474_v18, %v1472_v23  ;;  %v1395_v61 = vrot.slane %v4548_v50, %v5302_v3  ;;  %v1438_v14 = vrot.slane %v4549_v62, %v5302_v3 }
  0xd8   : > { %v1201_v27 = vrot.slane %v1194_v19, %v5406_v24  ;;  %v1230_v28 = vcombine.low %v1226_v20, %v1227_v21  ;;  %v1252_v29 = vpop.permute.xlu1 %1251  ;;  %4594 = vmatprep.subr.bf16.mxu1 %v4593_v22  ;;  %v1250_v30 = vpop.permute.xlu0 %1249 }
  0xd9   : > { %v1254_v31 = vsel %vm1253_vm5, %v1250_v30, %v1252_v29  ;;  %v1255_v32 = vsel %vm1253_vm5, %v1252_v29, %v1250_v30  ;;  %4596 = vmatpush1.bf16.msra.mxu1 %v4595_v26 }
  0xda   : > { %1204 = vst.msk [vmem:[#allocation2 + $0x22] ss:$8 sm:$0x3] %vm5350_vm0, %v1201_v27  ;;  %v1237_v34 = vrot.slane %v1230_v28, %v5406_v24  ;;  %v1269_v35 = vmul.f32 %v1262_v16, %v1254_v31  ;;  %v1270_v36 = vmul.f32 %v1266_v17, %v1255_v32 }
  0xdc   : > { %v1244_v39 = vrot.slane %v1237_v34, %v5406_v24  ;;  %v1273_v40 = vcombine.low %v1269_v35, %v1270_v36  ;;  %v1295_v41 = vpop.permute.xlu1 %1294  ;;  %v1293_v42 = vpop.permute.xlu0 %1292  ;;  %v1464_v35 = vld [vmem:[%s8885_s2] sm:$0xff]  ;;  %v1467_v36 = vld [vmem:[%s8885_s2 + $0x18] sm:$0xff] }
  0xdd   : > { %v1297_v43 = vsel %vm1296_vm6, %v1293_v42, %v1295_v41  ;;  %v1298_v44 = vsel %vm1296_vm6, %v1295_v41, %v1293_v42 }
  0xde   : > { %1247 = vst.msk [vmem:[#allocation2 + $0x23] ss:$8 sm:$0x3] %vm5350_vm0, %v1244_v39  ;;  %v1280_v46 = vrot.slane %v1273_v40, %v5406_v24  ;;  %v1312_v47 = vmul.f32 %v1305_v33, %v1297_v43  ;;  %v1313_v48 = vmul.f32 %v1309_v37, %v1298_v44  ;;  %v1468_v37 = vld [vmem:[%s8885_s2 + $0x20] sm:$0xff]  ;;  %v1470_v39 = vld [vmem:[%s8885_s2 + $0x30] sm:$0xff]  ;;  %v1471_v40 = vld [vmem:[%s8885_s2 + $0x38] sm:$0xff] }
  0xe0   : > { %v1287_v51 = vrot.slane %v1280_v46, %v5406_v24  ;;  %v1316_v52 = vcombine.low %v1312_v47, %v1313_v48  ;;  %v1338_v53 = vpop.permute.xlu1 %1337  ;;  %v1336_v54 = vpop.permute.xlu0 %1335 }
  0xe1   : > { %v1340_v55 = vsel %vm1339_vm10, %v1336_v54, %v1338_v53  ;;  %v1341_v56 = vsel %vm1339_vm10, %v1338_v53, %v1336_v54 }
  0xe2   : > { %1290 = vst.msk [vmem:[#allocation2 + $0x24] ss:$8 sm:$0x3] %vm5350_vm0, %v1287_v51  ;;  %v1323_v58 = vrot.slane %v1316_v52, %v5406_v24  ;;  %v1355_v59 = vmul.f32 %v1348_v45, %v1340_v55  ;;  %v1356_v60 = vmul.f32 %v1352_v49, %v1341_v56 }
  0xe4   : > { %v1330_v63 = vrot.slane %v1323_v58, %v5406_v24  ;;  %v1359_v0 = vcombine.low %v1355_v59, %v1356_v60  ;;  %v1381_v1 = vpop.permute.xlu1 %1380  ;;  %v1379_v4 = vpop.permute.xlu0 %1378 }
  0xe5   : > { %v1383_v5 = vsel %vm1382_vm11, %v1379_v4, %v1381_v1  ;;  %v1384_v6 = vsel %vm1382_vm11, %v1381_v1, %v1379_v4 }
  0xe6   : > { %1333 = vst.msk [vmem:[#allocation2 + $0x25] ss:$8 sm:$0x3] %vm5350_vm0, %v1330_v63  ;;  %v1366_v8 = vrot.slane %v1359_v0, %v5406_v24  ;;  %v1398_v11 = vmul.f32 %v1391_v57, %v1383_v5  ;;  %v1399_v12 = vmul.f32 %v1395_v61, %v1384_v6 }
  0xe8   : > { %v1373_v15 = vrot.slane %v1366_v8, %v5406_v24  ;;  %v1402_v16 = vcombine.low %v1398_v11, %v1399_v12  ;;  %v1424_v17 = vpop.permute.xlu1 %1423  ;;  %v1422_v18 = vpop.permute.xlu0 %1421 }
  0xe9   : > { %v1426_v19 = vsel %vm1425_vm14, %v1422_v18, %v1424_v17  ;;  %v1427_v20 = vsel %vm1425_vm14, %v1424_v17, %v1422_v18 }
  0xea   : > { %1376 = vst.msk [vmem:[#allocation2 + $0x26] ss:$8 sm:$0x3] %vm5350_vm0, %v1373_v15  ;;  %v1409_v21 = vrot.slane %v1402_v16, %v5406_v24  ;;  %v1441_v22 = vmul.f32 %v1434_v7, %v1426_v19  ;;  %v1442_v23 = vmul.f32 %v1438_v14, %v1427_v20 }
  0xec   : > { %v1416_v25 = vrot.slane %v1409_v21, %v5406_v24  ;;  %v1445_v26 = vcombine.low %v1441_v22, %v1442_v23 }
  0xee   : > { %1419 = vst.msk [vmem:[#allocation2 + $0x27] ss:$8 sm:$0x3] %vm5350_vm0, %v1416_v25  ;;  %v1452_v27 = vrot.slane %v1445_v26, %v5406_v24 }
  0xf0   : > { %v1459_v28 = vrot.slane %v1452_v27, %v5406_v24  ;;  %v1466_v24 = vld [vmem:[%s8885_s2 + $0x10] sm:$0xff] }
  0xf2   : > { %1462 = vst.msk [vmem:[#allocation2 + $0x30] ss:$8 sm:$0x3] %vm5350_vm0, %v1459_v28 }
  0xf5   : > { %v1477_v29 = vld [vmem:[#allocation2 + $0x28] sm:$0xff]  ;;  %v1476_v31 = vld [vmem:[#allocation2 + $0x20] sm:$0xff] }
  0xf9   : > { %v1479_v30 = vld [vmem:[#allocation2 + $0x38] sm:$0xff]  ;;  %v1478_v32 = vld [vmem:[#allocation2 + $0x30] sm:$0xff]  ;;  %v1491_v41 = vpop.permute.xlu0 %1490  ;;  %v1496_v46 = vpop.permute.xlu1 %1495 }
  0xfa   : > { %v4597_v33 = vpack.c.bf16 %v1479_v30, %v1477_v29  ;;  %v4599_v34 = vpack.c.bf16 %v1478_v32, %v1476_v31 }
  0xfc   : > { %4598 = vmatprep.subr.bf16.mxu1 %v4597_v33 }
  0xfd   : > { %4600 = vmatpush1.bf16.msra.mxu1 %v4599_v34 }
 0x100   : > { %4550 = vmatmul.mubr.msk.f32.vlgmr.msra.gmra.mrb[0].mxu1 %vm1528_vm15, %v1464_v35 }
 0x101   : > { %1623 = vmatprep.mubr.f32.mxu1 %v8900_v10 }
 0x104   : > { %4551 = vmatmul.mubr.msk.f32.gmra.mrb[2].mxu1 %vm1528_vm15, %v1465_v9 }
 0x105   : > { %1629 = vmatprep.mubr.f32.mxu1 %v8900_v10 }
 0x108   : > { %4552 = vmatmul.mubr.msk.f32.gmra.mrb[4].mxu1 %vm1528_vm15, %v1466_v24 }
 0x109   : > { %1635 = vmatprep.mubr.f32.mxu1 %v8900_v10 }
 0x10c   : > { %4553 = vmatmul.mubr.msk.f32.gmra.mrb[6].mxu1 %vm1528_vm15, %v1467_v36 }
 0x10d   : > { %1641 = vmatprep.mubr.f32.mxu1 %v8900_v10 }
 0x110   : > { %4554 = vmatmul.mubr.msk.f32.gmra.mrb[8].mxu1 %vm1528_vm15, %v1468_v37 }
 0x111   : > { %1647 = vmatprep.mubr.f32.mxu1 %v8900_v10 }
 0x112   : > { %v1501_v7 = vpop.permute.xlu1 %1500  ;;  %v1506_v14 = vpop.permute.xlu0 %1505 }
 0x114   : > { %4555 = vmatmul.mubr.msk.f32.gmra.mrb[10].mxu1 %vm1528_vm15, %v1469_v38 }
 0x115   : > { %1653 = vmatprep.mubr.f32.mxu1 %v8900_v10 }
 0x116   : > { %v1511_v27 = vpop.permute.xlu1 %1510  ;;  %v1516_v29 = vpop.permute.xlu0 %1515 }
 0x118   : > { %4556 = vmatmul.mubr.msk.f32.gmra.mrb[12].mxu1 %vm1528_vm15, %v1470_v39 }
 0x119   : > { %1659 = vmatprep.mubr.f32.mxu1 %v8900_v10 }
 0x11a   : > { %v1521_v39 = vpop.permute.xlu1 %1520 }
 0x11c   : > { %4557 = vmatmul.mubr.msk.f32.gmra.mrb[14].mxu1 %vm1528_vm15, %v1471_v40 }
 0x1d3   : > { %v1619_v42 = vpop.f32.mrb[0].mxu1 }
 0x1d4   : > { %v1620_v43 = vadd.f32 %v1619_v42, %v1491_v41  ;;  %v1621_v44 = vpop.f32.mrb[1].mxu1 }
 0x1d5   : > { %v1622_v56 = vadd.f32 %v1621_v44, %v1491_v41  ;;  %v1526_v41 = vpop.permute.xlu0 %1525 }
 0x1d6   : > { %vm1666_vm0 = vcmp.ge.f32.partialorder %v1620_v43, 0.0  ;;  %v1682_v45 = vmul.f32 0.01, %v1620_v43 }
 0x1d7   : > { %v1625_v47 = vpop.f32.mrb[2].mxu1  ;;  %v1683_v59 = vmul.f32 0.01, %v1622_v56  ;;  %vm1667_vm5 = vcmp.ge.f32.partialorder %v1622_v56, 0.0 }
 0x1d8   : > { %v5744_v48 = vsel %vm1666_vm0, %v1620_v43, %v1682_v45  ;;  %v1626_v49 = vadd.f32 %v1625_v47, %v1496_v46  ;;  %v1627_v50 = vpop.f32.mrb[3].mxu1 }
 0x1d9   : > { %8987 = vst [vmem:[#allocation4_spill] sm:$0xff] %v5744_v48  ;;  %1714 = vrot.lane.b32.xlu1 %v5744_v48, %s8982_s26  ;;  %v1628_v60 = vadd.f32 %v1627_v50, %v1496_v46  ;;  %v5764_v63 = vsel %vm1667_vm5, %v1622_v56, %v1683_v59 }
 0x1da   : > { %vm1668_vm4 = vcmp.ge.f32.partialorder %v1626_v49, 0.0  ;;  %v1684_v51 = vmul.f32 0.01, %v1626_v49 }
 0x1db   : > { %v1631_v52 = vpop.f32.mrb[4].mxu1  ;;  %v1685_v0 = vmul.f32 0.01, %v1628_v60  ;;  %vm1669_vm6 = vcmp.ge.f32.partialorder %v1628_v60, 0.0 }
 0x1dc   : > { %v5748_v53 = vsel %vm1668_vm4, %v1626_v49, %v1684_v51  ;;  %v1633_v54 = vpop.f32.mrb[5].mxu1  ;;  %v1632_v11 = vadd.f32 %v1631_v52, %v1501_v7 }
 0x1dd   : > { %1716 = vrot.lane.b32.xlu0 %v5748_v53, %s8982_s26  ;;  %1790 = vrot.lane.b32.xlu1 %v5744_v48, %s8980_s27  ;;  %v5774_v5 = vsel %vm1669_vm6, %v1628_v60, %v1685_v0  ;;  %v1634_v20 = vadd.f32 %v1633_v54, %v1501_v7 }
 0x1de   : > { %v1686_v15 = vmul.f32 0.01, %v1632_v11  ;;  %vm1670_vm10 = vcmp.ge.f32.partialorder %v1632_v11, 0.0 }
 0x1df   : > { %v1637_v55 = vpop.f32.mrb[6].mxu1  ;;  %v1687_v21 = vmul.f32 0.01, %v1634_v20  ;;  %vm1671_vm14 = vcmp.ge.f32.partialorder %v1634_v20, 0.0 }
 0x1e0   : > { %v1639_v57 = vpop.f32.mrb[7].mxu1  ;;  %v1638_v16 = vadd.f32 %v1637_v55, %v1506_v14  ;;  %v5794_v17 = vsel %vm1670_vm10, %v1632_v11, %v1686_v15 }
 0x1e1   : > { %1792 = vrot.lane.b32.xlu0 %v5748_v53, %s8980_s27  ;;  %1866 = vrot.lane.b32.xlu1 %v5744_v48, %s8971_s30  ;;  %v1640_v22 = vadd.f32 %v1639_v57, %v1506_v14  ;;  %v5814_v23 = vsel %vm1671_vm14, %v1634_v20, %v1687_v21 }
 0x1e2   : > { %v1688_v18 = vmul.f32 0.01, %v1638_v16  ;;  %vm1672_vm11 = vcmp.ge.f32.partialorder %v1638_v16, 0.0 }
 0x1e3   : > { %v1643_v58 = vpop.f32.mrb[8].mxu1  ;;  %v1689_v25 = vmul.f32 0.01, %v1640_v22  ;;  %vm1673_vm0 = vcmp.ge.f32.partialorder %v1640_v22, 0.0 }
 0x1e4   : > { %v5758_v61 = vpop.f32.mrb[9].mxu1  ;;  %v5800_v19 = vsel %vm1672_vm11, %v1638_v16, %v1688_v18  ;;  %v1644_v28 = vadd.f32 %v1643_v58, %v1511_v27 }
 0x1e5   : > { %1868 = vrot.lane.b32.xlu0 %v5748_v53, %s8971_s30  ;;  %1942 = vrot.lane.b32.xlu1 %v5744_v48, %s8969_s15  ;;  %v5820_v26 = vsel %vm1673_vm0, %v1640_v22, %v1689_v25  ;;  %v1646_v35 = vadd.f32 %v5758_v61, %v1511_v27 }
 0x1e6   : > { %v1690_v30 = vmul.f32 0.01, %v1644_v28  ;;  %vm1674_vm4 = vcmp.ge.f32.partialorder %v1644_v28, 0.0 }
 0x1e7   : > { %v1649_v62 = vpop.f32.mrb[10].mxu1  ;;  %v1691_v9 = vmul.f32 0.01, %v1646_v35  ;;  %vm1675_vm6 = vcmp.ge.f32.partialorder %v1646_v35, 0.0 }
 0x1e8   : > { %v5766_v1 = vpop.f32.mrb[11].mxu1  ;;  %v1650_v31 = vadd.f32 %v1649_v62, %v1516_v29  ;;  %v5834_v32 = vsel %vm1674_vm4, %v1644_v28, %v1690_v30  ;;  %v4558_v62 = vld [vmem:[%s8884_s1 + $0x6] ss:$8 sm:$0x3] }
 0x1e9   : > { %1944 = vrot.lane.b32.xlu0 %v5748_v53, %s8969_s15  ;;  %1730 = vrot.lane.b32.xlu1 %v5764_v63, %s8982_s26  ;;  %v1652_v24 = vadd.f32 %v5766_v1, %v1516_v29  ;;  %v5856_v36 = vsel %vm1675_vm6, %v1646_v35, %v1691_v9 }
 0x1ea   : > { %v1692_v33 = vmul.f32 0.01, %v1650_v31  ;;  %vm1676_vm5 = vcmp.ge.f32.partialorder %v1650_v31, 0.0 }
 0x1eb   : > { %v5772_v4 = vpop.f32.mrb[12].mxu1  ;;  %v1693_v37 = vmul.f32 0.01, %v1652_v24  ;;  %vm1677_vm10 = vcmp.ge.f32.partialorder %v1652_v24, 0.0 }
 0x1ec   : > { %v5776_v6 = vpop.f32.mrb[13].mxu1  ;;  %v5840_v34 = vsel %vm1676_vm5, %v1650_v31, %v1692_v33  ;;  %v1656_v40 = vadd.f32 %v5772_v4, %v1521_v39  ;;  %v5940_v4 = vrot.slane %v4558_v62, %v5296_v2  ;;  %vm2438_vm5 = vcmask 523264  }
 0x1ed   : > { %1732 = vrot.lane.b32.xlu0 %v5774_v5, %s8982_s26  ;;  %1806 = vrot.lane.b32.xlu1 %v5764_v63, %s8980_s27  ;;  %v5862_v38 = vsel %vm1677_vm10, %v1652_v24, %v1693_v37  ;;  %v1658_v46 = vadd.f32 %v5776_v6, %v1521_v39  ;;  %v5943_v6 = vrot.slane %v4558_v62, %v5302_v3  ;;  %v2351_v39 = vld [vmem:[%s8887_s4 + $0x8] sm:$0xff] }
 0x1ee   : > { %v1694_v42 = vmul.f32 0.01, %v1656_v40  ;;  %vm1678_vm11 = vcmp.ge.f32.partialorder %v1656_v40, 0.0  ;;  %8990 = vst [vmem:[#allocation7_spill] sm:$0xff] %v5940_v4  ;;  %2527 = vmatprep.mubr.f32.mxu1 %v2351_v39 }
 0x1ef   : > { %v5782_v8 = vpop.f32.mrb[14].mxu1  ;;  %v1695_v49 = vmul.f32 0.01, %v1658_v46  ;;  %vm1679_vm0 = vcmp.ge.f32.partialorder %v1658_v46, 0.0 }
 0x1f0   : > { %v5784_v12 = vpop.f32.mrb[15].mxu1  ;;  %v1662_v43 = vadd.f32 %v5782_v8, %v1526_v41  ;;  %v5878_v44 = vsel %vm1678_vm11, %v1656_v40, %v1694_v42 }
 0x1f1   : > { %1808 = vrot.lane.b32.xlu0 %v5774_v5, %s8980_s27  ;;  %1882 = vrot.lane.b32.xlu1 %v5764_v63, %s8971_s30  ;;  %v1664_v50 = vadd.f32 %v5784_v12, %v1526_v41  ;;  %v5896_v51 = vsel %vm1679_vm0, %v1658_v46, %v1695_v49 }
 0x1f2   : > { %v1696_v45 = vmul.f32 0.01, %v1662_v43  ;;  %vm1680_vm14 = vcmp.ge.f32.partialorder %v1662_v43, 0.0 }
 0x1f3   : > { %v1697_v52 = vmul.f32 0.01, %v1664_v50  ;;  %vm1681_vm4 = vcmp.ge.f32.partialorder %v1664_v50, 0.0 }
 0x1f4   : > { %v5885_v47 = vsel %vm1680_vm14, %v1662_v43, %v1696_v45 }
 0x1f5   : > { %1884 = vrot.lane.b32.xlu0 %v5774_v5, %s8971_s30  ;;  %1958 = vrot.lane.b32.xlu1 %v5764_v63, %s8969_s15  ;;  %v5902_v54 = vsel %vm1681_vm4, %v1664_v50, %v1697_v52 }
 0x1f6   : > { %8988 = vst [vmem:[#allocation5_spill] sm:$0xff] %v5902_v54 }
 0x1f9   : > { %1960 = vrot.lane.b32.xlu0 %v5774_v5, %s8969_s15  ;;  %1718 = vrot.lane.b32.xlu1 %v5794_v17, %s8982_s26 }
 0x1fd   : > { %1794 = vrot.lane.b32.xlu1 %v5794_v17, %s8980_s27  ;;  %1720 = vrot.lane.b32.xlu0 %v5800_v19, %s8982_s26 }
 0x201   : > { %1870 = vrot.lane.b32.xlu1 %v5794_v17, %s8971_s30  ;;  %1796 = vrot.lane.b32.xlu0 %v5800_v19, %s8980_s27 }
 0x205   : > { %1946 = vrot.lane.b32.xlu1 %v5794_v17, %s8969_s15  ;;  %1872 = vrot.lane.b32.xlu0 %v5800_v19, %s8971_s30 }
 0x209   : > { %1734 = vrot.lane.b32.xlu1 %v5814_v23, %s8982_s26  ;;  %1948 = vrot.lane.b32.xlu0 %v5800_v19, %s8969_s15 }
 0x20d   : > { %1810 = vrot.lane.b32.xlu1 %v5814_v23, %s8980_s27  ;;  %1736 = vrot.lane.b32.xlu0 %v5820_v26, %s8982_s26 }
 0x211   : > { %1886 = vrot.lane.b32.xlu1 %v5814_v23, %s8971_s30  ;;  %1812 = vrot.lane.b32.xlu0 %v5820_v26, %s8980_s27 }
 0x215   : > { %1962 = vrot.lane.b32.xlu1 %v5814_v23, %s8969_s15  ;;  %1888 = vrot.lane.b32.xlu0 %v5820_v26, %s8971_s30 }
 0x219   : > { %1722 = vrot.lane.b32.xlu1 %v5834_v32, %s8982_s26  ;;  %1964 = vrot.lane.b32.xlu0 %v5820_v26, %s8969_s15 }
 0x21d   : > { %1798 = vrot.lane.b32.xlu1 %v5834_v32, %s8980_s27  ;;  %1724 = vrot.lane.b32.xlu0 %v5840_v34, %s8982_s26 }
 0x221   : > { %1874 = vrot.lane.b32.xlu1 %v5834_v32, %s8971_s30  ;;  %1800 = vrot.lane.b32.xlu0 %v5840_v34, %s8980_s27 }
 0x225   : > { %1950 = vrot.lane.b32.xlu1 %v5834_v32, %s8969_s15  ;;  %1876 = vrot.lane.b32.xlu0 %v5840_v34, %s8971_s30 }
 0x229   : > { %1738 = vrot.lane.b32.xlu1 %v5856_v36, %s8982_s26  ;;  %1952 = vrot.lane.b32.xlu0 %v5840_v34, %s8969_s15 }
 0x22d   : > { %1814 = vrot.lane.b32.xlu1 %v5856_v36, %s8980_s27  ;;  %1740 = vrot.lane.b32.xlu0 %v5862_v38, %s8982_s26 }
 0x231   : > { %1890 = vrot.lane.b32.xlu1 %v5856_v36, %s8971_s30  ;;  %1816 = vrot.lane.b32.xlu0 %v5862_v38, %s8980_s27 }
 0x235   : > { %1966 = vrot.lane.b32.xlu1 %v5856_v36, %s8969_s15  ;;  %1892 = vrot.lane.b32.xlu0 %v5862_v38, %s8971_s30 }
 0x239   : > { %1726 = vrot.lane.b32.xlu1 %v5878_v44, %s8982_s26  ;;  %1968 = vrot.lane.b32.xlu0 %v5862_v38, %s8969_s15 }
 0x23d   : > { %1802 = vrot.lane.b32.xlu1 %v5878_v44, %s8980_s27  ;;  %1728 = vrot.lane.b32.xlu0 %v5885_v47, %s8982_s26 }
 0x241   : > { %1878 = vrot.lane.b32.xlu1 %v5878_v44, %s8971_s30  ;;  %1804 = vrot.lane.b32.xlu0 %v5885_v47, %s8980_s27 }
 0x245   : > { %1742 = vrot.lane.b32.xlu1 %v5896_v51, %s8982_s26  ;;  %1880 = vrot.lane.b32.xlu0 %v5885_v47, %s8971_s30 }
 0x249   : > { %1954 = vrot.lane.b32.xlu1 %v5878_v44, %s8969_s15  ;;  %1744 = vrot.lane.b32.xlu0 %v5902_v54, %s8982_s26 }
 0x24b   : > { %v1715_v55 = vpop.permute.xlu1 %1714 }
 0x24d   : > { %1818 = vrot.lane.b32.xlu1 %v5896_v51, %s8980_s27  ;;  %1956 = vrot.lane.b32.xlu0 %v5885_v47, %s8969_s15 }
 0x24f   : > { %v5912_v56 = vpop.permute.xlu1 %1790  ;;  %v1717_v57 = vpop.permute.xlu0 %1716 }
 0x251   : > { %1894 = vrot.lane.b32.xlu1 %v5896_v51, %s8971_s30  ;;  %2048 = vrot.lane.b32.xlu0 %v5748_v53, %s8921_s16 }
 0x253   : > { %v5918_v58 = vpop.permute.xlu1 %1866  ;;  %v5920_v59 = vpop.permute.xlu0 %1792 }
 0x255   : > { %1970 = vrot.lane.b32.xlu1 %v5896_v51, %s8969_s15  ;;  %2064 = vrot.lane.b32.xlu0 %v5774_v5, %s8921_s16 }
 0x257   : > { %v5926_v60 = vpop.permute.xlu1 %1942  ;;  %v5928_v61 = vpop.permute.xlu0 %1868 }
 0x258   : > { %8989 = vst [vmem:[#allocation6_spill] sm:$0xff] %v5926_v60 }
 0x259   : > { %2046 = vrot.lane.b32.xlu1 %v5744_v48, %s8921_s16  ;;  %1820 = vrot.lane.b32.xlu0 %v5902_v54, %s8980_s27 }
 0x25b   : > { %v1731_v0 = vpop.permute.xlu1 %1730  ;;  %v5937_v1 = vpop.permute.xlu0 %1944 }
 0x25c   : > { %v1746_v7 = vsel %vm688_vm7, %v1715_v55, %v1731_v0  ;;  %v1754_v8 = vsel %vm688_vm7, %v1731_v0, %v1715_v55 }
 0x25d   : > { %2062 = vrot.lane.b32.xlu1 %v5764_v63, %s8921_s16  ;;  %2052 = vrot.lane.b32.xlu0 %v5800_v19, %s8921_s16  ;;  %v1774_v16 = vmul.f32 %v5940_v4, %v1754_v8  ;;  %v1775_v18 = vmul.f32 %v5943_v6, %v1746_v7 }
 0x25f   : > { %v5953_v11 = vpop.permute.xlu1 %1806  ;;  %v1733_v12 = vpop.permute.xlu0 %1732 }
 0x260   : > { %v1747_v14 = vsel %vm688_vm7, %v1717_v57, %v1733_v12  ;;  %v1755_v15 = vsel %vm688_vm7, %v1733_v12, %v1717_v57 }
 0x261   : > { %v1776_v20 = vmul.f32 %v5940_v4, %v1755_v15  ;;  %v1777_v21 = vmul.f32 %v5943_v6, %v1747_v14  ;;  %2050 = vrot.lane.b32.xlu1 %v5794_v17, %s8921_s16  ;;  %2068 = vrot.lane.b32.xlu0 %v5820_v26, %s8921_s16 }
 0x263   : > { %v4603_v22 = vpack.c.bf16 %v1776_v20, %v1774_v16  ;;  %v5967_v25 = vpop.permute.xlu1 %1882  ;;  %v5969_v27 = vpop.permute.xlu0 %1808  ;;  %v4601_v28 = vpack.c.bf16 %v1777_v21, %v1775_v18 }
 0x265   : > { %2066 = vrot.lane.b32.xlu1 %v5814_v23, %s8921_s16  ;;  %2056 = vrot.lane.b32.xlu0 %v5840_v34, %s8921_s16 }
 0x266   : > { %4602 = vmatprep.subr.bf16.mxu1 %v4601_v28 }
 0x267   : > { %4604 = vmatpush1.bf16.msra.mxu1 %v4603_v22  ;;  %v5975_v29 = vpop.permute.xlu1 %1958  ;;  %v5977_v30 = vpop.permute.xlu0 %1884 }
 0x268   : > { %8991 = vst [vmem:[#allocation8_spill] sm:$0xff] %v5975_v29 }
 0x269   : > { %2054 = vrot.lane.b32.xlu1 %v5834_v32, %s8921_s16  ;;  %1896 = vrot.lane.b32.xlu0 %v5902_v54, %s8971_s30 }
 0x26b   : > { %v1719_v31 = vpop.permute.xlu1 %1718  ;;  %v5983_v33 = vpop.permute.xlu0 %1960 }
 0x26d   : > { %2070 = vrot.lane.b32.xlu1 %v5856_v36, %s8921_s16  ;;  %2072 = vrot.lane.b32.xlu0 %v5862_v38, %s8921_s16 }
 0x26f   : > { %v5989_v35 = vpop.permute.xlu1 %1794  ;;  %v1721_v9 = vpop.permute.xlu0 %1720 }
 0x271   : > { %2058 = vrot.lane.b32.xlu1 %v5878_v44, %s8921_s16  ;;  %2060 = vrot.lane.b32.xlu0 %v5885_v47, %s8921_s16 }
 0x273   : > { %v5995_v24 = vpop.permute.xlu1 %1870  ;;  %v5997_v37 = vpop.permute.xlu0 %1796 }
 0x275   : > { %2074 = vrot.lane.b32.xlu1 %v5896_v51, %s8921_s16  ;;  %2124 = vrot.lane.b32.xlu0 %v5748_v53, %s8919_s23 }
 0x277   : > { %v6006_v40 = vpop.permute.xlu1 %1946  ;;  %v6008_v41 = vpop.permute.xlu0 %1872 }
 0x278   : > { %8992 = vst [vmem:[#allocation9_spill] sm:$0xff] %v6006_v40 }
 0x279   : > { %2122 = vrot.lane.b32.xlu1 %v5744_v48, %s8919_s23  ;;  %1972 = vrot.lane.b32.xlu0 %v5902_v54, %s8969_s15 }
 0x27b   : > { %v1735_v42 = vpop.permute.xlu1 %1734  ;;  %v6014_v43 = vpop.permute.xlu0 %1948 }
 0x27c   : > { %8993 = vst [vmem:[#allocation10_spill] sm:$0xff] %v6014_v43  ;;  %v1748_v45 = vsel %vm688_vm7, %v1719_v31, %v1735_v42  ;;  %v1756_v46 = vsel %vm688_vm7, %v1735_v42, %v1719_v31 }
 0x27d   : > { %2138 = vrot.lane.b32.xlu1 %v5764_v63, %s8919_s23  ;;  %2140 = vrot.lane.b32.xlu0 %v5774_v5, %s8919_s23  ;;  %v1778_v57 = vmul.f32 %v5940_v4, %v1756_v46  ;;  %v1779_v62 = vmul.f32 %v5943_v6, %v1748_v45 }
 0x27f   : > { %v6024_v49 = vpop.permute.xlu1 %1810  ;;  %v1737_v50 = vpop.permute.xlu0 %1736 }
 0x280   : > { %v1749_v52 = vsel %vm688_vm7, %v1721_v9, %v1737_v50  ;;  %v1757_v55 = vsel %vm688_vm7, %v1737_v50, %v1721_v9 }
 0x281   : > { %v1780_v0 = vmul.f32 %v5940_v4, %v1757_v55  ;;  %v1781_v7 = vmul.f32 %v5943_v6, %v1749_v52  ;;  %2126 = vrot.lane.b32.xlu1 %v5794_v17, %s8919_s23  ;;  %2128 = vrot.lane.b32.xlu0 %v5800_v19, %s8919_s23 }
 0x283   : > { %v4607_v8 = vpack.c.bf16 %v1780_v0, %v1778_v57  ;;  %v6038_v12 = vpop.permute.xlu1 %1886  ;;  %v6040_v14 = vpop.permute.xlu0 %1812  ;;  %v4605_v15 = vpack.c.bf16 %v1781_v7, %v1779_v62 }
 0x285   : > { %2142 = vrot.lane.b32.xlu1 %v5814_v23, %s8919_s23  ;;  %2144 = vrot.lane.b32.xlu0 %v5820_v26, %s8919_s23 }
 0x286   : > { %4606 = vmatprep.subr.bf16.mxu1 %v4605_v15 }
 0x287   : > { %4608 = vmatpush1.bf16.msra.mxu1 %v4607_v8  ;;  %v6046_v16 = vpop.permute.xlu1 %1962  ;;  %v6048_v18 = vpop.permute.xlu0 %1888 }
 0x288   : > { %8994 = vst [vmem:[#allocation11_spill] sm:$0xff] %v6046_v16  ;;  %v1822_v16 = vsel %vm731_vm8, %v5912_v56, %v5953_v11 }
 0x289   : > { %2130 = vrot.lane.b32.xlu1 %v5834_v32, %s8919_s23  ;;  %2132 = vrot.lane.b32.xlu0 %v5840_v34, %s8919_s23 }
 0x28b   : > { %v1723_v20 = vpop.permute.xlu1 %1722  ;;  %v6054_v21 = vpop.permute.xlu0 %1964 }
 0x28c   : > { %8995 = vst [vmem:[#allocation12_spill] sm:$0xff] %v6054_v21  ;;  %v1831_v21 = vsel %vm731_vm8, %v5969_v27, %v5920_v59 }
 0x28d   : > { %2146 = vrot.lane.b32.xlu1 %v5856_v36, %s8919_s23  ;;  %2148 = vrot.lane.b32.xlu0 %v5862_v38, %s8919_s23 }
 0x28f   : > { %v6060_v22 = vpop.permute.xlu1 %1798  ;;  %v1725_v28 = vpop.permute.xlu0 %1724 }
 0x291   : > { %2134 = vrot.lane.b32.xlu1 %v5878_v44, %s8919_s23  ;;  %2136 = vrot.lane.b32.xlu0 %v5885_v47, %s8919_s23 }
 0x293   : > { %v6066_v31 = vpop.permute.xlu1 %1874  ;;  %v6068_v9 = vpop.permute.xlu0 %1800 }
 0x295   : > { %2150 = vrot.lane.b32.xlu1 %v5896_v51, %s8919_s23  ;;  %2200 = vrot.lane.b32.xlu0 %v5748_v53, %s8996_s13 }
 0x297   : > { %v6074_v39 = vpop.permute.xlu1 %1950  ;;  %v6076_v42 = vpop.permute.xlu0 %1876 }
 0x298   : > { %8997 = vst [vmem:[#allocation13_spill] sm:$0xff] %v6074_v39 }
 0x299   : > { %2198 = vrot.lane.b32.xlu1 %v5744_v48, %s8996_s13  ;;  %2076 = vrot.lane.b32.xlu0 %v5902_v54, %s8921_s16  ;;  %s9106_s16 = smov 17  }
 0x29b   : > { %v1739_v45 = vpop.permute.xlu1 %1738  ;;  %v6082_v46 = vpop.permute.xlu0 %1952 }
 0x29c   : > { %8998 = vst [vmem:[#allocation14_spill] sm:$0xff] %v6082_v46  ;;  %v1750_v50 = vsel %vm688_vm7, %v1723_v20, %v1739_v45  ;;  %v1758_v52 = vsel %vm688_vm7, %v1739_v45, %v1723_v20 }
 0x29d   : > { %2214 = vrot.lane.b32.xlu1 %v5764_v63, %s8996_s13  ;;  %2216 = vrot.lane.b32.xlu0 %v5774_v5, %s8996_s13  ;;  %v1782_v7 = vmul.f32 %v5940_v4, %v1758_v52  ;;  %v1783_v8 = vmul.f32 %v5943_v6, %v1750_v50 }
 0x29f   : > { %v6092_v55 = vpop.permute.xlu1 %1814  ;;  %v1741_v57 = vpop.permute.xlu0 %1740 }
 0x2a0   : > { %v1751_v62 = vsel %vm688_vm7, %v1725_v28, %v1741_v57  ;;  %v1759_v0 = vsel %vm688_vm7, %v1741_v57, %v1725_v28 }
 0x2a1   : > { %v1784_v15 = vmul.f32 %v5940_v4, %v1759_v0  ;;  %v1785_v20 = vmul.f32 %v5943_v6, %v1751_v62  ;;  %2202 = vrot.lane.b32.xlu1 %v5794_v17, %s8996_s13  ;;  %2204 = vrot.lane.b32.xlu0 %v5800_v19, %s8996_s13 }
 0x2a3   : > { %v4611_v45 = vpack.c.bf16 %v1784_v15, %v1782_v7  ;;  %v6106_v10 = vpop.permute.xlu1 %1890  ;;  %v6108_v39 = vpop.permute.xlu0 %1816  ;;  %v4609_v28 = vpack.c.bf16 %v1785_v20, %v1783_v8  ;;  %v4559_v20 = vld [vmem:[%s8884_s1 + $0x7] ss:$8 sm:$0x3] }
 0x2a4   : > { %v6154_v46 = vrot.slane %v4559_v20, %v5302_v3 }
 0x2a5   : > { %2218 = vrot.lane.b32.xlu1 %v5814_v23, %s8996_s13  ;;  %2220 = vrot.lane.b32.xlu0 %v5820_v26, %s8996_s13 }
 0x2a6   : > { %4610 = vmatprep.subr.bf16.mxu1 %v4609_v28 }
 0x2a7   : > { %4612 = vmatpush1.bf16.msra.mxu1 %v4611_v45  ;;  %v6114_v50 = vpop.permute.xlu1 %1966  ;;  %v6116_v52 = vpop.permute.xlu0 %1892 }
 0x2a8   : > { %8999 = vst [vmem:[#allocation15_spill] sm:$0xff] %v6114_v50  ;;  %v1823_v50 = vsel %vm731_vm8, %v5920_v59, %v5969_v27  ;;  %v6184_v59 = vrot.slane %v4559_v20, %v5296_v2  ;;  %v1825_v27 = vsel %vm731_vm8, %v5997_v37, %v6040_v14 }
 0x2a9   : > { %2206 = vrot.lane.b32.xlu1 %v5834_v32, %s8996_s13  ;;  %2152 = vrot.lane.b32.xlu0 %v5902_v54, %s8919_s23 }
 0x2ab   : > { %v1727_v57 = vpop.permute.xlu1 %1726  ;;  %v6122_v62 = vpop.permute.xlu0 %1968 }
 0x2ac   : > { %9000 = vst [vmem:[#allocation16_spill] sm:$0xff] %v6122_v62 }
 0x2ad   : > { %2222 = vrot.lane.b32.xlu1 %v5856_v36, %s8996_s13  ;;  %2208 = vrot.lane.b32.xlu0 %v5840_v34, %s8996_s13 }
 0x2af   : > { %v6128_v0 = vpop.permute.xlu1 %1802  ;;  %v1729_v7 = vpop.permute.xlu0 %1728 }
 0x2b1   : > { %2210 = vrot.lane.b32.xlu1 %v5878_v44, %s8996_s13  ;;  %2224 = vrot.lane.b32.xlu0 %v5862_v38, %s8996_s13 }
 0x2b3   : > { %v6134_v8 = vpop.permute.xlu1 %1878  ;;  %v6136_v15 = vpop.permute.xlu0 %1804 }
 0x2b5   : > { %2226 = vrot.lane.b32.xlu1 %v5896_v51, %s8996_s13  ;;  %2212 = vrot.lane.b32.xlu0 %v5885_v47, %s8996_s13 }
 0x2b7   : > { %v1743_v45 = vpop.permute.xlu1 %1742  ;;  %v6145_v28 = vpop.permute.xlu0 %1880 }
 0x2b8   : > { %9001 = vst [vmem:[#allocation17_spill] sm:$0xff] %v6145_v28  ;;  %v1752_v62 = vsel %vm688_vm7, %v1727_v57, %v1743_v45  ;;  %v1760_v40 = vsel %vm688_vm7, %v1743_v45, %v1727_v57  ;;  %v1853_v28 = vmul.f32 %v6154_v46, %v1823_v50 }
 0x2b9   : > { %2274 = vrot.lane.b32.xlu1 %v5744_v48, %s9002_s14  ;;  %2228 = vrot.lane.b32.xlu0 %v5902_v54, %s8996_s13  ;;  %v1786_v60 = vmul.f32 %v5940_v4, %v1760_v40  ;;  %v1787_v29 = vmul.f32 %v5943_v6, %v1752_v62  ;;  %v1851_v40 = vmul.f32 %v6154_v46, %v1822_v16 }
 0x2bb   : > { %v6166_v43 = vpop.permute.xlu1 %1954  ;;  %v1745_v48 = vpop.permute.xlu0 %1744 }
 0x2bc   : > { %9003 = vst [vmem:[#allocation18_spill] sm:$0xff] %v6166_v43  ;;  %v1753_v57 = vsel %vm688_vm7, %v1729_v7, %v1745_v48  ;;  %v1761_v45 = vsel %vm688_vm7, %v1745_v48, %v1729_v7  ;;  %v1830_v48 = vsel %vm731_vm8, %v5953_v11, %v5912_v56  ;;  %v1857_v56 = vmul.f32 %v6154_v46, %v1825_v27 }
 0x2bd   : > { %v1788_v43 = vmul.f32 %v5940_v4, %v1761_v45  ;;  %v1789_v54 = vmul.f32 %v5943_v6, %v1753_v57  ;;  %2290 = vrot.lane.b32.xlu1 %v5764_v63, %s9002_s14  ;;  %2276 = vrot.lane.b32.xlu0 %v5748_v53, %s9002_s14  ;;  %v1852_v57 = vmul.f32 %v6184_v59, %v1831_v21 }
 0x2be   : > { %v1824_v45 = vsel %vm731_vm8, %v5989_v35, %v6024_v49  ;;  %v1833_v4 = vsel %vm731_vm8, %v6040_v14, %v5997_v37  ;;  %v1827_v11 = vsel %vm731_vm8, %v6068_v9, %v6108_v39 }
 0x2bf   : > { %v4615_v50 = vpack.c.bf16 %v1788_v43, %v1786_v60  ;;  %v1819_v62 = vpop.permute.xlu1 %1818  ;;  %v6197_v7 = vpop.permute.xlu0 %1956  ;;  %v4613_v20 = vpack.c.bf16 %v1789_v54, %v1787_v29  ;;  %v4617_v60 = vpack.c.bf16 %v1853_v28, %v1851_v40  ;;  %v1850_v54 = vmul.f32 %v6184_v59, %v1830_v48 }
 0x2c0   : > { %v1832_v29 = vsel %vm731_vm8, %v6024_v49, %v5989_v35  ;;  %v1855_v37 = vmul.f32 %v6154_v46, %v1824_v45  ;;  %v1856_v21 = vmul.f32 %v6184_v59, %v1833_v4  ;;  %v1826_v28 = vsel %vm731_vm8, %v6060_v22, %v6092_v55  ;;  %v4560_v4 = vld [vmem:[%s8884_s1 + $0x10] ss:$8 sm:$0x3] }
 0x2c1   : > { %2278 = vrot.lane.b32.xlu1 %v5794_v17, %s9002_s14  ;;  %4614 = vmatprep.subr.bf16.mxu1 %v4613_v20  ;;  %v4619_v16 = vpack.c.bf16 %v1852_v57, %v1850_v54  ;;  %v1835_v35 = vsel %vm731_vm8, %v6108_v39, %v6068_v9  ;;  %v1861_v49 = vmul.f32 %v6154_v46, %v1827_v11 }
 0x2c2   : > { %2292 = vrot.lane.b32.xlu0 %v5774_v5, %s9002_s14  ;;  %4616 = vmatpush1.bf16.msra.mxu1 %v4615_v50  ;;  %v4621_v27 = vpack.c.bf16 %v1857_v56, %v1855_v37  ;;  %v1854_v48 = vmul.f32 %v6184_v59, %v1832_v29  ;;  %v1834_v9 = vsel %vm731_vm8, %v6092_v55, %v6060_v22 }
 0x2c3   : > { %v6223_v43 = vpop.permute.xlu1 %1894  ;;  %4618 = vmatprep.subr.bf16.mxu1 %v4617_v60  ;;  %v6225_v14 = vpop.permute.xlu0 %2048  ;;  %v1859_v39 = vmul.f32 %v6154_v46, %v1826_v28  ;;  %v1860_v57 = vmul.f32 %v6184_v59, %v1835_v35  ;;  %v6256_v45 = vrot.slane %v4560_v4, %v5302_v3  ;;  %v1899_v56 = vsel %vm774_vm9, %v5928_v61, %v5977_v30 }
 0x2c4   : > { %v4623_v20 = vpack.c.bf16 %v1856_v21, %v1854_v48  ;;  %v1858_v55 = vmul.f32 %v6184_v59, %v1834_v9  ;;  %v1828_v60 = vsel %vm731_vm8, %v6128_v0, %v1819_v62  ;;  %v1836_v54 = vsel %vm731_vm8, %v1819_v62, %v6128_v0 }
 0x2c5   : > { %2294 = vrot.lane.b32.xlu1 %v5814_v23, %s9002_s14  ;;  %v4625_v22 = vpack.c.bf16 %v1861_v49, %v1859_v39  ;;  %v1898_v11 = vsel %vm774_vm9, %v5918_v58, %v5967_v25  ;;  %v1907_v29 = vsel %vm774_vm9, %v5977_v30, %v5928_v61  ;;  %v1929_v0 = vmul.f32 %v6256_v45, %v1899_v56 }
 0x2c6   : > { %2280 = vrot.lane.b32.xlu0 %v5800_v19, %s9002_s14  ;;  %4620 = vmatpush1.bf16.msra.mxu1 %v4619_v16  ;;  %v4627_v62 = vpack.c.bf16 %v1860_v57, %v1858_v55  ;;  %v1862_v35 = vmul.f32 %v6184_v59, %v1836_v54  ;;  %v1863_v49 = vmul.f32 %v6154_v46, %v1828_v60 }
 0x2c7   : > { %v6250_v40 = vpop.permute.xlu1 %1970  ;;  %4622 = vmatprep.subr.bf16.mxu1 %v4621_v27  ;;  %v6252_v50 = vpop.permute.xlu0 %2064  ;;  %v6297_v27 = vrot.slane %v4560_v4, %v5296_v2  ;;  %v1901_v48 = vsel %vm774_vm9, %v6008_v41, %v6048_v18  ;;  %v1927_v9 = vmul.f32 %v6256_v45, %v1898_v11  ;;  %v1903_v54 = vsel %vm774_vm9, %v6076_v42, %v6116_v52 }
 0x2c9   : > { %2282 = vrot.lane.b32.xlu1 %v5834_v32, %s9002_s14  ;;  %v1928_v56 = vmul.f32 %v6297_v27, %v1907_v29  ;;  %v4633_v55 = vpack.c.bf16 %v1929_v0, %v1927_v9  ;;  %v1902_v0 = vsel %vm774_vm9, %v6066_v31, %v6106_v10 }
 0x2ca   : > { %2296 = vrot.lane.b32.xlu0 %v5820_v26, %s9002_s14  ;;  %4624 = vmatpush1.bf16.msra.mxu1 %v4623_v20 }
 0x2cb   : > { %v6281_v37 = vpop.permute.xlu1 %2046  ;;  %4626 = vmatprep.subr.bf16.mxu1 %v4625_v22  ;;  %v1821_v16 = vpop.permute.xlu0 %1820  ;;  %v1900_v22 = vsel %vm774_vm9, %v5995_v24, %v6038_v12 }
 0x2cc   : > { %v1829_v21 = vsel %vm731_vm8, %v6136_v15, %v1821_v16  ;;  %v1837_v28 = vsel %vm731_vm8, %v1821_v16, %v6136_v15  ;;  %v1906_v15 = vsel %vm774_vm9, %v5967_v25, %v5918_v58  ;;  %v1909_v58 = vsel %vm774_vm9, %v6048_v18, %v6008_v41 }
 0x2cd   : > { %v1864_v61 = vmul.f32 %v6184_v59, %v1837_v28  ;;  %v1865_v30 = vmul.f32 %v6154_v46, %v1829_v21  ;;  %2298 = vrot.lane.b32.xlu1 %v5856_v36, %s9002_s14  ;;  %v1933_v25 = vmul.f32 %v6256_v45, %v1901_v48  ;;  %v1926_v60 = vmul.f32 %v6297_v27, %v1906_v15 }
 0x2ce   : > { %2284 = vrot.lane.b32.xlu0 %v5840_v34, %s9002_s14  ;;  %4628 = vmatpush1.bf16.msra.mxu1 %v4627_v62  ;;  %v1908_v41 = vsel %vm774_vm9, %v6038_v12, %v5995_v24  ;;  %v1931_v18 = vmul.f32 %v6256_v45, %v1900_v22  ;;  %v1932_v16 = vmul.f32 %v6297_v27, %v1909_v58 }
 0x2cf   : > { %v4631_v39 = vpack.c.bf16 %v1864_v61, %v1862_v35  ;;  %v6310_v20 = vpop.permute.xlu1 %2062  ;;  %v6312_v4 = vpop.permute.xlu0 %2052  ;;  %v4629_v57 = vpack.c.bf16 %v1865_v30, %v1863_v49  ;;  %v4635_v29 = vpack.c.bf16 %v1928_v56, %v1926_v60  ;;  %v1911_v24 = vsel %vm774_vm9, %v6116_v52, %v6076_v42  ;;  %v2390_v35 = vld [vmem:[%s8888_s5] sm:$0xff]  ;;  %v4561_v61 = vld [vmem:[%s8884_s1 + $0x13] ss:$8 sm:$0x3] }
 0x2d0   : > { %v1937_v12 = vmul.f32 %v6256_v45, %v1903_v54  ;;  %v4637_v21 = vpack.c.bf16 %v1933_v25, %v1931_v18  ;;  %v1930_v28 = vmul.f32 %v6297_v27, %v1908_v41  ;;  %v1910_v42 = vsel %vm774_vm9, %v6106_v10, %v6066_v31  ;;  %v2392_v56 = vld [vmem:[%s8888_s5 + $0x10] sm:$0xff]  ;;  %v9005_v60 = vld [vmem:[#allocation8_spill] sm:$0xff] }
 0x2d1   : > { %2286 = vrot.lane.b32.xlu1 %v5878_v44, %s9002_s14  ;;  %4630 = vmatprep.subr.bf16.mxu1 %v4629_v57  ;;  %v1935_v52 = vmul.f32 %v6256_v45, %v1902_v0  ;;  %v1936_v48 = vmul.f32 %v6297_v27, %v1911_v24  ;;  %v1975_v10 = vsel %vm903_vm12, %v5937_v1, %v5983_v33  ;;  %v9004_v57 = vld [vmem:[#allocation5_spill] sm:$0xff]  ;;  %v9006_v54 = vld [vmem:[#allocation6_spill] sm:$0xff] }
 0x2d2   : > { %2300 = vrot.lane.b32.xlu0 %v5862_v38, %s9002_s14  ;;  %4632 = vmatpush1.bf16.msra.mxu1 %v4631_v39  ;;  %v4639_v30 = vpack.c.bf16 %v1932_v16, %v1930_v28  ;;  %v1934_v31 = vmul.f32 %v6297_v27, %v1910_v42  ;;  %v1912_v39 = vsel %vm774_vm9, %v6223_v43, %v6134_v8  ;;  %v9007_v0 = vld [vmem:[#allocation17_spill] sm:$0xff]  ;;  %v9009_v42 = vld [vmem:[#allocation12_spill] sm:$0xff] }
 0x2d3   : > { %v6338_v11 = vpop.permute.xlu1 %2050  ;;  %4634 = vmatprep.subr.bf16.mxu1 %v4633_v55  ;;  %v6345_v62 = vpop.permute.xlu0 %2068  ;;  %v4641_v9 = vpack.c.bf16 %v1937_v12, %v1935_v52  ;;  %v6388_v22 = vrot.slane %v4561_v61, %v5302_v3  ;;  %v1904_v58 = vsel %vm774_vm9, %v6134_v8, %v6223_v43  ;;  %v2391_v55 = vld [vmem:[%s8888_s5 + $0x8] sm:$0xff]  ;;  %v1974_v41 = vsel %vm903_vm12, %v9006_v54, %v9005_v60  ;;  %v9010_v52 = vld [vmem:[#allocation10_spill] sm:$0xff] }
 0x2d4   : > { %v1983_v18 = vsel %vm903_vm12, %v5983_v33, %v5937_v1  ;;  %v1938_v43 = vmul.f32 %v6297_v27, %v1912_v39  ;;  %v2394_v33 = vld [vmem:[%s8888_s5 + $0x20] sm:$0xff] }
 0x2d5   : > { %2302 = vrot.lane.b32.xlu1 %v5896_v51, %s9002_s14  ;;  %v2005_v8 = vmul.f32 %v6388_v22, %v1975_v10  ;;  %v1982_v10 = vsel %vm903_vm12, %v9005_v60, %v9006_v54 }
 0x2d6   : > { %2288 = vrot.lane.b32.xlu0 %v5885_v47, %s9002_s14  ;;  %4636 = vmatpush1.bf16.msra.mxu1 %v4635_v29  ;;  %v4643_v29 = vpack.c.bf16 %v1936_v48, %v1934_v31  ;;  %v2003_v31 = vmul.f32 %v6388_v22, %v1974_v41  ;;  %v2396_v41 = vld [vmem:[%s8888_s5 + $0x30] sm:$0xff] }
 0x2d7   : > { %v6365_v49 = vpop.permute.xlu1 %2066  ;;  %4638 = vmatprep.subr.bf16.mxu1 %v4637_v21  ;;  %v6371_v15 = vpop.permute.xlu0 %2056  ;;  %v1939_v21 = vmul.f32 %v6256_v45, %v1904_v58 }
 0x2d8   : > { %v4649_v54 = vpack.c.bf16 %v2005_v8, %v2003_v31 }
 0x2d9   : > { %2400 = vperm.xlu1 %5129, %v2390_v35   ;;  %v6422_v35 = vrot.slane %v4561_v61, %v5296_v2 }
 0x2da   : > { %2304 = vrot.lane.b32.xlu0 %v9004_v57, %s9002_s14  ;;  %4640 = vmatpush1.bf16.msra.mxu1 %v4639_v30  ;;  %v1977_v30 = vsel %vm903_vm12, %v9010_v52, %v9009_v42 }
 0x2db   : > { %v6394_v25 = vpop.permute.xlu1 %2054  ;;  %4642 = vmatprep.subr.bf16.mxu1 %v4641_v9  ;;  %v1897_v16 = vpop.permute.xlu0 %1896  ;;  %9008 = vst [vmem:[#allocation5_spill] sm:$0xff] %v6422_v35  ;;  %v2393_v9 = vld [vmem:[%s8888_s5 + $0x18] sm:$0xff]  ;;  %v2004_v58 = vmul.f32 %v6422_v35, %v1983_v18  ;;  %v2009_v60 = vmul.f32 %v6388_v22, %v1977_v30  ;;  %v2002_v18 = vmul.f32 %v6422_v35, %v1982_v10 }
 0x2dc   : > { %v1905_v24 = vsel %vm774_vm9, %v9007_v0, %v1897_v16  ;;  %v1913_v12 = vsel %vm774_vm9, %v1897_v16, %v9007_v0  ;;  %v1985_v0 = vsel %vm903_vm12, %v9009_v42, %v9010_v52  ;;  %v9015_v30 = vld [vmem:[#allocation15_spill] sm:$0xff] }
 0x2dd   : > { %2410 = vperm.xlu1 %5129, %v2392_v56   ;;  %v1940_v28 = vmul.f32 %v6297_v27, %v1913_v12  ;;  %v1941_v1 = vmul.f32 %v6256_v45, %v1905_v24  ;;  %v9014_v24 = vld [vmem:[#allocation14_spill] sm:$0xff]  ;;  %v4651_v42 = vpack.c.bf16 %v2004_v58, %v2002_v18  ;;  %v2008_v52 = vmul.f32 %v6422_v35, %v1985_v0 }
 0x2de   : > { %2405 = vperm.xlu0 %5128, %v2391_v55   ;;  %4644 = vmatpush1.bf16.msra.mxu1 %v4643_v29  ;;  %v9011_v55 = vld [vmem:[#allocation11_spill] sm:$0xff]  ;;  %v9012_v29 = vld [vmem:[#allocation9_spill] sm:$0xff] }
 0x2df   : > { %v6428_v48 = vpop.permute.xlu1 %2070  ;;  %v4647_v61 = vpack.c.bf16 %v1940_v28, %v1938_v43  ;;  %v6438_v39 = vpop.permute.xlu0 %2072  ;;  %v4645_v56 = vpack.c.bf16 %v1941_v1, %v1939_v21  ;;  %v1976_v16 = vsel %vm903_vm12, %v9012_v29, %v9011_v55  ;;  %v9013_v43 = vld [vmem:[#allocation16_spill] sm:$0xff]  ;;  %v2395_v28 = vld [vmem:[%s8888_s5 + $0x28] sm:$0xff]  ;;  %v1984_v8 = vsel %vm903_vm12, %v9011_v55, %v9012_v29  ;;  %v2397_v29 = vld [vmem:[%s8888_s5 + $0x38] sm:$0xff] }
 0x2e0   : > { %v1979_v12 = vsel %vm903_vm12, %v9014_v24, %v9013_v43  ;;  %v2007_v1 = vmul.f32 %v6388_v22, %v1976_v16  ;;  %v1987_v31 = vsel %vm903_vm12, %v9013_v43, %v9014_v24  ;;  %v2006_v55 = vmul.f32 %v6422_v35, %v1984_v8 }
 0x2e1   : > { %2420 = vperm.xlu1 %5129, %v2394_v33   ;;  %4646 = vmatprep.subr.bf16.mxu1 %v4645_v56  ;;  %v2012_v18 = vmul.f32 %v6422_v35, %v1987_v31 }
 0x2e2   : > { %2415 = vperm.xlu0 %5128, %v2393_v9   ;;  %4648 = vmatpush1.bf16.msra.mxu1 %v4647_v61  ;;  %v9016_v9 = vld [vmem:[#allocation13_spill] sm:$0xff]  ;;  %v2013_v61 = vmul.f32 %v6388_v22, %v1979_v12  ;;  %v4653_v56 = vpack.c.bf16 %v2009_v60, %v2007_v1  ;;  %v4562_v60 = vld [vmem:[%s8884_s1 + $0x14] ss:$8 sm:$0x3] }
 0x2e3   : > { %v6458_v21 = vpop.permute.xlu1 %2058  ;;  %4650 = vmatprep.subr.bf16.mxu1 %v4649_v54  ;;  %v6468_v33 = vpop.permute.xlu0 %2060  ;;  %v1978_v10 = vsel %vm903_vm12, %v9016_v9, %v9015_v30  ;;  %v1986_v16 = vsel %vm903_vm12, %v9015_v30, %v9016_v9  ;;  %v9017_v12 = vld [vmem:[#allocation18_spill] sm:$0xff] }
 0x2e4   : > { %v2011_v0 = vmul.f32 %v6388_v22, %v1978_v10  ;;  %v2010_v24 = vmul.f32 %v6422_v35, %v1986_v16  ;;  %v1988_v8 = vsel %vm903_vm12, %v6250_v40, %v9017_v12  ;;  %v6526_v16 = vrot.slane %v4562_v60, %v5296_v2 }
 0x2e5   : > { %2430 = vperm.xlu1 %5129, %v2396_v41   ;;  %v4655_v41 = vpack.c.bf16 %v2008_v52, %v2006_v55  ;;  %v2014_v31 = vmul.f32 %v6422_v35, %v1988_v8 }
 0x2e6   : > { %2425 = vperm.xlu0 %5128, %v2395_v28   ;;  %4652 = vmatpush1.bf16.msra.mxu1 %v4651_v42  ;;  %v4657_v43 = vpack.c.bf16 %v2013_v61, %v2011_v0  ;;  %v1980_v28 = vsel %vm903_vm12, %v9017_v12, %v6250_v40  ;;  %v6509_v42 = vrot.slane %v4562_v60, %v5302_v3  ;;  %v2350_v60 = vld [vmem:[%s8887_s4] sm:$0xff] }
 0x2e7   : > { %v6481_v58 = vpop.permute.xlu1 %2074  ;;  %4654 = vmatprep.subr.bf16.mxu1 %v4653_v56  ;;  %v6491_v54 = vpop.permute.xlu0 %2124  ;;  %v4659_v30 = vpack.c.bf16 %v2012_v18, %v2010_v24  ;;  %v2015_v61 = vmul.f32 %v6388_v22, %v1980_v28  ;;  %9019 = vst [vmem:[#allocation6_spill] sm:$0xff] %v6526_v16  ;;  %v2032_v18 = vmul.f32 %v6526_v16, %v5748_v53  ;;  %v9020_v28 = vld [vmem:[#allocation4_spill] sm:$0xff] }
 0x2e8   : > { %9018 = vst [vmem:[#allocation8_spill] sm:$0xff] %v6509_v42  ;;  %v2033_v40 = vmul.f32 %v6509_v42, %v5774_v5  ;;  %v2031_v5 = vmul.f32 %v6509_v42, %v5764_v63  ;;  %v2037_v24 = vmul.f32 %v6509_v42, %v5820_v26  ;;  %v2030_v8 = vmul.f32 %v6526_v16, %v9020_v28  ;;  %v2356_v26 = vld [vmem:[%s8887_s4 + $0x30] sm:$0xff] }
 0x2e9   : > { %v2035_v53 = vmul.f32 %v6509_v42, %v5814_v23  ;;  %v2355_v23 = vld [vmem:[%s8887_s4 + $0x28] sm:$0xff] }
 0x2ea   : > { %2435 = vperm.xlu0 %5128, %v2397_v29   ;;  %4656 = vmatpush1.bf16.msra.mxu1 %v4655_v41 }
 0x2eb   : > { %v6506_v1 = vpop.permute.xlu1 %2122  ;;  %4658 = vmatprep.subr.bf16.mxu1 %v4657_v43  ;;  %v1973_v52 = vpop.permute.xlu0 %1972  ;;  %v4665_v43 = vpack.c.bf16 %v2033_v40, %v2031_v5 }
 0x2ec   : > { %v1981_v9 = vsel %vm903_vm12, %v6197_v7, %v1973_v52  ;;  %v1989_v10 = vsel %vm903_vm12, %v1973_v52, %v6197_v7  ;;  %v4667_v52 = vpack.c.bf16 %v2032_v18, %v2030_v8  ;;  %v2038_v18 = vmul.f32 %v6526_v16, %v5834_v32 }
 0x2ed   : > { %v2016_v56 = vmul.f32 %v6422_v35, %v1989_v10  ;;  %v2017_v55 = vmul.f32 %v6388_v22, %v1981_v9  ;;  %v4669_v9 = vpack.c.bf16 %v2037_v24, %v2035_v53  ;;  %v2041_v10 = vmul.f32 %v6509_v42, %v5862_v38  ;;  %v2361_v38 = vld [vmem:[%s8887_s4 + $0x58] sm:$0xff] }
 0x2ee   : > { %4660 = vmatpush1.bf16.msra.mxu1 %v4659_v30  ;;  %v2036_v30 = vmul.f32 %v6526_v16, %v5800_v19  ;;  %v2039_v19 = vmul.f32 %v6509_v42, %v5856_v36  ;;  %v2086_v36 = vsel %vm952_vm13, %v6310_v20, %v6281_v37  ;;  %v2043_v24 = vmul.f32 %v6509_v42, %v5896_v51 }
 0x2ef   : > { %v6523_v29 = vpop.permute.xlu1 %2138  ;;  %v4663_v0 = vpack.c.bf16 %v2016_v56, %v2014_v31  ;;  %v6528_v41 = vpop.permute.xlu0 %2140  ;;  %v4661_v7 = vpack.c.bf16 %v2017_v55, %v2015_v61  ;;  %v2034_v31 = vmul.f32 %v6526_v16, %v5794_v17  ;;  %v4563_v56 = vld [vmem:[%s8884_s1 + $0x15] ss:$8 sm:$0x3]  ;;  %v2040_v55 = vmul.f32 %v6526_v16, %v5840_v34 }
 0x2f0   : > { %v2360_v34 = vld [vmem:[%s8887_s4 + $0x50] sm:$0xff]  ;;  %v2087_v32 = vsel %vm952_vm13, %v6252_v50, %v6225_v14  ;;  %v2044_v8 = vmul.f32 %v6526_v16, %v5885_v47  ;;  %v2078_v53 = vsel %vm952_vm13, %v6281_v37, %v6310_v20  ;;  %v2042_v47 = vmul.f32 %v6526_v16, %v5878_v44  ;;  %v2365_v37 = vld [vmem:[%s8887_s4 + $0x78] sm:$0xff] }
 0x2f1   : > { %4662 = vmatprep.subr.bf16.mxu1 %v4661_v7  ;;  %v4671_v17 = vpack.c.bf16 %v2036_v30, %v2034_v31  ;;  %v2045_v7 = vmul.f32 %v6509_v42, %v9004_v57  ;;  %v4675_v28 = vpack.c.bf16 %v2040_v55, %v2038_v18  ;;  %v2088_v30 = vsel %vm952_vm13, %v6365_v49, %v6338_v11 }
 0x2f2   : > { %4664 = vmatpush1.bf16.msra.mxu1 %v4663_v0  ;;  %v4673_v0 = vpack.c.bf16 %v2041_v10, %v2039_v19  ;;  %v2079_v20 = vsel %vm952_vm13, %v6225_v14, %v6252_v50  ;;  %v2089_v19 = vsel %vm952_vm13, %v6345_v62, %v6312_v4  ;;  %v2080_v14 = vsel %vm952_vm13, %v6338_v11, %v6365_v49  ;;  %v2370_v11 = vld [vmem:[%s8887_s4 + $0xa0] sm:$0xff] }
 0x2f3   : > { %v6536_v12 = vpop.permute.xlu1 %2126  ;;  %4666 = vmatprep.subr.bf16.mxu1 %v4665_v43  ;;  %v6543_v63 = vpop.permute.xlu0 %2128  ;;  %v6587_v43 = vrot.slane %v4563_v56, %v5302_v3  ;;  %v2090_v55 = vsel %vm952_vm13, %v6428_v48, %v6394_v25  ;;  %v2081_v49 = vsel %vm952_vm13, %v6312_v4, %v6345_v62  ;;  %v2083_v4 = vsel %vm952_vm13, %v6371_v15, %v6438_v39  ;;  %v4564_v62 = vld [vmem:[%s8884_s1 + $0x20] ss:$8 sm:$0x3] }
 0x2f5   : > { %2528 = vmatmul.mubr.f32.vlgmr.msra.gmra.mrb[16].mxu1 %v2350_v60  ;;  %9021 = vst [vmem:[#allocation17_spill] sm:$0xff] %v6587_v43  ;;  %v2366_v60 = vld [vmem:[%s8887_s4 + $0x80] sm:$0xff]  ;;  %v2107_v51 = vmul.f32 %v6587_v43, %v2086_v36  ;;  %v2109_v10 = vmul.f32 %v6587_v43, %v2087_v32  ;;  %v2111_v50 = vmul.f32 %v6587_v43, %v2088_v30 }
 0x2f6   : > { %4668 = vmatpush1.bf16.msra.mxu1 %v4667_v52  ;;  %2533 = vmatprep.mubr.f32.mxu1 %v2356_v26  ;;  %v4677_v26 = vpack.c.bf16 %v2045_v7, %v2043_v24  ;;  %v6608_v52 = vrot.slane %v4563_v56, %v5296_v2  ;;  %v2113_v36 = vmul.f32 %v6587_v43, %v2089_v19 }
 0x2f7   : > { %v6554_v40 = vpop.permute.xlu1 %2142  ;;  %4670 = vmatprep.subr.bf16.mxu1 %v4669_v9  ;;  %v6561_v61 = vpop.permute.xlu0 %2144  ;;  %v4681_v56 = vpack.c.bf16 %v2109_v10, %v2107_v51  ;;  %v2082_v32 = vsel %vm952_vm13, %v6394_v25, %v6428_v48  ;;  %v2163_v10 = vsel %vm1081_vm1, %v6528_v41, %v6491_v54  ;;  %v2092_v19 = vsel %vm952_vm13, %v6481_v58, %v6458_v21 }
 0x2f8   : > { %9022 = vst [vmem:[#allocation12_spill] sm:$0xff] %v6608_v52  ;;  %v2106_v44 = vmul.f32 %v6608_v52, %v2078_v53  ;;  %v4685_v53 = vpack.c.bf16 %v2113_v36, %v2111_v50  ;;  %v2112_v51 = vmul.f32 %v6608_v52, %v2081_v49  ;;  %v2114_v25 = vmul.f32 %v6608_v52, %v2082_v32 }
 0x2f9   : > { %2534 = vmatmul.mubr.f32.gmra.mrb[18].mxu1 %v2355_v23  ;;  %v2371_v23 = vld [vmem:[%s8887_s4 + $0xa8] sm:$0xff]  ;;  %v2116_v48 = vmul.f32 %v6608_v52, %v2083_v4  ;;  %v2119_v36 = vmul.f32 %v6587_v43, %v2092_v19 }
 0x2fa   : > { %4672 = vmatpush1.bf16.msra.mxu1 %v4671_v17  ;;  %2539 = vmatprep.mubr.f32.mxu1 %v2361_v38  ;;  %v4679_v38 = vpack.c.bf16 %v2044_v8, %v2042_v47  ;;  %v2108_v17 = vmul.f32 %v6608_v52, %v2079_v20  ;;  %v2381_v47 = vld [vmem:[%s8887_s4 + $0xf8] sm:$0xff]  ;;  %v2162_v20 = vsel %vm1081_vm1, %v6523_v29, %v6506_v1  ;;  %v4565_v19 = vld [vmem:[%s8884_s1 + $0x21] ss:$8 sm:$0x3] }
 0x2fb   : > { %v6579_v5 = vpop.permute.xlu1 %2130  ;;  %4674 = vmatprep.subr.bf16.mxu1 %v4673_v0  ;;  %v6589_v57 = vpop.permute.xlu0 %2132  ;;  %v2091_v0 = vsel %vm952_vm13, %v6438_v39, %v6371_v15  ;;  %v2375_v15 = vld [vmem:[%s8887_s4 + $0xc8] sm:$0xff]  ;;  %v6688_v39 = vrot.slane %v4564_v62, %v5302_v3  ;;  %v4691_v50 = vpack.c.bf16 %v2116_v48, %v2114_v25  ;;  %v2157_v48 = vsel %vm1081_vm1, %v6543_v63, %v6561_v61 }
 0x2fc   : > { %v4683_v24 = vpack.c.bf16 %v2108_v17, %v2106_v44  ;;  %v2117_v8 = vmul.f32 %v6587_v43, %v2091_v0  ;;  %v2084_v44 = vsel %vm952_vm13, %v6458_v21, %v6481_v58  ;;  %v2154_v17 = vsel %vm1081_vm1, %v6506_v1, %v6523_v29  ;;  %v2386_v58 = vld [vmem:[%s8887_s4 + $0x120] sm:$0xff] }
 0x2fd   : > { %2540 = vmatmul.mubr.f32.gmra.mrb[20].mxu1 %v2360_v34  ;;  %v2376_v34 = vld [vmem:[%s8887_s4 + $0xd0] sm:$0xff]  ;;  %9023 = vst [vmem:[#allocation10_spill] sm:$0xff] %v6688_v39  ;;  %v2155_v0 = vsel %vm1081_vm1, %v6491_v54, %v6528_v41  ;;  %v2118_v29 = vmul.f32 %v6608_v52, %v2084_v44  ;;  %v2164_v54 = vsel %vm1081_vm1, %v6554_v40, %v6536_v12 }
 0x2fe   : > { %4676 = vmatpush1.bf16.msra.mxu1 %v4675_v28  ;;  %2545 = vmatprep.mubr.f32.mxu1 %v2366_v60  ;;  %v2110_v60 = vmul.f32 %v6608_v52, %v2080_v14  ;;  %v2115_v28 = vmul.f32 %v6587_v43, %v2090_v55  ;;  %v2380_v14 = vld [vmem:[%s8887_s4 + $0xf0] sm:$0xff]  ;;  %v2183_v55 = vmul.f32 %v6688_v39, %v2162_v20 }
 0x2ff   : > { %v6614_v9 = vpop.permute.xlu1 %2146  ;;  %4678 = vmatprep.subr.bf16.mxu1 %v4677_v26  ;;  %v6626_v31 = vpop.permute.xlu0 %2148  ;;  %v2165_v41 = vsel %vm1081_vm1, %v6561_v61, %v6543_v63  ;;  %v2187_v25 = vmul.f32 %v6688_v39, %v2164_v54 }
 0x300   : > { %v2159_v44 = vsel %vm1081_vm1, %v6589_v57, %v6626_v31 }
 0x301   : > { %2546 = vmatmul.mubr.f32.gmra.mrb[22].mxu1 %v2365_v37  ;;  %v4687_v37 = vpack.c.bf16 %v2112_v51, %v2110_v60  ;;  %v2385_v60 = vld [vmem:[%s8887_s4 + $0x118] sm:$0xff]  ;;  %v2156_v51 = vsel %vm1081_vm1, %v6536_v12, %v6554_v40  ;;  %v2167_v12 = vsel %vm1081_vm1, %v6626_v31, %v6589_v57 }
 0x302   : > { %4680 = vmatpush1.bf16.msra.mxu1 %v4679_v38  ;;  %2551 = vmatprep.mubr.f32.mxu1 %v2371_v23  ;;  %v4689_v23 = vpack.c.bf16 %v2117_v8, %v2115_v28 }
 0x303   : > { %v6650_v7 = vpop.permute.xlu1 %2134  ;;  %4682 = vmatprep.subr.bf16.mxu1 %v4681_v56  ;;  %v6660_v18 = vpop.permute.xlu0 %2136  ;;  %v6717_v56 = vrot.slane %v4564_v62, %v5296_v2 }
 0x305   : > { %2552 = vmatmul.mubr.f32.gmra.mrb[24].mxu1 %v2370_v11  ;;  %9024 = vst [vmem:[#allocation11_spill] sm:$0xff] %v6717_v56  ;;  %v2185_v11 = vmul.f32 %v6688_v39, %v2163_v10  ;;  %v2182_v32 = vmul.f32 %v6717_v56, %v2154_v17  ;;  %v2184_v4 = vmul.f32 %v6717_v56, %v2155_v0 }
 0x306   : > { %4684 = vmatpush1.bf16.msra.mxu1 %v4683_v24  ;;  %2557 = vmatprep.mubr.f32.mxu1 %v2376_v34  ;;  %v2186_v61 = vmul.f32 %v6717_v56, %v2156_v51  ;;  %v2188_v10 = vmul.f32 %v6717_v56, %v2157_v48 }
 0x307   : > { %v6680_v26 = vpop.permute.xlu1 %2150  ;;  %4686 = vmatprep.subr.bf16.mxu1 %v4685_v53  ;;  %v6690_v30 = vpop.permute.xlu0 %2200  ;;  %v2353_v53 = vld [vmem:[%s8887_s4 + $0x18] sm:$0xff]  ;;  %v4699_v20 = vpack.c.bf16 %v2184_v4, %v2182_v32 }
 0x308   : > { %v4703_v31 = vpack.c.bf16 %v2188_v10, %v2186_v61 }
 0x309   : > { %2558 = vmatmul.mubr.f32.gmra.mrb[26].mxu1 %v2375_v15  ;;  %v4697_v15 = vpack.c.bf16 %v2185_v11, %v2183_v55 }
 0x30a   : > { %4688 = vmatpush1.bf16.msra.mxu1 %v4687_v37  ;;  %2563 = vmatprep.mubr.f32.mxu1 %v2381_v47  ;;  %v2189_v47 = vmul.f32 %v6688_v39, %v2165_v41  ;;  %v2166_v37 = vsel %vm1081_vm1, %v6614_v9, %v6579_v5 }
 0x30b   : > { %v6711_v38 = vpop.permute.xlu1 %2198  ;;  %4690 = vmatprep.subr.bf16.mxu1 %v4689_v23  ;;  %v2077_v21 = vpop.permute.xlu0 %2076  ;;  %v2158_v23 = vsel %vm1081_vm1, %v6579_v5, %v6614_v9  ;;  %v2192_v5 = vmul.f32 %v6717_v56, %v2159_v44  ;;  %v6794_v9 = vrot.slane %v4565_v19, %v5302_v3 }
 0x30c   : > { %v2085_v49 = vsel %vm952_vm13, %v6468_v33, %v2077_v21  ;;  %v2093_v1 = vsel %vm952_vm13, %v2077_v21, %v6468_v33  ;;  %v4701_v17 = vpack.c.bf16 %v2189_v47, %v2187_v25  ;;  %v2190_v21 = vmul.f32 %v6717_v56, %v2158_v23 }
 0x30d   : > { %v2120_v34 = vmul.f32 %v6608_v52, %v2085_v49  ;;  %v2121_v24 = vmul.f32 %v6587_v43, %v2093_v1  ;;  %2564 = vmatmul.mubr.f32.gmra.mrb[28].mxu1 %v2380_v14  ;;  %v2191_v14 = vmul.f32 %v6688_v39, %v2166_v37  ;;  %9025 = vst [vmem:[#allocation9_spill] sm:$0xff] %v6794_v9 }
 0x30e   : > { %4692 = vmatpush1.bf16.msra.mxu1 %v4691_v50  ;;  %2569 = vmatprep.mubr.f32.mxu1 %v2386_v58  ;;  %v2193_v50 = vmul.f32 %v6688_v39, %v2167_v12  ;;  %v2160_v49 = vsel %vm1081_vm1, %v6650_v7, %v6680_v26  ;;  %v2168_v1 = vsel %vm1081_vm1, %v6680_v26, %v6650_v7 }
 0x30f   : > { %v2215_v33 = vpop.permute.xlu1 %2214  ;;  %v4695_v62 = vpack.c.bf16 %v2120_v34, %v2118_v29  ;;  %v2217_v28 = vpop.permute.xlu0 %2216  ;;  %v4693_v8 = vpack.c.bf16 %v2121_v24, %v2119_v36  ;;  %v4707_v36 = vpack.c.bf16 %v2192_v5, %v2190_v21  ;;  %v6811_v34 = vrot.slane %v4565_v19, %v5296_v2 }
 0x310   : > { %v2238_v58 = vsel %vm1124_vm2, %v2215_v33, %v6711_v38  ;;  %v2239_v0 = vsel %vm1124_vm2, %v2217_v28, %v6690_v30  ;;  %v4705_v11 = vpack.c.bf16 %v2193_v50, %v2191_v14  ;;  %v2230_v24 = vsel %vm1124_vm2, %v6711_v38, %v2215_v33 }
 0x311   : > { %4694 = vmatprep.subr.bf16.mxu1 %v4693_v8  ;;  %2570 = vmatmul.mubr.f32.gmra.mrb[30].mxu1 %v2385_v60  ;;  %9026 = vst [vmem:[#allocation16_spill] sm:$0xff] %v6811_v34  ;;  %v2259_v54 = vmul.f32 %v6794_v9, %v2238_v58  ;;  %v2231_v60 = vsel %vm1124_vm2, %v6690_v30, %v2217_v28 }
 0x312   : > { %4696 = vmatpush1.bf16.msra.mxu1 %v4695_v62  ;;  %2640 = vmatprep.mubr.f32.mxu1 %v2353_v53  ;;  %v2261_v7 = vmul.f32 %v6794_v9, %v2239_v0  ;;  %v2194_v38 = vmul.f32 %v6717_v56, %v2160_v49  ;;  %v2195_v33 = vmul.f32 %v6688_v39, %v2168_v1 }
 0x313   : > { %v2203_v40 = vpop.permute.xlu1 %2202  ;;  %4698 = vmatprep.subr.bf16.mxu1 %v4697_v15  ;;  %v2205_v63 = vpop.permute.xlu0 %2204  ;;  %v2258_v53 = vmul.f32 %v6811_v34, %v2230_v24 }
 0x314   : > { %v4713_v48 = vpack.c.bf16 %v2261_v7, %v2259_v54 }
 0x316   : > { %4700 = vmatpush1.bf16.msra.mxu1 %v4699_v20 }
 0x317   : > { %v2219_v55 = vpop.permute.xlu1 %2218  ;;  %4702 = vmatprep.subr.bf16.mxu1 %v4701_v17  ;;  %v2221_v57 = vpop.permute.xlu0 %2220 }
 0x318   : > { %v2240_v30 = vsel %vm1124_vm2, %v2219_v55, %v2203_v40  ;;  %v2241_v28 = vsel %vm1124_vm2, %v2221_v57, %v2205_v63  ;;  %v2232_v47 = vsel %vm1124_vm2, %v2203_v40, %v2219_v55  ;;  %v2233_v12 = vsel %vm1124_vm2, %v2205_v63, %v2221_v57 }
 0x319   : > { %v2263_v37 = vmul.f32 %v6794_v9, %v2240_v30  ;;  %v2265_v20 = vmul.f32 %v6794_v9, %v2241_v28  ;;  %v2262_v44 = vmul.f32 %v6811_v34, %v2232_v47  ;;  %v2264_v19 = vmul.f32 %v6811_v34, %v2233_v12 }
 0x31a   : > { %4704 = vmatpush1.bf16.msra.mxu1 %v4703_v31 }
 0x31b   : > { %v2207_v29 = vpop.permute.xlu1 %2206  ;;  %4706 = vmatprep.subr.bf16.mxu1 %v4705_v11  ;;  %v2153_v41 = vpop.permute.xlu0 %2152  ;;  %v4717_v17 = vpack.c.bf16 %v2265_v20, %v2263_v37  ;;  %v4719_v31 = vpack.c.bf16 %v2264_v19, %v2262_v44 }
 0x31c   : > { %v2161_v26 = vsel %vm1081_vm1, %v6660_v18, %v2153_v41  ;;  %v2169_v32 = vsel %vm1081_vm1, %v2153_v41, %v6660_v18  ;;  %v2260_v18 = vmul.f32 %v6811_v34, %v2231_v60 }
 0x31d   : > { %v2196_v4 = vmul.f32 %v6717_v56, %v2161_v26  ;;  %v2197_v62 = vmul.f32 %v6688_v39, %v2169_v32 }
 0x31e   : > { %4708 = vmatpush1.bf16.msra.mxu1 %v4707_v36  ;;  %v4715_v10 = vpack.c.bf16 %v2260_v18, %v2258_v53 }
 0x31f   : > { %v2223_v8 = vpop.permute.xlu1 %2222  ;;  %v4711_v51 = vpack.c.bf16 %v2196_v4, %v2194_v38  ;;  %v2209_v15 = vpop.permute.xlu0 %2208  ;;  %v4709_v25 = vpack.c.bf16 %v2197_v62, %v2195_v33  ;;  %v4566_v38 = vld [vmem:[%s8884_s1 + $0x22] ss:$8 sm:$0x3] }
 0x320   : > { %v2242_v40 = vsel %vm1124_vm2, %v2223_v8, %v2207_v29  ;;  %v2234_v21 = vsel %vm1124_vm2, %v2207_v29, %v2223_v8  ;;  %v6873_v28 = vrot.slane %v4566_v38, %v5296_v2  ;;  %v6876_v8 = vrot.slane %v4566_v38, %v5302_v3  ;;  %v2358_v2 = vld [vmem:[%s8887_s4 + $0x40] sm:$0xff] }
 0x321   : > { %4710 = vmatprep.subr.bf16.mxu1 %v4709_v25  ;;  %v2267_v5 = vmul.f32 %v6794_v9, %v2242_v40  ;;  %v2266_v11 = vmul.f32 %v6811_v34, %v2234_v21  ;;  %v2363_v40 = vld [vmem:[%s8887_s4 + $0x68] sm:$0xff]  ;;  %v2368_v21 = vld [vmem:[%s8887_s4 + $0x90] sm:$0xff]  ;;  %v2378_v38 = vld [vmem:[%s8887_s4 + $0xe0] sm:$0xff] }
 0x322   : > { %4712 = vmatpush1.bf16.msra.mxu1 %v4711_v51  ;;  %9027 = vst [vmem:[#allocation14_spill] sm:$0xff] %v6873_v28  ;;  %9028 = vst [vmem:[#allocation15_spill] sm:$0xff] %v6876_v8 }
 0x323   : > { %v2211_v61 = vpop.permute.xlu1 %2210  ;;  %4714 = vmatprep.subr.bf16.mxu1 %v4713_v48  ;;  %v2225_v23 = vpop.permute.xlu0 %2224 }
 0x324   : > { %v2243_v14 = vsel %vm1124_vm2, %v2225_v23, %v2209_v15  ;;  %v2235_v63 = vsel %vm1124_vm2, %v2209_v15, %v2225_v23  ;;  %v2352_v15 = vld [vmem:[%s8887_s4 + $0x10] sm:$0xff] }
 0x325   : > { %v2269_v50 = vmul.f32 %v6794_v9, %v2243_v14  ;;  %v2268_v58 = vmul.f32 %v6811_v34, %v2235_v63 }
 0x326   : > { %4716 = vmatpush1.bf16.msra.mxu1 %v4715_v10  ;;  %v2357_v10 = vld [vmem:[%s8887_s4 + $0x38] sm:$0xff] }
 0x327   : > { %v2227_v55 = vpop.permute.xlu1 %2226  ;;  %4718 = vmatprep.subr.bf16.mxu1 %v4717_v17  ;;  %v2213_v57 = vpop.permute.xlu0 %2212  ;;  %v4721_v0 = vpack.c.bf16 %v2269_v50, %v2267_v5  ;;  %v4723_v24 = vpack.c.bf16 %v2268_v58, %v2266_v11  ;;  %v2362_v17 = vld [vmem:[%s8887_s4 + $0x60] sm:$0xff] }
 0x328   : > { %v2236_v49 = vsel %vm1124_vm2, %v2211_v61, %v2227_v55  ;;  %v2244_v1 = vsel %vm1124_vm2, %v2227_v55, %v2211_v61 }
 0x329   : > { %v2270_v60 = vmul.f32 %v6811_v34, %v2236_v49  ;;  %v2271_v7 = vmul.f32 %v6794_v9, %v2244_v1  ;;  %v2367_v1 = vld [vmem:[%s8887_s4 + $0x88] sm:$0xff] }
 0x32a   : > { %4720 = vmatpush1.bf16.msra.mxu1 %v4719_v31 }
 0x32b   : > { %v2275_v36 = vpop.permute.xlu1 %2274  ;;  %4722 = vmatprep.subr.bf16.mxu1 %v4721_v0  ;;  %v2229_v29 = vpop.permute.xlu0 %2228 }
 0x32c   : > { %v2237_v54 = vsel %vm1124_vm2, %v2213_v57, %v2229_v29  ;;  %v2245_v41 = vsel %vm1124_vm2, %v2229_v29, %v2213_v57 }
 0x32d   : > { %v2272_v26 = vmul.f32 %v6811_v34, %v2237_v54  ;;  %v2273_v32 = vmul.f32 %v6794_v9, %v2245_v41  ;;  %v2373_v54 = vld [vmem:[%s8887_s4 + $0xb8] sm:$0xff] }
 0x32e   : > { %4724 = vmatpush1.bf16.msra.mxu1 %v4723_v24 }
 0x32f   : > { %v2291_v33 = vpop.permute.xlu1 %2290  ;;  %v4727_v4 = vpack.c.bf16 %v2272_v26, %v2270_v60  ;;  %v2277_v62 = vpop.permute.xlu0 %2276  ;;  %v4725_v30 = vpack.c.bf16 %v2273_v32, %v2271_v7  ;;  %v2372_v26 = vld [vmem:[%s8887_s4 + $0xb0] sm:$0xff] }
 0x330   : > { %v2306_v53 = vsel %vm1167_vm3, %v2275_v36, %v2291_v33  ;;  %v2314_v18 = vsel %vm1167_vm3, %v2291_v33, %v2275_v36 }
 0x331   : > { %4726 = vmatprep.subr.bf16.mxu1 %v4725_v30  ;;  %v2334_v47 = vmul.f32 %v6873_v28, %v2306_v53  ;;  %v2335_v37 = vmul.f32 %v6876_v8, %v2314_v18 }
 0x332   : > { %4728 = vmatpush1.bf16.msra.mxu1 %v4727_v4 }
 0x333   : > { %v2279_v51 = vpop.permute.xlu1 %2278 }
 0x334   : > { %v2293_v25 = vpop.permute.xlu0 %2292 }
 0x335   : > { %v2307_v3 = vsel %vm1167_vm3, %v2277_v62, %v2293_v25  ;;  %v2315_v48 = vsel %vm1167_vm3, %v2293_v25, %v2277_v62  ;;  %2641 = vmatmul.mubr.f32.vlgmr.msra.gmra.mrb[16].mxu1 %v2352_v15 }
 0x336   : > { %v2336_v12 = vmul.f32 %v6873_v28, %v2307_v3  ;;  %v2337_v20 = vmul.f32 %v6876_v8, %v2315_v48  ;;  %2646 = vmatprep.mubr.f32.mxu1 %v2358_v2  ;;  %v2383_v48 = vld [vmem:[%s8887_s4 + $0x108] sm:$0xff] }
 0x337   : > { %v2295_v61 = vpop.permute.xlu1 %2294 }
 0x338   : > { %v4731_v23 = vpack.c.bf16 %v2336_v12, %v2334_v47  ;;  %v2281_v44 = vpop.permute.xlu0 %2280  ;;  %v4729_v19 = vpack.c.bf16 %v2337_v20, %v2335_v37  ;;  %v2308_v14 = vsel %vm1167_vm3, %v2279_v51, %v2295_v61  ;;  %v2316_v63 = vsel %vm1167_vm3, %v2295_v61, %v2279_v51  ;;  %v2377_v51 = vld [vmem:[%s8887_s4 + $0xd8] sm:$0xff]  ;;  %v2382_v12 = vld [vmem:[%s8887_s4 + $0x100] sm:$0xff]  ;;  %v2388_v61 = vld [vmem:[%s8887_s4 + $0x130] sm:$0xff] }
 0x339   : > { %2647 = vmatmul.mubr.f32.gmra.mrb[18].mxu1 %v2357_v10  ;;  %v2338_v31 = vmul.f32 %v6873_v28, %v2308_v14  ;;  %v2339_v58 = vmul.f32 %v6876_v8, %v2316_v63  ;;  %v2387_v63 = vld [vmem:[%s8887_s4 + $0x128] sm:$0xff] }
 0x33a   : > { %4730 = vmatprep.subr.bf16.mxu1 %v4729_v19  ;;  %2652 = vmatprep.mubr.f32.mxu1 %v2363_v40 }
 0x33b   : > { %4732 = vmatpush1.bf16.msra.mxu1 %v4731_v23  ;;  %v2283_v50 = vpop.permute.xlu1 %2282 }
 0x33c   : > { %v2297_v55 = vpop.permute.xlu0 %2296 }
 0x33d   : > { %v2309_v5 = vsel %vm1167_vm3, %v2281_v44, %v2297_v55  ;;  %v2317_v57 = vsel %vm1167_vm3, %v2297_v55, %v2281_v44  ;;  %2653 = vmatmul.mubr.f32.gmra.mrb[20].mxu1 %v2362_v17  ;;  %v9029_v55 = vmov 0.0  }
 0x33e   : > { %v2340_v0 = vmul.f32 %v6873_v28, %v2309_v5  ;;  %v2341_v11 = vmul.f32 %v6876_v8, %v2317_v57  ;;  %2658 = vmatprep.mubr.f32.mxu1 %v2368_v21  ;;  %v2354_v21 = vld [vmem:[%s8887_s4 + $0x20] sm:$0xff]  ;;  %v2359_v5 = vld [vmem:[%s8887_s4 + $0x48] sm:$0xff]  ;;  %v2364_v57 = vld [vmem:[%s8887_s4 + $0x70] sm:$0xff] }
 0x33f   : > { %v2299_v49 = vpop.permute.xlu1 %2298 }
 0x340   : > { %v4735_v36 = vpack.c.bf16 %v2340_v0, %v2338_v31  ;;  %v2285_v29 = vpop.permute.xlu0 %2284  ;;  %v4733_v24 = vpack.c.bf16 %v2341_v11, %v2339_v58  ;;  %v2310_v41 = vsel %vm1167_vm3, %v2283_v50, %v2299_v49  ;;  %v2318_v60 = vsel %vm1167_vm3, %v2299_v49, %v2283_v50  ;;  %v2369_v31 = vld [vmem:[%s8887_s4 + $0x98] sm:$0xff]  ;;  %v2374_v58 = vld [vmem:[%s8887_s4 + $0xc0] sm:$0xff]  ;;  %v2379_v0 = vld [vmem:[%s8887_s4 + $0xe8] sm:$0xff] }
 0x341   : > { %2659 = vmatmul.mubr.f32.gmra.mrb[22].mxu1 %v2367_v1  ;;  %v2342_v62 = vmul.f32 %v6873_v28, %v2310_v41  ;;  %v2343_v30 = vmul.f32 %v6876_v8, %v2318_v60  ;;  %v2384_v11 = vld [vmem:[%s8887_s4 + $0x110] sm:$0xff]  ;;  %v2389_v49 = vld [vmem:[%s8887_s4 + $0x138] sm:$0xff] }
 0x342   : > { %4734 = vmatprep.subr.bf16.mxu1 %v4733_v24  ;;  %2664 = vmatprep.mubr.f32.mxu1 %v2373_v54 }
 0x343   : > { %4736 = vmatpush1.bf16.msra.mxu1 %v4735_v36  ;;  %v2287_v7 = vpop.permute.xlu1 %2286 }
 0x344   : > { %v2301_v32 = vpop.permute.xlu0 %2300 }
 0x345   : > { %v2311_v33 = vsel %vm1167_vm3, %v2285_v29, %v2301_v32  ;;  %v2319_v4 = vsel %vm1167_vm3, %v2301_v32, %v2285_v29  ;;  %2665 = vmatmul.mubr.f32.gmra.mrb[24].mxu1 %v2372_v26 }
 0x346   : > { %v2344_v53 = vmul.f32 %v6873_v28, %v2311_v33  ;;  %v2345_v18 = vmul.f32 %v6876_v8, %v2319_v4  ;;  %2670 = vmatprep.mubr.f32.mxu1 %v2378_v38 }
 0x347   : > { %v2303_v25 = vpop.permute.xlu1 %2302 }
 0x348   : > { %v4739_v15 = vpack.c.bf16 %v2344_v53, %v2342_v62  ;;  %v2289_v2 = vpop.permute.xlu0 %2288  ;;  %v4737_v3 = vpack.c.bf16 %v2345_v18, %v2343_v30  ;;  %v2312_v47 = vsel %vm1167_vm3, %v2287_v7, %v2303_v25  ;;  %v2320_v37 = vsel %vm1167_vm3, %v2303_v25, %v2287_v7 }
 0x349   : > { %2671 = vmatmul.mubr.f32.gmra.mrb[26].mxu1 %v2377_v51  ;;  %v2346_v44 = vmul.f32 %v6873_v28, %v2312_v47  ;;  %v2347_v19 = vmul.f32 %v6876_v8, %v2320_v37 }
 0x34a   : > { %4738 = vmatprep.subr.bf16.mxu1 %v4737_v3  ;;  %2676 = vmatprep.mubr.f32.mxu1 %v2383_v48 }
 0x34b   : > { %4740 = vmatpush1.bf16.msra.mxu1 %v4739_v15 }
 0x34c   : > { %v2305_v20 = vpop.permute.xlu0 %2304 }
 0x34d   : > { %v2313_v10 = vsel %vm1167_vm3, %v2289_v2, %v2305_v20  ;;  %v2321_v23 = vsel %vm1167_vm3, %v2305_v20, %v2289_v2  ;;  %2677 = vmatmul.mubr.f32.gmra.mrb[28].mxu1 %v2382_v12 }
 0x34e   : > { %v2348_v40 = vmul.f32 %v6873_v28, %v2313_v10  ;;  %v2349_v14 = vmul.f32 %v6876_v8, %v2321_v23  ;;  %2682 = vmatprep.mubr.f32.mxu1 %v2388_v61 }
 0x350   : > { %v4743_v50 = vpack.c.bf16 %v2348_v40, %v2346_v44  ;;  %v4741_v17 = vpack.c.bf16 %v2349_v14, %v2347_v19 }
 0x351   : > { %2683 = vmatmul.mubr.f32.gmra.mrb[30].mxu1 %v2387_v63 }
 0x352   : > { %4742 = vmatprep.subr.bf16.mxu1 %v4741_v17  ;;  %2753 = vmatprep.mubr.f32.mxu1 %v9029_v55 }
 0x353   : > { %4744 = vmatpush1.bf16.msra.mxu1 %v4743_v50 }
 0x356   : > { %4567 = vmatmul.mubr.msk.f32.vlgmr.msra.gmra.mrb[16].mxu1 %vm2438_vm5, %v2354_v21 }
 0x357   : > { %2759 = vmatprep.mubr.f32.mxu1 %v9029_v55 }
 0x358   : > { %v2401_v1 = vpop.permute.xlu1 %2400 }
 0x35a   : > { %4568 = vmatmul.mubr.msk.f32.gmra.mrb[18].mxu1 %vm2438_vm5, %v2359_v5 }
 0x35b   : > { %2765 = vmatprep.mubr.f32.mxu1 %v9029_v55 }
 0x35c   : > { %v2411_v44 = vpop.permute.xlu1 %2410 }
 0x35d   : > { %v2406_v41 = vpop.permute.xlu0 %2405 }
 0x35e   : > { %4569 = vmatmul.mubr.msk.f32.gmra.mrb[20].mxu1 %vm2438_vm5, %v2364_v57 }
 0x35f   : > { %2771 = vmatprep.mubr.f32.mxu1 %v9029_v55 }
 0x361   : > { %v2416_v40 = vpop.permute.xlu0 %2415 }
 0x362   : > { %4570 = vmatmul.mubr.msk.f32.gmra.mrb[22].mxu1 %vm2438_vm5, %v2369_v31 }
 0x363   : > { %2777 = vmatprep.mubr.f32.mxu1 %v9029_v55 }
 0x366   : > { %4571 = vmatmul.mubr.msk.f32.gmra.mrb[24].mxu1 %vm2438_vm5, %v2374_v58 }
 0x367   : > { %2783 = vmatprep.mubr.f32.mxu1 %v9029_v55 }
 0x36a   : > { %4572 = vmatmul.mubr.msk.f32.gmra.mrb[26].mxu1 %vm2438_vm5, %v2379_v0 }
 0x36b   : > { %2789 = vmatprep.mubr.f32.mxu1 %v9029_v55 }
 0x36e   : > { %4573 = vmatmul.mubr.msk.f32.gmra.mrb[28].mxu1 %vm2438_vm5, %v2384_v11 }
 0x36f   : > { %2795 = vmatprep.mubr.f32.mxu1 %v9029_v55 }
 0x372   : > { %4574 = vmatmul.mubr.msk.f32.gmra.mrb[30].mxu1 %vm2438_vm5, %v2389_v49  ;;  %v2421_v49 = vpop.permute.xlu1 %2420 }
 0x429   : > { %v2755_v36 = vpop.f32.mrb[16].mxu1 }
 0x42a   : > { %v4997_v29 = vadd.f32 %v2755_v36, %v2401_v1  ;;  %v2757_v24 = vpop.f32.mrb[17].mxu1  ;;  %v2426_v36 = vpop.permute.xlu0 %2425 }
 0x42b   : > { %v4998_v51 = vadd.f32 %v2757_v24, %v2401_v1 }
 0x42c   : > { %vm2802_vm6 = vcmp.ge.f32.partialorder %v4997_v29, 0.0  ;;  %v2818_v54 = vmul.f32 0.01, %v4997_v29 }
 0x42d   : > { %v2761_v60 = vpop.f32.mrb[18].mxu1  ;;  %v2819_v2 = vmul.f32 0.01, %v4998_v51  ;;  %vm2803_vm11 = vcmp.ge.f32.partialorder %v4998_v51, 0.0 }
 0x42e   : > { %v7011_v7 = vsel %vm2802_vm6, %v4997_v29, %v2818_v54  ;;  %v4999_v26 = vadd.f32 %v2761_v60, %v2406_v41  ;;  %v2763_v32 = vpop.f32.mrb[19].mxu1 }
 0x42f   : > { %9030 = vst [vmem:[#allocation13_spill] sm:$0xff] %v7011_v7  ;;  %2850 = vrot.lane.b32.xlu1 %v7011_v7, %s8982_s26  ;;  %v5000_v3 = vadd.f32 %v2763_v32, %v2406_v41  ;;  %v7043_v37 = vsel %vm2803_vm11, %v4998_v51, %v2819_v2  ;;  %v2436_v51 = vpop.permute.xlu0 %2435 }
 0x430   : > { %vm2804_vm10 = vcmp.ge.f32.partialorder %v4999_v26, 0.0  ;;  %v2820_v38 = vmul.f32 0.01, %v4999_v26  ;;  %9033 = vst [vmem:[#allocation4_spill] sm:$0xff] %v7043_v37 }
 0x431   : > { %v2767_v33 = vpop.f32.mrb[20].mxu1  ;;  %v2821_v12 = vmul.f32 0.01, %v5000_v3  ;;  %vm2805_vm14 = vcmp.ge.f32.partialorder %v5000_v3, 0.0 }
 0x432   : > { %v7015_v4 = vsel %vm2804_vm10, %v4999_v26, %v2820_v38  ;;  %v2769_v62 = vpop.f32.mrb[21].mxu1  ;;  %v5001_v19 = vadd.f32 %v2767_v33, %v2411_v44 }
 0x433   : > { %9031 = vst [vmem:[#allocation18_spill] sm:$0xff] %v7015_v4  ;;  %2914 = vrot.lane.b32.xlu1 %v7011_v7, %s8980_s27  ;;  %2852 = vrot.lane.b32.xlu0 %v7015_v4, %s8982_s26  ;;  %v7053_v10 = vsel %vm2805_vm14, %v5000_v3, %v2821_v12  ;;  %v5002_v5 = vadd.f32 %v2769_v62, %v2411_v44 }
 0x434   : > { %9034 = vst [vmem:[#allocation19_spill] sm:$0xff] %v7053_v10  ;;  %v2822_v14 = vmul.f32 0.01, %v5001_v19  ;;  %vm2806_vm0 = vcmp.ge.f32.partialorder %v5001_v19, 0.0 }
 0x435   : > { %v2773_v30 = vpop.f32.mrb[22].mxu1  ;;  %v2823_v57 = vmul.f32 0.01, %v5002_v5  ;;  %vm2807_vm6 = vcmp.ge.f32.partialorder %v5002_v5, 0.0 }
 0x436   : > { %v2775_v53 = vpop.f32.mrb[23].mxu1  ;;  %v5003_v63 = vadd.f32 %v2773_v30, %v2416_v40  ;;  %v7073_v50 = vsel %vm2806_vm0, %v5001_v19, %v2822_v14 }
 0x437   : > { %2978 = vrot.lane.b32.xlu1 %v7011_v7, %s8971_s30  ;;  %2916 = vrot.lane.b32.xlu0 %v7015_v4, %s8980_s27  ;;  %9035 = vst [vmem:[#allocation20_spill] sm:$0xff] %v7073_v50  ;;  %v5004_v31 = vadd.f32 %v2775_v53, %v2416_v40  ;;  %v7097_v58 = vsel %vm2807_vm6, %v5002_v5, %v2823_v57  ;;  %v2431_v53 = vpop.permute.xlu1 %2430 }
 0x438   : > { %v2824_v17 = vmul.f32 0.01, %v5003_v63  ;;  %vm2808_vm4 = vcmp.ge.f32.partialorder %v5003_v63, 0.0  ;;  %9037 = vst [vmem:[#allocation22_spill] sm:$0xff] %v7097_v58 }
 0x439   : > { %v7025_v18 = vpop.f32.mrb[24].mxu1  ;;  %v2825_v0 = vmul.f32 0.01, %v5004_v31  ;;  %vm2809_vm10 = vcmp.ge.f32.partialorder %v5004_v31, 0.0 }
 0x43a   : > { %v7027_v15 = vpop.f32.mrb[25].mxu1  ;;  %v7079_v21 = vsel %vm2808_vm4, %v5003_v63, %v2824_v17  ;;  %v5005_v1 = vadd.f32 %v7025_v18, %v2421_v49 }
 0x43b   : > { %3042 = vrot.lane.b32.xlu1 %v7011_v7, %s8969_s15  ;;  %2980 = vrot.lane.b32.xlu0 %v7015_v4, %s8971_s30  ;;  %9036 = vst [vmem:[#allocation21_spill] sm:$0xff] %v7079_v21  ;;  %v7103_v11 = vsel %vm2809_vm10, %v5004_v31, %v2825_v0  ;;  %v5006_v26 = vadd.f32 %v7027_v15, %v2421_v49 }
 0x43c   : > { %9038 = vst [vmem:[#allocation23_spill] sm:$0xff] %v7103_v11  ;;  %v2826_v29 = vmul.f32 0.01, %v5005_v1  ;;  %vm2810_vm11 = vcmp.ge.f32.partialorder %v5005_v1, 0.0 }
 0x43d   : > { %v7033_v25 = vpop.f32.mrb[26].mxu1  ;;  %v2827_v32 = vmul.f32 0.01, %v5006_v26  ;;  %vm2811_vm0 = vcmp.ge.f32.partialorder %v5006_v26, 0.0 }
 0x43e   : > { %v7035_v48 = vpop.f32.mrb[27].mxu1  ;;  %v5007_v24 = vadd.f32 %v7033_v25, %v2426_v36  ;;  %v7119_v54 = vsel %vm2810_vm11, %v5005_v1, %v2826_v29 }
 0x43f   : > { %3122 = vrot.lane.b32.xlu1 %v7011_v7, %s9032_s20  ;;  %3044 = vrot.lane.b32.xlu0 %v7015_v4, %s8969_s15  ;;  %9039 = vst [vmem:[#allocation24_spill] sm:$0xff] %v7119_v54  ;;  %v5008_v38 = vadd.f32 %v7035_v48, %v2426_v36  ;;  %v7141_v33 = vsel %vm2811_vm0, %v5006_v26, %v2827_v32 }
 0x440   : > { %v2828_v41 = vmul.f32 0.01, %v5007_v24  ;;  %vm2812_vm14 = vcmp.ge.f32.partialorder %v5007_v24, 0.0 }
 0x441   : > { %v7041_v47 = vpop.f32.mrb[28].mxu1  ;;  %v2829_v62 = vmul.f32 0.01, %v5008_v38  ;;  %vm2813_vm4 = vcmp.ge.f32.partialorder %v5008_v38, 0.0 }
 0x442   : > { %v7045_v20 = vpop.f32.mrb[29].mxu1  ;;  %v7125_v60 = vsel %vm2812_vm14, %v5007_v24, %v2828_v41  ;;  %v5009_v18 = vadd.f32 %v7041_v47, %v2431_v53 }
 0x443   : > { %2866 = vrot.lane.b32.xlu1 %v7043_v37, %s8982_s26  ;;  %3124 = vrot.lane.b32.xlu0 %v7015_v4, %s9032_s20  ;;  %v7147_v30 = vsel %vm2813_vm4, %v5008_v38, %v2829_v62  ;;  %v5010_v12 = vadd.f32 %v7045_v20, %v2431_v53  ;;  %v9042_v53 = vld [vmem:[#allocation7_spill] sm:$0xff] }
 0x444   : > { %v2830_v15 = vmul.f32 0.01, %v5009_v18  ;;  %vm2814_vm6 = vcmp.ge.f32.partialorder %v5009_v18, 0.0 }
 0x445   : > { %v7051_v61 = vpop.f32.mrb[30].mxu1  ;;  %v2831_v19 = vmul.f32 0.01, %v5010_v12  ;;  %vm2815_vm11 = vcmp.ge.f32.partialorder %v5010_v12, 0.0 }
 0x446   : > { %v7055_v23 = vpop.f32.mrb[31].mxu1  ;;  %v5011_v25 = vadd.f32 %v7051_v61, %v2436_v51  ;;  %v7163_v2 = vsel %vm2814_vm6, %v5009_v18, %v2830_v15 }
 0x447   : > { %2930 = vrot.lane.b32.xlu1 %v7043_v37, %s8980_s27  ;;  %2868 = vrot.lane.b32.xlu0 %v7053_v10, %s8982_s26  ;;  %v5012_v40 = vadd.f32 %v7055_v23, %v2436_v51  ;;  %v7191_v63 = vsel %vm2815_vm11, %v5010_v12, %v2831_v19 }
 0x448   : > { %v2832_v3 = vmul.f32 0.01, %v5011_v25  ;;  %vm2816_vm10 = vcmp.ge.f32.partialorder %v5011_v25, 0.0 }
 0x449   : > { %v2833_v17 = vmul.f32 0.01, %v5012_v40  ;;  %vm2817_vm14 = vcmp.ge.f32.partialorder %v5012_v40, 0.0 }
 0x44a   : > { %v7169_v48 = vsel %vm2816_vm10, %v5011_v25, %v2832_v3 }
 0x44b   : > { %2994 = vrot.lane.b32.xlu1 %v7043_v37, %s8971_s30  ;;  %2932 = vrot.lane.b32.xlu0 %v7053_v10, %s8980_s27  ;;  %v7201_v57 = vsel %vm2817_vm14, %v5012_v40, %v2833_v17 }
 0x44f   : > { %3058 = vrot.lane.b32.xlu1 %v7043_v37, %s8969_s15  ;;  %2996 = vrot.lane.b32.xlu0 %v7053_v10, %s8971_s30 }
 0x453   : > { %3138 = vrot.lane.b32.xlu1 %v7043_v37, %s9032_s20  ;;  %3060 = vrot.lane.b32.xlu0 %v7053_v10, %s8969_s15 }
 0x457   : > { %2854 = vrot.lane.b32.xlu1 %v7073_v50, %s8982_s26  ;;  %3140 = vrot.lane.b32.xlu0 %v7053_v10, %s9032_s20 }
 0x45b   : > { %2918 = vrot.lane.b32.xlu1 %v7073_v50, %s8980_s27  ;;  %2856 = vrot.lane.b32.xlu0 %v7079_v21, %s8982_s26 }
 0x45f   : > { %2982 = vrot.lane.b32.xlu1 %v7073_v50, %s8971_s30  ;;  %2920 = vrot.lane.b32.xlu0 %v7079_v21, %s8980_s27 }
 0x463   : > { %3046 = vrot.lane.b32.xlu1 %v7073_v50, %s8969_s15  ;;  %2984 = vrot.lane.b32.xlu0 %v7079_v21, %s8971_s30 }
 0x467   : > { %3126 = vrot.lane.b32.xlu1 %v7073_v50, %s9032_s20  ;;  %3048 = vrot.lane.b32.xlu0 %v7079_v21, %s8969_s15 }
 0x46b   : > { %2870 = vrot.lane.b32.xlu1 %v7097_v58, %s8982_s26  ;;  %3128 = vrot.lane.b32.xlu0 %v7079_v21, %s9032_s20 }
 0x46f   : > { %2934 = vrot.lane.b32.xlu1 %v7097_v58, %s8980_s27  ;;  %2872 = vrot.lane.b32.xlu0 %v7103_v11, %s8982_s26 }
 0x473   : > { %2998 = vrot.lane.b32.xlu1 %v7097_v58, %s8971_s30  ;;  %2936 = vrot.lane.b32.xlu0 %v7103_v11, %s8980_s27 }
 0x477   : > { %3062 = vrot.lane.b32.xlu1 %v7097_v58, %s8969_s15  ;;  %3000 = vrot.lane.b32.xlu0 %v7103_v11, %s8971_s30 }
 0x47b   : > { %2858 = vrot.lane.b32.xlu1 %v7119_v54, %s8982_s26  ;;  %3064 = vrot.lane.b32.xlu0 %v7103_v11, %s8969_s15 }
 0x47f   : > { %2922 = vrot.lane.b32.xlu1 %v7119_v54, %s8980_s27  ;;  %2860 = vrot.lane.b32.xlu0 %v7125_v60, %s8982_s26 }
 0x483   : > { %2986 = vrot.lane.b32.xlu1 %v7119_v54, %s8971_s30  ;;  %2924 = vrot.lane.b32.xlu0 %v7125_v60, %s8980_s27 }
 0x487   : > { %3050 = vrot.lane.b32.xlu1 %v7119_v54, %s8969_s15  ;;  %2988 = vrot.lane.b32.xlu0 %v7125_v60, %s8971_s30 }
 0x48b   : > { %2874 = vrot.lane.b32.xlu1 %v7141_v33, %s8982_s26  ;;  %3052 = vrot.lane.b32.xlu0 %v7125_v60, %s8969_s15 }
 0x48f   : > { %2938 = vrot.lane.b32.xlu1 %v7141_v33, %s8980_s27  ;;  %2876 = vrot.lane.b32.xlu0 %v7147_v30, %s8982_s26 }
 0x493   : > { %3002 = vrot.lane.b32.xlu1 %v7141_v33, %s8971_s30  ;;  %2940 = vrot.lane.b32.xlu0 %v7147_v30, %s8980_s27 }
 0x497   : > { %3066 = vrot.lane.b32.xlu1 %v7141_v33, %s8969_s15  ;;  %3004 = vrot.lane.b32.xlu0 %v7147_v30, %s8971_s30 }
 0x49b   : > { %2862 = vrot.lane.b32.xlu1 %v7163_v2, %s8982_s26  ;;  %3068 = vrot.lane.b32.xlu0 %v7147_v30, %s8969_s15 }
 0x49f   : > { %2926 = vrot.lane.b32.xlu1 %v7163_v2, %s8980_s27  ;;  %2864 = vrot.lane.b32.xlu0 %v7169_v48, %s8982_s26 }
 0x4a1   : > { %v2851_v47 = vpop.permute.xlu1 %2850 }
 0x4a3   : > { %2990 = vrot.lane.b32.xlu1 %v7163_v2, %s8971_s30  ;;  %2928 = vrot.lane.b32.xlu0 %v7169_v48, %s8980_s27 }
 0x4a5   : > { %v7180_v61 = vpop.permute.xlu1 %2914  ;;  %v2853_v44 = vpop.permute.xlu0 %2852 }
 0x4a7   : > { %3054 = vrot.lane.b32.xlu1 %v7163_v2, %s8969_s15  ;;  %2992 = vrot.lane.b32.xlu0 %v7169_v48, %s8971_s30 }
 0x4a9   : > { %v7187_v20 = vpop.permute.xlu1 %2978  ;;  %v7189_v14 = vpop.permute.xlu0 %2916 }
 0x4ab   : > { %2878 = vrot.lane.b32.xlu1 %v7191_v63, %s8982_s26  ;;  %3056 = vrot.lane.b32.xlu0 %v7169_v48, %s8969_s15 }
 0x4ad   : > { %v7197_v23 = vpop.permute.xlu1 %3042  ;;  %v7199_v5 = vpop.permute.xlu0 %2980 }
 0x4af   : > { %3142 = vrot.lane.b32.xlu1 %v7097_v58, %s9032_s20  ;;  %2880 = vrot.lane.b32.xlu0 %v7201_v57, %s8982_s26 }
 0x4b1   : > { %v7207_v31 = vpop.permute.xlu1 %3122  ;;  %v7209_v0 = vpop.permute.xlu0 %3044 }
 0x4b2   : > { %9040 = vst [vmem:[#allocation25_spill] sm:$0xff] %v7207_v31 }
 0x4b3   : > { %2942 = vrot.lane.b32.xlu1 %v7191_v63, %s8980_s27  ;;  %3144 = vrot.lane.b32.xlu0 %v7103_v11, %s9032_s20 }
 0x4b5   : > { %v2867_v49 = vpop.permute.xlu1 %2866  ;;  %v7215_v1 = vpop.permute.xlu0 %3124 }
 0x4b6   : > { %9041 = vst [vmem:[#allocation26_spill] sm:$0xff] %v7215_v1  ;;  %v2882_v36 = vsel %vm688_vm7, %v2851_v47, %v2867_v49  ;;  %v2890_v32 = vsel %vm688_vm7, %v2867_v49, %v2851_v47 }
 0x4b7   : > { %3006 = vrot.lane.b32.xlu1 %v7191_v63, %s8971_s30  ;;  %3132 = vrot.lane.b32.xlu0 %v7125_v60, %s9032_s20  ;;  %v2899_v38 = vmul.f32 %v2882_v36, %v5943_v6  ;;  %v2898_v3 = vmul.f32 %v2890_v32, %v9042_v53 }
 0x4b9   : > { %v7223_v29 = vpop.permute.xlu1 %2930  ;;  %v2869_v24 = vpop.permute.xlu0 %2868 }
 0x4ba   : > { %v2891_v41 = vsel %vm688_vm7, %v2869_v24, %v2853_v44  ;;  %v2883_v26 = vsel %vm688_vm7, %v2853_v44, %v2869_v24 }
 0x4bb   : > { %3070 = vrot.lane.b32.xlu1 %v7191_v63, %s8969_s15  ;;  %3148 = vrot.lane.b32.xlu0 %v7147_v30, %s9032_s20  ;;  %v2901_v62 = vmul.f32 %v2883_v26, %v5943_v6  ;;  %v2900_v18 = vmul.f32 %v2891_v41, %v9042_v53 }
 0x4bd   : > { %v7238_v51 = vpop.permute.xlu1 %2994  ;;  %v7240_v15 = vpop.permute.xlu0 %2932  ;;  %v4745_v25 = vpack.c.bf16 %v2901_v62, %v2899_v38  ;;  %v4747_v47 = vpack.c.bf16 %v2900_v18, %v2898_v3 }
 0x4bf   : > { %3130 = vrot.lane.b32.xlu1 %v7119_v54, %s9032_s20  ;;  %2944 = vrot.lane.b32.xlu0 %v7201_v57, %s8980_s27 }
 0x4c0   : > { %4746 = vmatprep.subr.bf16.mxu0 %v4745_v25  ;;  %v3379_v25 = vld [vmem:[%s8889_s6 + $0x8] sm:$0xff] }
 0x4c1   : > { %v7247_v12 = vpop.permute.xlu1 %3058  ;;  %v7249_v44 = vpop.permute.xlu0 %2996  ;;  %4748 = vmatpush1.bf16.msra.mxu0 %v4747_v47  ;;  %3498 = vmatprep.mubr.f32.mxu0 %v3379_v25 }
 0x4c3   : > { %3146 = vrot.lane.b32.xlu1 %v7141_v33, %s9032_s20  ;;  %3136 = vrot.lane.b32.xlu0 %v7169_v48, %s9032_s20 }
 0x4c5   : > { %v7255_v19 = vpop.permute.xlu1 %3138  ;;  %v7257_v40 = vpop.permute.xlu0 %3060 }
 0x4c6   : > { %9043 = vst [vmem:[#allocation7_spill] sm:$0xff] %v7255_v19 }
 0x4c7   : > { %3134 = vrot.lane.b32.xlu1 %v7163_v2, %s9032_s20  ;;  %3188 = vrot.lane.b32.xlu0 %v7015_v4, %s9044_s17 }
 0x4c9   : > { %v2855_v17 = vpop.permute.xlu1 %2854  ;;  %v7263_v49 = vpop.permute.xlu0 %3140 }
 0x4ca   : > { %9045 = vst [vmem:[#allocation27_spill] sm:$0xff] %v7263_v49 }
 0x4cb   : > { %3150 = vrot.lane.b32.xlu1 %v7191_v63, %s9032_s20  ;;  %3204 = vrot.lane.b32.xlu0 %v7053_v10, %s9044_s17 }
 0x4cd   : > { %v7269_v36 = vpop.permute.xlu1 %2918  ;;  %v2857_v24 = vpop.permute.xlu0 %2856 }
 0x4cf   : > { %3186 = vrot.lane.b32.xlu1 %v7011_v7, %s9044_s17  ;;  %3008 = vrot.lane.b32.xlu0 %v7201_v57, %s8971_s30  ;;  %s9091_s30 = smov 15  }
 0x4d1   : > { %v7275_v41 = vpop.permute.xlu1 %2982  ;;  %v7277_v26 = vpop.permute.xlu0 %2920 }
 0x4d3   : > { %3202 = vrot.lane.b32.xlu1 %v7043_v37, %s9044_s17  ;;  %3192 = vrot.lane.b32.xlu0 %v7079_v21, %s9044_s17 }
 0x4d5   : > { %v7283_v32 = vpop.permute.xlu1 %3046  ;;  %v7285_v38 = vpop.permute.xlu0 %2984 }
 0x4d6   : > { %9046 = vst [vmem:[#allocation28_spill] sm:$0xff] %v7283_v32 }
 0x4d7   : > { %3190 = vrot.lane.b32.xlu1 %v7073_v50, %s9044_s17  ;;  %3208 = vrot.lane.b32.xlu0 %v7103_v11, %s9044_s17 }
 0x4d9   : > { %v7291_v62 = vpop.permute.xlu1 %3126  ;;  %v7293_v18 = vpop.permute.xlu0 %3048 }
 0x4da   : > { %9047 = vst [vmem:[#allocation29_spill] sm:$0xff] %v7291_v62 }
 0x4db   : > { %3206 = vrot.lane.b32.xlu1 %v7097_v58, %s9044_s17  ;;  %3196 = vrot.lane.b32.xlu0 %v7125_v60, %s9044_s17 }
 0x4dd   : > { %v2871_v3 = vpop.permute.xlu1 %2870  ;;  %v7302_v47 = vpop.permute.xlu0 %3128 }
 0x4de   : > { %9048 = vst [vmem:[#allocation30_spill] sm:$0xff] %v7302_v47  ;;  %v2884_v55 = vsel %vm688_vm7, %v2855_v17, %v2871_v3  ;;  %v2892_v28 = vsel %vm688_vm7, %v2871_v3, %v2855_v17 }
 0x4df   : > { %3194 = vrot.lane.b32.xlu1 %v7119_v54, %s9044_s17  ;;  %3072 = vrot.lane.b32.xlu0 %v7201_v57, %s8969_s15  ;;  %v2902_v56 = vmul.f32 %v2892_v28, %v9042_v53  ;;  %v2903_v39 = vmul.f32 %v2884_v55, %v5943_v6  ;;  %s9092_s15 = smov 1  }
 0x4e1   : > { %v7312_v8 = vpop.permute.xlu1 %2934  ;;  %v2873_v25 = vpop.permute.xlu0 %2872 }
 0x4e2   : > { %v2885_v34 = vsel %vm688_vm7, %v2857_v24, %v2873_v25  ;;  %v2893_v9 = vsel %vm688_vm7, %v2873_v25, %v2857_v24 }
 0x4e3   : > { %v2904_v62 = vmul.f32 %v2893_v9, %v9042_v53  ;;  %v2905_v17 = vmul.f32 %v2885_v34, %v5943_v6  ;;  %3210 = vrot.lane.b32.xlu1 %v7141_v33, %s9044_s17  ;;  %3212 = vrot.lane.b32.xlu0 %v7147_v30, %s9044_s17 }
 0x4e5   : > { %v7326_v3 = vpop.permute.xlu1 %2998  ;;  %v7328_v52 = vpop.permute.xlu0 %2936  ;;  %v4749_v47 = vpack.c.bf16 %v2905_v17, %v2903_v39  ;;  %v4751_v24 = vpack.c.bf16 %v2904_v62, %v2902_v56 }
 0x4e7   : > { %3198 = vrot.lane.b32.xlu1 %v7163_v2, %s9044_s17  ;;  %3200 = vrot.lane.b32.xlu0 %v7169_v48, %s9044_s17 }
 0x4e8   : > { %4750 = vmatprep.subr.bf16.mxu0 %v4749_v47 }
 0x4e9   : > { %4752 = vmatpush1.bf16.msra.mxu0 %v4751_v24  ;;  %v7334_v9 = vpop.permute.xlu1 %3062  ;;  %v7336_v34 = vpop.permute.xlu0 %3000 }
 0x4ea   : > { %9049 = vst [vmem:[#allocation31_spill] sm:$0xff] %v7334_v9 }
 0x4eb   : > { %3214 = vrot.lane.b32.xlu1 %v7191_v63, %s9044_s17  ;;  %3252 = vrot.lane.b32.xlu0 %v7015_v4, %s8996_s13 }
 0x4ed   : > { %v2859_v39 = vpop.permute.xlu1 %2858  ;;  %v7342_v56 = vpop.permute.xlu0 %3064 }
 0x4ef   : > { %3250 = vrot.lane.b32.xlu1 %v7011_v7, %s8996_s13  ;;  %3268 = vrot.lane.b32.xlu0 %v7053_v10, %s8996_s13 }
 0x4f1   : > { %v7348_v28 = vpop.permute.xlu1 %2922  ;;  %v2861_v55 = vpop.permute.xlu0 %2860 }
 0x4f3   : > { %3266 = vrot.lane.b32.xlu1 %v7043_v37, %s8996_s13  ;;  %3256 = vrot.lane.b32.xlu0 %v7079_v21, %s8996_s13 }
 0x4f5   : > { %v7354_v62 = vpop.permute.xlu1 %2986  ;;  %v7356_v47 = vpop.permute.xlu0 %2924 }
 0x4f7   : > { %3254 = vrot.lane.b32.xlu1 %v7073_v50, %s8996_s13  ;;  %3272 = vrot.lane.b32.xlu0 %v7103_v11, %s8996_s13 }
 0x4f9   : > { %v7362_v25 = vpop.permute.xlu1 %3050  ;;  %v7364_v17 = vpop.permute.xlu0 %2988 }
 0x4fa   : > { %9050 = vst [vmem:[#allocation32_spill] sm:$0xff] %v7362_v25 }
 0x4fb   : > { %3270 = vrot.lane.b32.xlu1 %v7097_v58, %s8996_s13  ;;  %3260 = vrot.lane.b32.xlu0 %v7125_v60, %s8996_s13 }
 0x4fd   : > { %v2875_v24 = vpop.permute.xlu1 %2874  ;;  %v7370_v43 = vpop.permute.xlu0 %3052 }
 0x4fe   : > { %9051 = vst [vmem:[#allocation33_spill] sm:$0xff] %v7370_v43  ;;  %v2886_v19 = vsel %vm688_vm7, %v2859_v39, %v2875_v24  ;;  %v2894_v31 = vsel %vm688_vm7, %v2875_v24, %v2859_v39 }
 0x4ff   : > { %3258 = vrot.lane.b32.xlu1 %v7119_v54, %s8996_s13  ;;  %3152 = vrot.lane.b32.xlu0 %v7201_v57, %s9032_s20  ;;  %v2906_v25 = vmul.f32 %v2894_v31, %v9042_v53  ;;  %v2907_v43 = vmul.f32 %v2886_v19, %v5943_v6 }
 0x501   : > { %v7380_v49 = vpop.permute.xlu1 %2938  ;;  %v2877_v1 = vpop.permute.xlu0 %2876 }
 0x502   : > { %v2887_v16 = vsel %vm688_vm7, %v2861_v55, %v2877_v1  ;;  %v2895_v42 = vsel %vm688_vm7, %v2877_v1, %v2861_v55 }
 0x503   : > { %v2908_v32 = vmul.f32 %v2895_v42, %v9042_v53  ;;  %v2909_v39 = vmul.f32 %v2887_v16, %v5943_v6  ;;  %3274 = vrot.lane.b32.xlu1 %v7141_v33, %s8996_s13  ;;  %3276 = vrot.lane.b32.xlu0 %v7147_v30, %s8996_s13 }
 0x505   : > { %v7394_v24 = vpop.permute.xlu1 %3002  ;;  %v7396_v9 = vpop.permute.xlu0 %2940  ;;  %v4753_v35 = vpack.c.bf16 %v2909_v39, %v2907_v43  ;;  %v4755_v1 = vpack.c.bf16 %v2908_v32, %v2906_v25 }
 0x507   : > { %3262 = vrot.lane.b32.xlu1 %v7163_v2, %s8996_s13  ;;  %3264 = vrot.lane.b32.xlu0 %v7169_v48, %s8996_s13 }
 0x508   : > { %4754 = vmatprep.subr.bf16.mxu0 %v4753_v35 }
 0x509   : > { %4756 = vmatpush1.bf16.msra.mxu0 %v4755_v1  ;;  %v7402_v42 = vpop.permute.xlu1 %3066  ;;  %v7404_v16 = vpop.permute.xlu0 %3004 }
 0x50a   : > { %9052 = vst [vmem:[#allocation34_spill] sm:$0xff] %v7402_v42 }
 0x50b   : > { %3278 = vrot.lane.b32.xlu1 %v7191_v63, %s8996_s13  ;;  %3316 = vrot.lane.b32.xlu0 %v7015_v4, %s9002_s14 }
 0x50d   : > { %v2863_v43 = vpop.permute.xlu1 %2862  ;;  %v7410_v31 = vpop.permute.xlu0 %3068 }
 0x50f   : > { %3314 = vrot.lane.b32.xlu1 %v7011_v7, %s9002_s14  ;;  %3216 = vrot.lane.b32.xlu0 %v7201_v57, %s9044_s17 }
 0x511   : > { %v7416_v35 = vpop.permute.xlu1 %2926  ;;  %v2865_v19 = vpop.permute.xlu0 %2864 }
 0x513   : > { %3330 = vrot.lane.b32.xlu1 %v7043_v37, %s9002_s14  ;;  %3332 = vrot.lane.b32.xlu0 %v7053_v10, %s9002_s14 }
 0x515   : > { %v7422_v32 = vpop.permute.xlu1 %2990  ;;  %v7424_v55 = vpop.permute.xlu0 %2928 }
 0x517   : > { %3318 = vrot.lane.b32.xlu1 %v7073_v50, %s9002_s14  ;;  %3320 = vrot.lane.b32.xlu0 %v7079_v21, %s9002_s14 }
 0x519   : > { %v7430_v25 = vpop.permute.xlu1 %3054  ;;  %v7432_v39 = vpop.permute.xlu0 %2992 }
 0x51a   : > { %9053 = vst [vmem:[#allocation35_spill] sm:$0xff] %v7430_v25  ;;  %v2955_v25 = vsel %vm731_vm8, %v7240_v15, %v7189_v14 }
 0x51b   : > { %3334 = vrot.lane.b32.xlu1 %v7097_v58, %s9002_s14  ;;  %3336 = vrot.lane.b32.xlu0 %v7103_v11, %s9002_s14  ;;  %v2947_v58 = vsel %vm731_vm8, %v7189_v14, %v7240_v15  ;;  %v2954_v14 = vsel %vm731_vm8, %v7223_v29, %v7180_v61  ;;  %v2964_v15 = vmul.f32 %v2955_v25, %v6184_v59 }
 0x51c   : > { %v2965_v42 = vmul.f32 %v2947_v58, %v6154_v46 }
 0x51d   : > { %v2879_v1 = vpop.permute.xlu1 %2878  ;;  %v7438_v7 = vpop.permute.xlu0 %3056 }
 0x51e   : > { %9054 = vst [vmem:[#allocation36_spill] sm:$0xff] %v7438_v7  ;;  %v2888_v50 = vsel %vm688_vm7, %v2863_v43, %v2879_v1  ;;  %v2896_v21 = vsel %vm688_vm7, %v2879_v1, %v2863_v43 }
 0x51f   : > { %3322 = vrot.lane.b32.xlu1 %v7119_v54, %s9002_s14  ;;  %3280 = vrot.lane.b32.xlu0 %v7201_v57, %s8996_s13  ;;  %v2946_v54 = vsel %vm731_vm8, %v7180_v61, %v7223_v29  ;;  %v2910_v1 = vmul.f32 %v2896_v21, %v9042_v53  ;;  %v2911_v10 = vmul.f32 %v2888_v50, %v5943_v6 }
 0x520   : > { %v2963_v58 = vmul.f32 %v2946_v54, %v6154_v46  ;;  %v2962_v54 = vmul.f32 %v2954_v14, %v6184_v59  ;;  %v2951_v61 = vsel %vm731_vm8, %v7356_v47, %v7396_v9 }
 0x521   : > { %v7452_v11 = vpop.permute.xlu1 %3142  ;;  %v2881_v4 = vpop.permute.xlu0 %2880 }
 0x522   : > { %9055 = vst [vmem:[#allocation37_spill] sm:$0xff] %v7452_v11  ;;  %v2889_v37 = vsel %vm688_vm7, %v2865_v19, %v2881_v4  ;;  %v2897_v43 = vsel %vm688_vm7, %v2881_v4, %v2865_v19  ;;  %v2949_v4 = vsel %vm731_vm8, %v7277_v26, %v7328_v52 }
 0x523   : > { %v2912_v7 = vmul.f32 %v2897_v43, %v9042_v53  ;;  %v2913_v11 = vmul.f32 %v2889_v37, %v5943_v6  ;;  %3338 = vrot.lane.b32.xlu1 %v7141_v33, %s9002_s14  ;;  %3324 = vrot.lane.b32.xlu0 %v7125_v60, %s9002_s14  ;;  %v2948_v43 = vsel %vm731_vm8, %v7269_v36, %v7312_v8 }
 0x525   : > { %v2943_v50 = vpop.permute.xlu1 %2942  ;;  %v7479_v37 = vpop.permute.xlu0 %3144  ;;  %v4757_v21 = vpack.c.bf16 %v2913_v11, %v2911_v10  ;;  %v4759_v19 = vpack.c.bf16 %v2912_v7, %v2910_v1  ;;  %v2957_v7 = vsel %vm731_vm8, %v7328_v52, %v7277_v26  ;;  %v2969_v10 = vmul.f32 %v2949_v4, %v6154_v46 }
 0x526   : > { %v4761_v11 = vpack.c.bf16 %v2965_v42, %v2963_v58  ;;  %v2956_v52 = vsel %vm731_vm8, %v7312_v8, %v7269_v36  ;;  %v2967_v26 = vmul.f32 %v2948_v43, %v6154_v46  ;;  %v2968_v42 = vmul.f32 %v2957_v7, %v6184_v59 }
 0x527   : > { %3326 = vrot.lane.b32.xlu1 %v7163_v2, %s9002_s14  ;;  %3340 = vrot.lane.b32.xlu0 %v7147_v30, %s9002_s14  ;;  %v2950_v1 = vsel %vm731_vm8, %v7348_v28, %v7380_v49  ;;  %v4763_v4 = vpack.c.bf16 %v2964_v15, %v2962_v54  ;;  %v2973_v8 = vmul.f32 %v2951_v61, %v6154_v46 }
 0x528   : > { %4758 = vmatprep.subr.bf16.mxu0 %v4757_v21  ;;  %v2959_v21 = vsel %vm731_vm8, %v7396_v9, %v7356_v47  ;;  %v4765_v36 = vpack.c.bf16 %v2969_v10, %v2967_v26  ;;  %v2966_v14 = vmul.f32 %v2956_v52, %v6184_v59  ;;  %v2958_v9 = vsel %vm731_vm8, %v7380_v49, %v7348_v28  ;;  %v3400_v49 = vld [vmem:[%s8890_s7 + $0x10] sm:$0xff]  ;;  %v3399_v26 = vld [vmem:[%s8890_s7 + $0x8] sm:$0xff] }
 0x529   : > { %4760 = vmatpush1.bf16.msra.mxu0 %v4759_v19  ;;  %v7505_v29 = vpop.permute.xlu1 %3006  ;;  %v7507_v25 = vpop.permute.xlu0 %3132  ;;  %v3398_v19 = vld [vmem:[%s8890_s7] sm:$0xff]  ;;  %v2971_v47 = vmul.f32 %v2950_v1, %v6154_v46  ;;  %v2972_v43 = vmul.f32 %v2959_v21, %v6184_v59  ;;  %v3011_v10 = vsel %vm774_vm9, %v7199_v5, %v7249_v44  ;;  %v2970_v28 = vmul.f32 %v2958_v9, %v6184_v59 }
 0x52a   : > { %4762 = vmatprep.subr.bf16.mxu0 %v4761_v11  ;;  %v4767_v7 = vpack.c.bf16 %v2968_v42, %v2966_v14  ;;  %v2952_v54 = vsel %vm731_vm8, %v7416_v35, %v2943_v50  ;;  %v2960_v61 = vsel %vm731_vm8, %v2943_v50, %v7416_v35  ;;  %v3010_v42 = vsel %vm774_vm9, %v7187_v20, %v7238_v51 }
 0x52b   : > { %3342 = vrot.lane.b32.xlu1 %v7191_v63, %s9002_s14  ;;  %3328 = vrot.lane.b32.xlu0 %v7169_v48, %s9002_s14  ;;  %v4769_v11 = vpack.c.bf16 %v2973_v8, %v2971_v47  ;;  %v3019_v1 = vsel %vm774_vm9, %v7249_v44, %v7199_v5  ;;  %v3029_v35 = vmul.f32 %v3011_v10, %v6256_v45 }
 0x52c   : > { %v4771_v8 = vpack.c.bf16 %v2972_v43, %v2970_v28  ;;  %v3013_v14 = vsel %vm774_vm9, %v7285_v38, %v7336_v34  ;;  %v3018_v47 = vsel %vm774_vm9, %v7238_v51, %v7187_v20  ;;  %v3027_v43 = vmul.f32 %v3010_v42, %v6256_v45 }
 0x52d   : > { %4764 = vmatpush1.bf16.msra.mxu0 %v4763_v4  ;;  %v7532_v58 = vpop.permute.xlu1 %3070  ;;  %v7534_v15 = vpop.permute.xlu0 %3148  ;;  %v3012_v28 = vsel %vm774_vm9, %v7275_v41, %v7326_v3  ;;  %v3033_v20 = vmul.f32 %v3013_v14, %v6256_v45  ;;  %v3075_v14 = vsel %vm903_vm12, %v7209_v0, %v7257_v40 }
 0x52e   : > { %4766 = vmatprep.subr.bf16.mxu0 %v4765_v36  ;;  %v2974_v36 = vmul.f32 %v2960_v61, %v6184_v59  ;;  %v4777_v51 = vpack.c.bf16 %v3029_v35, %v3027_v43  ;;  %v3026_v61 = vmul.f32 %v3018_v47, %v6297_v27  ;;  %v3014_v35 = vsel %vm774_vm9, %v7354_v62, %v7394_v24 }
 0x52f   : > { %3404 = vperm.xlu1 %5129, %v3398_v19   ;;  %3344 = vrot.lane.b32.xlu0 %v7201_v57, %s9002_s14  ;;  %v2975_v19 = vmul.f32 %v2952_v54, %v6154_v46  ;;  %v3021_v54 = vsel %vm774_vm9, %v7336_v34, %v7285_v38  ;;  %v3020_v38 = vsel %vm774_vm9, %v7326_v3, %v7275_v41 }
 0x530   : > { %v3031_v34 = vmul.f32 %v3012_v28, %v6256_v45  ;;  %v3093_v28 = vmul.f32 %v3075_v14, %v6388_v22 }
 0x531   : > { %4768 = vmatpush1.bf16.msra.mxu0 %v4767_v7  ;;  %v7558_v52 = vpop.permute.xlu1 %3130  ;;  %v2945_v4 = vpop.permute.xlu0 %2944 }
 0x532   : > { %4770 = vmatprep.subr.bf16.mxu0 %v4769_v11  ;;  %v2953_v50 = vsel %vm731_vm8, %v7424_v55, %v2945_v4  ;;  %v2961_v21 = vsel %vm731_vm8, %v2945_v4, %v7424_v55  ;;  %v3401_v55 = vld [vmem:[%s8890_s7 + $0x18] sm:$0xff]  ;;  %v3032_v4 = vmul.f32 %v3021_v54, %v6297_v27  ;;  %v4781_v3 = vpack.c.bf16 %v3033_v20, %v3031_v34 }
 0x533   : > { %3414 = vperm.xlu1 %5129, %v3400_v49   ;;  %v2976_v5 = vmul.f32 %v2961_v21, %v6184_v59  ;;  %v2977_v44 = vmul.f32 %v2953_v50, %v6154_v46  ;;  %3409 = vperm.xlu0 %5128, %v3399_v26   ;;  %v3028_v49 = vmul.f32 %v3019_v1, %v6297_v27 }
 0x534   : > { %v3015_v26 = vsel %vm774_vm9, %v7364_v17, %v7404_v16  ;;  %v3023_v21 = vsel %vm774_vm9, %v7404_v16, %v7364_v17 }
 0x535   : > { %4772 = vmatpush1.bf16.msra.mxu0 %v4771_v8  ;;  %v7586_v9 = vpop.permute.xlu1 %3146  ;;  %v7596_v7 = vpop.permute.xlu0 %3136  ;;  %v4773_v10 = vpack.c.bf16 %v2977_v44, %v2975_v19  ;;  %v4775_v11 = vpack.c.bf16 %v2976_v5, %v2974_v36  ;;  %v4779_v50 = vpack.c.bf16 %v3028_v49, %v3026_v61  ;;  %v3037_v41 = vmul.f32 %v3015_v26, %v6256_v45 }
 0x536   : > { %v3030_v8 = vmul.f32 %v3020_v38, %v6297_v27  ;;  %v3022_v19 = vsel %vm774_vm9, %v7394_v24, %v7354_v62  ;;  %v3035_v5 = vmul.f32 %v3014_v35, %v6256_v45  ;;  %v3036_v17 = vmul.f32 %v3023_v21, %v6297_v27 }
 0x537   : > { %3419 = vperm.xlu0 %5128, %v3401_v55   ;;  %4774 = vmatprep.subr.bf16.mxu0 %v4773_v10  ;;  %v3034_v47 = vmul.f32 %v3022_v19, %v6297_v27  ;;  %v3016_v62 = vsel %vm774_vm9, %v7422_v32, %v7505_v29  ;;  %v3024_v24 = vsel %vm774_vm9, %v7505_v29, %v7422_v32 }
 0x538   : > { %v4783_v16 = vpack.c.bf16 %v3032_v4, %v3030_v8  ;;  %v4785_v55 = vpack.c.bf16 %v3037_v41, %v3035_v5  ;;  %v3074_v10 = vsel %vm903_vm12, %v7197_v23, %v7247_v12  ;;  %v3038_v20 = vmul.f32 %v3024_v24, %v6297_v27  ;;  %v9057_v41 = vld [vmem:[#allocation31_spill] sm:$0xff]  ;;  %v9061_v24 = vld [vmem:[#allocation32_spill] sm:$0xff] }
 0x539   : > { %4776 = vmatpush1.bf16.msra.mxu0 %v4775_v11  ;;  %v7613_v42 = vpop.permute.xlu1 %3134  ;;  %v7620_v1 = vpop.permute.xlu0 %3188  ;;  %v3083_v11 = vsel %vm903_vm12, %v7257_v40, %v7209_v0  ;;  %v4787_v54 = vpack.c.bf16 %v3036_v17, %v3034_v47  ;;  %v3077_v40 = vsel %vm903_vm12, %v7293_v18, %v7342_v56  ;;  %v3091_v38 = vmul.f32 %v3074_v10, %v6388_v22  ;;  %v9059_v17 = vld [vmem:[#allocation33_spill] sm:$0xff] }
 0x53a   : > { %4778 = vmatprep.subr.bf16.mxu0 %v4777_v51  ;;  %v3039_v51 = vmul.f32 %v3016_v62, %v6256_v45  ;;  %v3085_v19 = vsel %vm903_vm12, %v7342_v56, %v7293_v18  ;;  %v9060_v62 = vld [vmem:[#allocation34_spill] sm:$0xff] }
 0x53b   : > { %v3078_v10 = vsel %vm903_vm12, %v9061_v24, %v9060_v62 }
 0x53d   : > { %4780 = vmatpush1.bf16.msra.mxu0 %v4779_v50  ;;  %v7633_v36 = vpop.permute.xlu1 %3150  ;;  %v7640_v44 = vpop.permute.xlu0 %3204  ;;  %v9056_v50 = vld [vmem:[#allocation5_spill] sm:$0xff] }
 0x53e   : > { %4782 = vmatprep.subr.bf16.mxu0 %v4781_v3  ;;  %v3092_v21 = vmul.f32 %v3083_v11, %v9056_v50  ;;  %v9058_v3 = vld [vmem:[#allocation28_spill] sm:$0xff]  ;;  %v3096_v47 = vmul.f32 %v3085_v19, %v9056_v50 }
 0x53f   : > { %v3076_v8 = vsel %vm903_vm12, %v9058_v3, %v9057_v41 }
 0x540   : > { %v3095_v18 = vmul.f32 %v3076_v8, %v6388_v22 }
 0x541   : > { %4784 = vmatpush1.bf16.msra.mxu0 %v4783_v16  ;;  %v7656_v43 = vpop.permute.xlu1 %3186  ;;  %v3009_v49 = vpop.permute.xlu0 %3008  ;;  %v3079_v16 = vsel %vm903_vm12, %v9059_v17, %v7410_v31 }
 0x542   : > { %4786 = vmatprep.subr.bf16.mxu0 %v4785_v55  ;;  %v3017_v32 = vsel %vm774_vm9, %v7432_v39, %v3009_v49  ;;  %v3025_v29 = vsel %vm774_vm9, %v3009_v49, %v7432_v39  ;;  %v3082_v39 = vsel %vm903_vm12, %v7247_v12, %v7197_v23  ;;  %v3097_v23 = vmul.f32 %v3077_v40, %v6388_v22 }
 0x543   : > { %v3040_v61 = vmul.f32 %v3025_v29, %v6297_v27  ;;  %v3041_v0 = vmul.f32 %v3017_v32, %v6256_v45  ;;  %v4793_v12 = vpack.c.bf16 %v3093_v28, %v3091_v38  ;;  %v3090_v5 = vmul.f32 %v3082_v39, %v9056_v50  ;;  %v9062_v38 = vld [vmem:[#allocation35_spill] sm:$0xff] }
 0x544   : > { %v3084_v55 = vsel %vm903_vm12, %v9057_v41, %v9058_v3  ;;  %v3087_v49 = vsel %vm903_vm12, %v7410_v31, %v9059_v17  ;;  %v3101_v28 = vmul.f32 %v3079_v16, %v6388_v22  ;;  %v4797_v32 = vpack.c.bf16 %v3097_v23, %v3095_v18  ;;  %v9063_v3 = vld [vmem:[#allocation36_spill] sm:$0xff] }
 0x545   : > { %4788 = vmatpush1.bf16.msra.mxu0 %v4787_v54  ;;  %v7681_v26 = vpop.permute.xlu1 %3202  ;;  %v7688_v34 = vpop.permute.xlu0 %3192  ;;  %v4789_v4 = vpack.c.bf16 %v3041_v0, %v3039_v51  ;;  %v4791_v35 = vpack.c.bf16 %v3040_v61, %v3038_v20  ;;  %v4795_v11 = vpack.c.bf16 %v3092_v21, %v3090_v5  ;;  %v3094_v29 = vmul.f32 %v3084_v55, %v9056_v50  ;;  %v9065_v5 = vld [vmem:[#allocation19_spill] sm:$0xff] }
 0x546   : > { %v3086_v20 = vsel %vm903_vm12, %v9060_v62, %v9061_v24  ;;  %v3099_v51 = vmul.f32 %v3078_v10, %v6388_v22  ;;  %v3100_v31 = vmul.f32 %v3087_v49, %v9056_v50 }
 0x547   : > { %4790 = vmatprep.subr.bf16.mxu0 %v4789_v4  ;;  %v4799_v0 = vpack.c.bf16 %v3096_v47, %v3094_v29  ;;  %v3098_v39 = vmul.f32 %v3086_v20, %v9056_v50  ;;  %v3080_v4 = vsel %vm903_vm12, %v9062_v38, %v7532_v58 }
 0x548   : > { %v4801_v40 = vpack.c.bf16 %v3101_v28, %v3099_v51  ;;  %v9067_v28 = vld [vmem:[#allocation6_spill] sm:$0xff]  ;;  %v9069_v51 = vld [vmem:[#allocation23_spill] sm:$0xff] }
 0x549   : > { %4792 = vmatpush1.bf16.msra.mxu0 %v4791_v35  ;;  %v7705_v14 = vpop.permute.xlu1 %3190  ;;  %v7712_v56 = vpop.permute.xlu0 %3208  ;;  %v3088_v35 = vsel %vm903_vm12, %v7532_v58, %v9062_v38  ;;  %v4803_v23 = vpack.c.bf16 %v3100_v31, %v3098_v39  ;;  %v3103_v58 = vmul.f32 %v3080_v4, %v6388_v22  ;;  %v9070_v39 = vld [vmem:[#allocation13_spill] sm:$0xff] }
 0x54a   : > { %4794 = vmatprep.subr.bf16.mxu0 %v4793_v12  ;;  %v9064_v12 = vld [vmem:[#allocation8_spill] sm:$0xff]  ;;  %v3102_v16 = vmul.f32 %v3088_v35, %v9056_v50  ;;  %v3106_v38 = vmul.f32 %v9070_v39, %v9067_v28  ;;  %v9071_v35 = vld [vmem:[#allocation22_spill] sm:$0xff] }
 0x54b   : > { %v3109_v17 = vmul.f32 %v9065_v5, %v9064_v12  ;;  %v3113_v31 = vmul.f32 %v9069_v51, %v9064_v12  ;;  %v9075_v51 = vld [vmem:[#allocation27_spill] sm:$0xff] }
 0x54d   : > { %4796 = vmatpush1.bf16.msra.mxu0 %v4795_v11  ;;  %v7725_v54 = vpop.permute.xlu1 %3206  ;;  %v7732_v61 = vpop.permute.xlu0 %3196  ;;  %v9066_v11 = vld [vmem:[#allocation4_spill] sm:$0xff] }
 0x54e   : > { %4798 = vmatprep.subr.bf16.mxu0 %v4797_v32  ;;  %v3107_v49 = vmul.f32 %v9066_v11, %v9064_v12  ;;  %v9068_v32 = vld [vmem:[#allocation18_spill] sm:$0xff] }
 0x54f   : > { %v3108_v29 = vmul.f32 %v9068_v32, %v9067_v28 }
 0x550   : > { %v4809_v20 = vpack.c.bf16 %v3109_v17, %v3107_v49  ;;  %v3117_v17 = vmul.f32 %v7147_v30, %v9064_v12  ;;  %v3389_v30 = vld [vmem:[%s8889_s6 + $0x58] sm:$0xff]  ;;  %v3116_v49 = vmul.f32 %v7125_v60, %v9067_v28  ;;  %v3388_v60 = vld [vmem:[%s8889_s6 + $0x50] sm:$0xff] }
 0x551   : > { %4800 = vmatpush1.bf16.msra.mxu0 %v4799_v0  ;;  %v7744_v21 = vpop.permute.xlu1 %3194  ;;  %v3073_v41 = vpop.permute.xlu0 %3072 }
 0x552   : > { %4802 = vmatprep.subr.bf16.mxu0 %v4801_v40  ;;  %v3081_v8 = vsel %vm903_vm12, %v9063_v3, %v3073_v41  ;;  %v3089_v19 = vsel %vm903_vm12, %v3073_v41, %v9063_v3  ;;  %v3378_v40 = vld [vmem:[%s8889_s6] sm:$0xff]  ;;  %v3111_v41 = vmul.f32 %v9071_v35, %v9064_v12  ;;  %v3384_v3 = vld [vmem:[%s8889_s6 + $0x30] sm:$0xff] }
 0x553   : > { %v3104_v55 = vmul.f32 %v3089_v19, %v9056_v50  ;;  %v3105_v18 = vmul.f32 %v3081_v8, %v6388_v22  ;;  %v4811_v8 = vpack.c.bf16 %v3108_v29, %v3106_v38  ;;  %v9072_v19 = vld [vmem:[#allocation21_spill] sm:$0xff]  ;;  %v3121_v29 = vmul.f32 %v7201_v57, %v9064_v12  ;;  %v3394_v35 = vld [vmem:[%s8889_s6 + $0x80] sm:$0xff] }
 0x554   : > { %v4813_v5 = vpack.c.bf16 %v3113_v31, %v3111_v41  ;;  %v3119_v57 = vmul.f32 %v7191_v63, %v9064_v12  ;;  %v9077_v41 = vld [vmem:[#allocation25_spill] sm:$0xff] }
 0x555   : > { %4804 = vmatpush1.bf16.msra.mxu0 %v4803_v23  ;;  %v7758_v47 = vpop.permute.xlu1 %3210  ;;  %v7760_v62 = vpop.permute.xlu0 %3212  ;;  %v4805_v24 = vpack.c.bf16 %v3105_v18, %v3103_v58  ;;  %v4807_v10 = vpack.c.bf16 %v3104_v55, %v3102_v16  ;;  %v3112_v23 = vmul.f32 %v9072_v19, %v9067_v28  ;;  %v9073_v58 = vld [vmem:[#allocation20_spill] sm:$0xff]  ;;  %v3383_v18 = vld [vmem:[%s8889_s6 + $0x28] sm:$0xff] }
 0x556   : > { %v3110_v55 = vmul.f32 %v9073_v58, %v9067_v28  ;;  %v4821_v58 = vpack.c.bf16 %v3121_v29, %v3119_v57  ;;  %v3381_v29 = vld [vmem:[%s8889_s6 + $0x18] sm:$0xff] }
 0x557   : > { %4806 = vmatprep.subr.bf16.mxu0 %v4805_v24 }
 0x558   : > { %v4815_v11 = vpack.c.bf16 %v3112_v23, %v3110_v55  ;;  %v3120_v23 = vmul.f32 %v7169_v48, %v9067_v28  ;;  %v9080_v55 = vld [vmem:[#allocation30_spill] sm:$0xff]  ;;  %v3118_v48 = vmul.f32 %v7163_v2, %v9067_v28  ;;  %v9081_v2 = vld [vmem:[#allocation12_spill] sm:$0xff] }
 0x559   : > { %4808 = vmatpush1.bf16.msra.mxu0 %v4807_v10  ;;  %v7768_v0 = vpop.permute.xlu1 %3198  ;;  %v7775_v4 = vpop.permute.xlu0 %3200  ;;  %v3115_v10 = vmul.f32 %v7141_v33, %v9064_v12 }
 0x55a   : > { %4810 = vmatprep.subr.bf16.mxu0 %v4809_v20  ;;  %v9074_v20 = vld [vmem:[#allocation26_spill] sm:$0xff] }
 0x55b   : > { %v4817_v32 = vpack.c.bf16 %v3117_v17, %v3115_v10  ;;  %v3163_v31 = vsel %vm952_vm13, %v9075_v51, %v9074_v20  ;;  %v9079_v17 = vld [vmem:[#allocation17_spill] sm:$0xff] }
 0x55c   : > { %3499 = vmatmul.mubr.f32.vlgmr.msra.gmra.mrb[0].mxu0 %v3378_v40  ;;  %v9076_v40 = vld [vmem:[#allocation24_spill] sm:$0xff]  ;;  %v3173_v63 = vmul.f32 %v3163_v31, %v9079_v17  ;;  %v9083_v31 = vld [vmem:[#allocation37_spill] sm:$0xff] }
 0x55d   : > { %4812 = vmatpush1.bf16.msra.mxu0 %v4811_v8  ;;  %v7786_v16 = vpop.permute.xlu1 %3214  ;;  %3504 = vmatprep.mubr.f32.mxu0 %v3384_v3  ;;  %v7793_v24 = vpop.permute.xlu0 %3252  ;;  %v3114_v39 = vmul.f32 %v9076_v40, %v9067_v28  ;;  %v9078_v3 = vld [vmem:[#allocation7_spill] sm:$0xff] }
 0x55e   : > { %4814 = vmatprep.subr.bf16.mxu0 %v4813_v5  ;;  %v3162_v8 = vsel %vm952_vm13, %v9078_v3, %v9077_v41  ;;  %v3155_v5 = vsel %vm952_vm13, %v9074_v20, %v9075_v51  ;;  %v9082_v51 = vld [vmem:[#allocation29_spill] sm:$0xff] }
 0x55f   : > { %v4819_v19 = vpack.c.bf16 %v3116_v49, %v3114_v39  ;;  %v3171_v49 = vmul.f32 %v3162_v8, %v9079_v17  ;;  %v3172_v20 = vmul.f32 %v3155_v5, %v9081_v2  ;;  %v3164_v40 = vsel %vm952_vm13, %v9083_v31, %v9082_v51 }
 0x560   : > { %3505 = vmatmul.mubr.f32.gmra.mrb[2].mxu0 %v3383_v18  ;;  %v3165_v18 = vsel %vm952_vm13, %v7479_v37, %v9080_v55  ;;  %v4823_v39 = vpack.c.bf16 %v3120_v23, %v3118_v48 }
 0x561   : > { %4816 = vmatpush1.bf16.msra.mxu0 %v4815_v11  ;;  %v7808_v33 = vpop.permute.xlu1 %3250  ;;  %3510 = vmatprep.mubr.f32.mxu0 %v3389_v30  ;;  %v7815_v38 = vpop.permute.xlu0 %3268  ;;  %v3393_v30 = vld [vmem:[%s8889_s6 + $0x78] sm:$0xff]  ;;  %v3154_v11 = vsel %vm952_vm13, %v9077_v41, %v9078_v3  ;;  %v3177_v57 = vmul.f32 %v3165_v18, %v9079_v17  ;;  %v3166_v3 = vsel %vm952_vm13, %v7586_v9, %v7558_v52 }
 0x562   : > { %4818 = vmatprep.subr.bf16.mxu0 %v4817_v32  ;;  %v3170_v41 = vmul.f32 %v3154_v11, %v9081_v2  ;;  %v3179_v18 = vmul.f32 %v3166_v3, %v9079_v17  ;;  %v3159_v11 = vsel %vm952_vm13, %v7507_v25, %v7534_v15 }
 0x564   : > { %3511 = vmatmul.mubr.f32.gmra.mrb[4].mxu0 %v3388_v60  ;;  %v3157_v60 = vsel %vm952_vm13, %v9080_v55, %v7479_v37  ;;  %v3156_v37 = vsel %vm952_vm13, %v9082_v51, %v9083_v31  ;;  %v4827_v5 = vpack.c.bf16 %v3172_v20, %v3170_v41  ;;  %v3158_v55 = vsel %vm952_vm13, %v7558_v52, %v7586_v9 }
 0x565   : > { %4820 = vmatpush1.bf16.msra.mxu0 %v4819_v19  ;;  %v7837_v10 = vpop.permute.xlu1 %3266  ;;  %3516 = vmatprep.mubr.f32.mxu0 %v3394_v35  ;;  %v7849_v32 = vpop.permute.xlu0 %3256  ;;  %v4825_v35 = vpack.c.bf16 %v3173_v63, %v3171_v49  ;;  %v3175_v19 = vmul.f32 %v3164_v40, %v9079_v17  ;;  %v3176_v63 = vmul.f32 %v3157_v60, %v9081_v2 }
 0x566   : > { %4822 = vmatprep.subr.bf16.mxu0 %v4821_v58  ;;  %v3167_v58 = vsel %vm952_vm13, %v7534_v15, %v7507_v25  ;;  %v3178_v20 = vmul.f32 %v3158_v55, %v9081_v2  ;;  %v3160_v9 = vsel %vm952_vm13, %v7613_v42, %v7633_v36  ;;  %v3180_v31 = vmul.f32 %v3159_v11, %v9081_v2  ;;  %v9085_v11 = vld [vmem:[#allocation11_spill] sm:$0xff] }
 0x567   : > { %v4829_v48 = vpack.c.bf16 %v3177_v57, %v3175_v19  ;;  %v3168_v25 = vsel %vm952_vm13, %v7633_v36, %v7613_v42  ;;  %v3226_v40 = vsel %vm1081_vm1, %v7681_v26, %v7656_v43  ;;  %v3182_v57 = vmul.f32 %v3160_v9, %v9081_v2  ;;  %v9084_v19 = vld [vmem:[#allocation10_spill] sm:$0xff] }
 0x568   : > { %3517 = vmatmul.mubr.f32.gmra.mrb[6].mxu0 %v3393_v30  ;;  %v3174_v30 = vmul.f32 %v3156_v37, %v9081_v2  ;;  %v4835_v60 = vpack.c.bf16 %v3180_v31, %v3178_v20  ;;  %v3183_v41 = vmul.f32 %v3168_v25, %v9079_v17  ;;  %v3227_v42 = vsel %vm1081_vm1, %v7640_v44, %v7620_v1 }
 0x569   : > { %4824 = vmatpush1.bf16.msra.mxu0 %v4823_v39  ;;  %v7869_v8 = vpop.permute.xlu1 %3254  ;;  %3587 = vmatprep.mubr.f32.mxu0 %v3381_v29  ;;  %v7876_v23 = vpop.permute.xlu0 %3272  ;;  %v3181_v29 = vmul.f32 %v3167_v58, %v9079_v17  ;;  %v3218_v37 = vsel %vm1081_vm1, %v7656_v43, %v7681_v26  ;;  %v3228_v55 = vsel %vm1081_vm1, %v7725_v54, %v7705_v14 }
 0x56a   : > { %4826 = vmatprep.subr.bf16.mxu0 %v4825_v35  ;;  %v4831_v52 = vpack.c.bf16 %v3176_v63, %v3174_v30  ;;  %v3237_v43 = vmul.f32 %v3227_v42, %v9084_v19  ;;  %v3229_v20 = vsel %vm1081_vm1, %v7712_v56, %v7688_v34  ;;  %v3230_v31 = vsel %vm1081_vm1, %v7758_v47, %v7744_v21 }
 0x56b   : > { %v4833_v15 = vpack.c.bf16 %v3181_v29, %v3179_v18  ;;  %v3234_v29 = vmul.f32 %v3218_v37, %v9085_v11  ;;  %v3231_v25 = vsel %vm1081_vm1, %v7760_v62, %v7732_v61 }
 0x56d   : > { %4828 = vmatpush1.bf16.msra.mxu0 %v4827_v5  ;;  %v7893_v49 = vpop.permute.xlu1 %3270  ;;  %v7897_v51 = vpop.permute.xlu0 %3260  ;;  %v3235_v5 = vmul.f32 %v3226_v40, %v9084_v19 }
 0x56e   : > { %4830 = vmatprep.subr.bf16.mxu0 %v4829_v48 }
 0x571   : > { %4832 = vmatpush1.bf16.msra.mxu0 %v4831_v52  ;;  %v7912_v39 = vpop.permute.xlu1 %3258  ;;  %v3153_v35 = vpop.permute.xlu0 %3152  ;;  %v3220_v52 = vsel %vm1081_vm1, %v7705_v14, %v7725_v54  ;;  %v3221_v14 = vsel %vm1081_vm1, %v7688_v34, %v7712_v56  ;;  %v3241_v54 = vmul.f32 %v3229_v20, %v9084_v19  ;;  %v3243_v34 = vmul.f32 %v3230_v31, %v9084_v19 }
 0x572   : > { %4834 = vmatprep.subr.bf16.mxu0 %v4833_v15  ;;  %v3161_v36 = vsel %vm952_vm13, %v7596_v7, %v3153_v35  ;;  %v3169_v3 = vsel %vm952_vm13, %v3153_v35, %v7596_v7  ;;  %v3219_v7 = vsel %vm1081_vm1, %v7620_v1, %v7640_v44  ;;  %v3239_v1 = vmul.f32 %v3228_v55, %v9084_v19 }
 0x573   : > { %v3184_v63 = vmul.f32 %v3161_v36, %v9081_v2  ;;  %v3185_v58 = vmul.f32 %v3169_v3, %v9079_v17  ;;  %v4841_v44 = vpack.c.bf16 %v3237_v43, %v3235_v5  ;;  %v3236_v9 = vmul.f32 %v3219_v7, %v9085_v11 }
 0x574   : > { %v3222_v35 = vsel %vm1081_vm1, %v7744_v21, %v7758_v47  ;;  %v3245_v56 = vmul.f32 %v3231_v25, %v9084_v19  ;;  %v4845_v42 = vpack.c.bf16 %v3241_v54, %v3239_v1  ;;  %v3240_v36 = vmul.f32 %v3221_v14, %v9085_v11 }
 0x575   : > { %4836 = vmatpush1.bf16.msra.mxu0 %v4835_v60  ;;  %v7937_v18 = vpop.permute.xlu1 %3274  ;;  %v4839_v26 = vpack.c.bf16 %v3184_v63, %v3182_v57  ;;  %v7944_v48 = vpop.permute.xlu0 %3276  ;;  %v4837_v30 = vpack.c.bf16 %v3185_v58, %v3183_v41  ;;  %v4843_v60 = vpack.c.bf16 %v3236_v9, %v3234_v29  ;;  %v3238_v57 = vmul.f32 %v3220_v52, %v9085_v11  ;;  %v9086_v52 = vld [vmem:[#allocation9_spill] sm:$0xff] }
 0x576   : > { %v3223_v41 = vsel %vm1081_vm1, %v7732_v61, %v7760_v62  ;;  %v3242_v37 = vmul.f32 %v3222_v35, %v9085_v11  ;;  %v3224_v61 = vsel %vm1081_vm1, %v7768_v0, %v7786_v16  ;;  %v3232_v62 = vsel %vm1081_vm1, %v7786_v16, %v7768_v0 }
 0x577   : > { %4838 = vmatprep.subr.bf16.mxu0 %v4837_v30  ;;  %v3244_v5 = vmul.f32 %v3223_v41, %v9085_v11  ;;  %v4847_v47 = vpack.c.bf16 %v3240_v36, %v3238_v57  ;;  %v4849_v63 = vpack.c.bf16 %v3245_v56, %v3243_v34  ;;  %v3290_v58 = vsel %vm1124_vm2, %v7837_v10, %v7808_v33 }
 0x578   : > { %v3246_v43 = vmul.f32 %v3224_v61, %v9085_v11  ;;  %v3247_v30 = vmul.f32 %v3232_v62, %v9084_v19  ;;  %v3291_v0 = vsel %vm1124_vm2, %v7815_v38, %v7793_v24  ;;  %v3282_v20 = vsel %vm1124_vm2, %v7808_v33, %v7837_v10 }
 0x579   : > { %4840 = vmatpush1.bf16.msra.mxu0 %v4839_v26  ;;  %v7965_v15 = vpop.permute.xlu1 %3262  ;;  %v7972_v40 = vpop.permute.xlu0 %3264  ;;  %v4851_v7 = vpack.c.bf16 %v3244_v5, %v3242_v37  ;;  %v3299_v1 = vmul.f32 %v3290_v58, %v9086_v52  ;;  %v3292_v31 = vsel %vm1124_vm2, %v7893_v49, %v7869_v8  ;;  %v3301_v33 = vmul.f32 %v3291_v0, %v9086_v52 }
 0x57a   : > { %4842 = vmatprep.subr.bf16.mxu0 %v4841_v44  ;;  %v3293_v35 = vsel %vm1124_vm2, %v7876_v23, %v7849_v32  ;;  %v3284_v41 = vsel %vm1124_vm2, %v7869_v8, %v7893_v49  ;;  %v3303_v34 = vmul.f32 %v3292_v31, %v9086_v52  ;;  %v3294_v56 = vsel %vm1124_vm2, %v7937_v18, %v7912_v39 }
 0x57b   : > { %v3285_v8 = vsel %vm1124_vm2, %v7849_v32, %v7876_v23  ;;  %v3305_v49 = vmul.f32 %v3293_v35, %v9086_v52  ;;  %v3286_v61 = vsel %vm1124_vm2, %v7912_v39, %v7937_v18  ;;  %v3287_v62 = vsel %vm1124_vm2, %v7897_v51, %v7944_v48  ;;  %v9089_v35 = vld [vmem:[#allocation14_spill] sm:$0xff] }
 0x57d   : > { %4844 = vmatpush1.bf16.msra.mxu0 %v4843_v60  ;;  %v7986_v3 = vpop.permute.xlu1 %3278  ;;  %v7990_v21 = vpop.permute.xlu0 %3316  ;;  %v9087_v60 = vld [vmem:[#allocation16_spill] sm:$0xff]  ;;  %v4861_v23 = vpack.c.bf16 %v3305_v49, %v3303_v34 }
 0x57e   : > { %4846 = vmatprep.subr.bf16.mxu0 %v4845_v42  ;;  %v3298_v57 = vmul.f32 %v3282_v20, %v9087_v60  ;;  %v3295_v42 = vsel %vm1124_vm2, %v7944_v48, %v7897_v51  ;;  %v3304_v58 = vmul.f32 %v3285_v8, %v9087_v60  ;;  %v3288_v0 = vsel %vm1124_vm2, %v7965_v15, %v7986_v3 }
 0x57f   : > { %v3309_v32 = vmul.f32 %v3295_v42, %v9086_v52 }
 0x581   : > { %4848 = vmatpush1.bf16.msra.mxu0 %v4847_v47  ;;  %v3315_v55 = vpop.permute.xlu1 %3314  ;;  %v3217_v26 = vpop.permute.xlu0 %3216  ;;  %v3302_v47 = vmul.f32 %v3284_v41, %v9087_v60 }
 0x582   : > { %4850 = vmatprep.subr.bf16.mxu0 %v4849_v63  ;;  %v3225_v16 = vsel %vm1081_vm1, %v7775_v4, %v3217_v26  ;;  %v3233_v29 = vsel %vm1081_vm1, %v3217_v26, %v7775_v4  ;;  %v3283_v4 = vsel %vm1124_vm2, %v7793_v24, %v7815_v38  ;;  %v4857_v24 = vpack.c.bf16 %v3301_v33, %v3299_v1 }
 0x583   : > { %v3248_v44 = vmul.f32 %v3225_v16, %v9085_v11  ;;  %v3249_v9 = vmul.f32 %v3233_v29, %v9084_v19  ;;  %v3300_v38 = vmul.f32 %v3283_v4, %v9087_v60  ;;  %v3307_v63 = vmul.f32 %v3294_v56, %v9086_v52 }
 0x584   : > { %v3308_v26 = vmul.f32 %v3287_v62, %v9087_v60  ;;  %v4863_v18 = vpack.c.bf16 %v3304_v58, %v3302_v47  ;;  %v3296_v16 = vsel %vm1124_vm2, %v7986_v3, %v7965_v15 }
 0x585   : > { %4852 = vmatpush1.bf16.msra.mxu0 %v4851_v7  ;;  %v3331_v25 = vpop.permute.xlu1 %3330  ;;  %v4855_v10 = vpack.c.bf16 %v3248_v44, %v3246_v43  ;;  %v3333_v14 = vpop.permute.xlu0 %3332  ;;  %v4853_v54 = vpack.c.bf16 %v3249_v9, %v3247_v30  ;;  %v4859_v5 = vpack.c.bf16 %v3300_v38, %v3298_v57  ;;  %v3306_v43 = vmul.f32 %v3286_v61, %v9087_v60  ;;  %v9088_v44 = vld [vmem:[#allocation15_spill] sm:$0xff]  ;;  %v3380_v61 = vld [vmem:[%s8889_s6 + $0x10] sm:$0xff] }
 0x586   : > { %v3354_v30 = vsel %vm1167_vm3, %v3331_v25, %v3315_v55  ;;  %v3355_v51 = vsel %vm1167_vm3, %v3333_v14, %v7990_v21  ;;  %v4865_v48 = vpack.c.bf16 %v3309_v32, %v3307_v63  ;;  %v3346_v1 = vsel %vm1167_vm3, %v3315_v55, %v3331_v25 }
 0x587   : > { %4854 = vmatprep.subr.bf16.mxu0 %v4853_v54  ;;  %v4867_v20 = vpack.c.bf16 %v3308_v26, %v3306_v43  ;;  %v3363_v9 = vmul.f32 %v3354_v30, %v9088_v44  ;;  %v3347_v4 = vsel %vm1167_vm3, %v7990_v21, %v3333_v14  ;;  %v3365_v33 = vmul.f32 %v3355_v51, %v9088_v44 }
 0x588   : > { %v3310_v55 = vmul.f32 %v3288_v0, %v9087_v60  ;;  %v3311_v25 = vmul.f32 %v3296_v16, %v9086_v52  ;;  %v3362_v41 = vmul.f32 %v3346_v1, %v9089_v35  ;;  %v3391_v0 = vld [vmem:[%s8889_s6 + $0x68] sm:$0xff] }
 0x589   : > { %4856 = vmatpush1.bf16.msra.mxu0 %v4855_v10  ;;  %v3319_v36 = vpop.permute.xlu1 %3318  ;;  %v3321_v37 = vpop.permute.xlu0 %3320  ;;  %v4873_v56 = vpack.c.bf16 %v3365_v33, %v3363_v9 }
 0x58a   : > { %4858 = vmatprep.subr.bf16.mxu0 %v4857_v24 }
 0x58d   : > { %4860 = vmatpush1.bf16.msra.mxu0 %v4859_v5  ;;  %v3335_v7 = vpop.permute.xlu1 %3334  ;;  %v3337_v39 = vpop.permute.xlu0 %3336 }
 0x58e   : > { %4862 = vmatprep.subr.bf16.mxu0 %v4861_v23  ;;  %v3356_v21 = vsel %vm1167_vm3, %v3335_v7, %v3319_v36  ;;  %v3357_v14 = vsel %vm1167_vm3, %v3337_v39, %v3321_v37  ;;  %v3348_v42 = vsel %vm1167_vm3, %v3319_v36, %v3335_v7  ;;  %v3349_v49 = vsel %vm1167_vm3, %v3321_v37, %v3337_v39  ;;  %v3386_v36 = vld [vmem:[%s8889_s6 + $0x40] sm:$0xff]  ;;  %v3385_v39 = vld [vmem:[%s8889_s6 + $0x38] sm:$0xff] }
 0x58f   : > { %v3367_v8 = vmul.f32 %v3356_v21, %v9088_v44  ;;  %v3369_v5 = vmul.f32 %v3357_v14, %v9088_v44  ;;  %v3366_v32 = vmul.f32 %v3348_v42, %v9089_v35  ;;  %v3368_v37 = vmul.f32 %v3349_v49, %v9089_v35  ;;  %v3397_v42 = vld [vmem:[%s8889_s6 + $0x98] sm:$0xff] }
 0x591   : > { %4864 = vmatpush1.bf16.msra.mxu0 %v4863_v18  ;;  %v3323_v29 = vpop.permute.xlu1 %3322  ;;  %v3281_v31 = vpop.permute.xlu0 %3280  ;;  %v4877_v26 = vpack.c.bf16 %v3369_v5, %v3367_v8  ;;  %v4879_v16 = vpack.c.bf16 %v3368_v37, %v3366_v32 }
 0x592   : > { %4866 = vmatprep.subr.bf16.mxu0 %v4865_v48  ;;  %v3289_v15 = vsel %vm1124_vm2, %v7972_v40, %v3281_v31  ;;  %v3297_v3 = vsel %vm1124_vm2, %v3281_v31, %v7972_v40  ;;  %v3364_v40 = vmul.f32 %v3347_v4, %v9089_v35  ;;  %v3390_v4 = vld [vmem:[%s8889_s6 + $0x60] sm:$0xff] }
 0x593   : > { %v3312_v10 = vmul.f32 %v3289_v15, %v9087_v60  ;;  %v3313_v54 = vmul.f32 %v3297_v3, %v9086_v52  ;;  %v3396_v15 = vld [vmem:[%s8889_s6 + $0x90] sm:$0xff] }
 0x594   : > { %v4875_v62 = vpack.c.bf16 %v3364_v40, %v3362_v41 }
 0x595   : > { %4868 = vmatpush1.bf16.msra.mxu0 %v4867_v20  ;;  %v3339_v57 = vpop.permute.xlu1 %3338  ;;  %v4871_v34 = vpack.c.bf16 %v3312_v10, %v3310_v55  ;;  %v3325_v24 = vpop.permute.xlu0 %3324  ;;  %v4869_v38 = vpack.c.bf16 %v3313_v54, %v3311_v25 }
 0x596   : > { %v3358_v23 = vsel %vm1167_vm3, %v3339_v57, %v3323_v29  ;;  %v3350_v18 = vsel %vm1167_vm3, %v3323_v29, %v3339_v57  ;;  %v3395_v57 = vld [vmem:[%s8889_s6 + $0x88] sm:$0xff] }
 0x597   : > { %4870 = vmatprep.subr.bf16.mxu0 %v4869_v38  ;;  %v3371_v30 = vmul.f32 %v3358_v23, %v9088_v44  ;;  %v3370_v9 = vmul.f32 %v3350_v18, %v9089_v35  ;;  %v3387_v38 = vld [vmem:[%s8889_s6 + $0x48] sm:$0xff] }
 0x599   : > { %4872 = vmatpush1.bf16.msra.mxu0 %v4871_v34  ;;  %v3327_v47 = vpop.permute.xlu1 %3326  ;;  %v3341_v63 = vpop.permute.xlu0 %3340  ;;  %v9090_v34 = vmov 0.0  }
 0x59a   : > { %4874 = vmatprep.subr.bf16.mxu0 %v4873_v56  ;;  %v3359_v58 = vsel %vm1167_vm3, %v3341_v63, %v3325_v24  ;;  %v3351_v7 = vsel %vm1167_vm3, %v3325_v24, %v3341_v63  ;;  %v3382_v24 = vld [vmem:[%s8889_s6 + $0x20] sm:$0xff]  ;;  %v3392_v56 = vld [vmem:[%s8889_s6 + $0x70] sm:$0xff] }
 0x59b   : > { %v3373_v43 = vmul.f32 %v3359_v58, %v9088_v44  ;;  %v3372_v20 = vmul.f32 %v3351_v7, %v9089_v35 }
 0x59c   : > { %3588 = vmatmul.mubr.f32.vlgmr.msra.gmra.mrb[0].mxu0 %v3380_v61 }
 0x59d   : > { %4876 = vmatpush1.bf16.msra.mxu0 %v4875_v62  ;;  %3593 = vmatprep.mubr.f32.mxu0 %v3386_v36  ;;  %v3343_v51 = vpop.permute.xlu1 %3342  ;;  %v3329_v48 = vpop.permute.xlu0 %3328  ;;  %v4881_v1 = vpack.c.bf16 %v3373_v43, %v3371_v30  ;;  %v4883_v3 = vpack.c.bf16 %v3372_v20, %v3370_v9 }
 0x59e   : > { %4878 = vmatprep.subr.bf16.mxu0 %v4877_v26  ;;  %v3352_v31 = vsel %vm1167_vm3, %v3327_v47, %v3343_v51  ;;  %v3360_v29 = vsel %vm1167_vm3, %v3343_v51, %v3327_v47 }
 0x59f   : > { %v3374_v10 = vmul.f32 %v3352_v31, %v9089_v35  ;;  %v3375_v54 = vmul.f32 %v3360_v29, %v9088_v44 }
 0x5a0   : > { %3594 = vmatmul.mubr.f32.gmra.mrb[2].mxu0 %v3385_v39 }
 0x5a1   : > { %4880 = vmatpush1.bf16.msra.mxu0 %v4879_v16  ;;  %3599 = vmatprep.mubr.f32.mxu0 %v3391_v0  ;;  %v3345_v33 = vpop.permute.xlu0 %3344 }
 0x5a2   : > { %4882 = vmatprep.subr.bf16.mxu0 %v4881_v1  ;;  %v3353_v55 = vsel %vm1167_vm3, %v3329_v48, %v3345_v33  ;;  %v3361_v25 = vsel %vm1167_vm3, %v3345_v33, %v3329_v48 }
 0x5a3   : > { %v3376_v21 = vmul.f32 %v3353_v55, %v9089_v35  ;;  %v3377_v14 = vmul.f32 %v3361_v25, %v9088_v44 }
 0x5a4   : > { %3600 = vmatmul.mubr.f32.gmra.mrb[4].mxu0 %v3390_v4 }
 0x5a5   : > { %4884 = vmatpush1.bf16.msra.mxu0 %v4883_v3  ;;  %3605 = vmatprep.mubr.f32.mxu0 %v3396_v15  ;;  %v4887_v41 = vpack.c.bf16 %v3376_v21, %v3374_v10  ;;  %v4885_v40 = vpack.c.bf16 %v3377_v14, %v3375_v54 }
 0x5a7   : > { %4886 = vmatprep.subr.bf16.mxu0 %v4885_v40 }
 0x5a8   : > { %3606 = vmatmul.mubr.f32.gmra.mrb[6].mxu0 %v3395_v57  ;;  %v3990_v57 = vld [vmem:[%s8891_s8 + $0x8] sm:$0xff] }
 0x5a9   : > { %4888 = vmatpush1.bf16.msra.mxu0 %v4887_v41  ;;  %3676 = vmatprep.mubr.f32.mxu0 %v9090_v34 }
 0x5ac   : > { %4575 = vmatmul.mubr.msk.f32.vlgmr.msra.gmra.mrb[0].mxu0 %vm2438_vm5, %v3382_v24 }
 0x5ad   : > { %3682 = vmatprep.mubr.f32.mxu0 %v9090_v34 }
 0x5ae   : > { %v3405_v8 = vpop.permute.xlu1 %3404 }
 0x5b0   : > { %4576 = vmatmul.mubr.msk.f32.gmra.mrb[2].mxu0 %vm2438_vm5, %v3387_v38 }
 0x5b1   : > { %3688 = vmatprep.mubr.f32.mxu0 %v9090_v34 }
 0x5b2   : > { %v3410_v62 = vpop.permute.xlu0 %3409  ;;  %v3415_v20 = vpop.permute.xlu1 %3414 }
 0x5b4   : > { %4577 = vmatmul.mubr.msk.f32.gmra.mrb[4].mxu0 %vm2438_vm5, %v3392_v56  ;;  %v3995_v56 = vld [vmem:[%s8892_s9] sm:$0xff] }
 0x5b5   : > { %3694 = vmatprep.mubr.f32.mxu0 %v9090_v34 }
 0x5b6   : > { %v3420_v9 = vpop.permute.xlu0 %3419 }
 0x5b8   : > { %4578 = vmatmul.mubr.msk.f32.gmra.mrb[6].mxu0 %vm2438_vm5, %v3397_v42 }
 0x5b9   : > { %4077 = vmatprep.mubr.f32.mxu0 %v3990_v57 }
 0x67f   : > { %v3678_v49 = vpop.f32.mrb[0].mxu0 }
 0x680   : > { %v5013_v5 = vadd.f32 %v3678_v49, %v3405_v8  ;;  %v3680_v47 = vpop.f32.mrb[1].mxu0  ;;  %v3996_v49 = vld [vmem:[%s8892_s9 + $0x8] sm:$0xff] }
 0x681   : > { %v5014_v18 = vadd.f32 %v3680_v47, %v3405_v8 }
 0x682   : > { %vm3701_vm0 = vcmp.ge.f32.partialorder %v5013_v5, 0.0  ;;  %v3709_v61 = vmul.f32 0.01, %v5013_v5 }
 0x683   : > { %v3684_v63 = vpop.f32.mrb[2].mxu0  ;;  %v3710_v30 = vmul.f32 0.01, %v5014_v18  ;;  %vm3702_vm5 = vcmp.ge.f32.partialorder %v5014_v18, 0.0 }
 0x684   : > { %v8179_v36 = vsel %vm3701_vm0, %v5013_v5, %v3709_v61  ;;  %v5015_v32 = vadd.f32 %v3684_v63, %v3410_v62  ;;  %v3686_v37 = vpop.f32.mrb[3].mxu0 }
 0x685   : > { %3725 = vrot.lane.b32.xlu1 %v8179_v36, %s8982_s26  ;;  %v5016_v51 = vadd.f32 %v3686_v37, %v3410_v62  ;;  %v8201_v48 = vsel %vm3702_vm5, %v5014_v18, %v3710_v30 }
 0x686   : > { %vm3703_vm4 = vcmp.ge.f32.partialorder %v5015_v32, 0.0  ;;  %v3711_v23 = vmul.f32 0.01, %v5015_v32 }
 0x687   : > { %v3690_v58 = vpop.f32.mrb[4].mxu0  ;;  %v3712_v0 = vmul.f32 0.01, %v5016_v51  ;;  %vm3704_vm6 = vcmp.ge.f32.partialorder %v5016_v51, 0.0 }
 0x688   : > { %v8183_v7 = vsel %vm3703_vm4, %v5015_v32, %v3711_v23  ;;  %v3692_v43 = vpop.f32.mrb[5].mxu0  ;;  %v5017_v1 = vadd.f32 %v3690_v58, %v3415_v20 }
 0x689   : > { %3757 = vrot.lane.b32.xlu1 %v8179_v36, %s8980_s27  ;;  %3727 = vrot.lane.b32.xlu0 %v8183_v7, %s8982_s26  ;;  %v8207_v16 = vsel %vm3704_vm6, %v5016_v51, %v3712_v0  ;;  %v5018_v3 = vadd.f32 %v3692_v43, %v3415_v20 }
 0x68a   : > { %v3713_v31 = vmul.f32 0.01, %v5017_v1  ;;  %vm3705_vm10 = vcmp.ge.f32.partialorder %v5017_v1, 0.0 }
 0x68b   : > { %v3696_v26 = vpop.f32.mrb[6].mxu0  ;;  %v3714_v55 = vmul.f32 0.01, %v5018_v3  ;;  %vm3706_vm14 = vcmp.ge.f32.partialorder %v5018_v3, 0.0 }
 0x68c   : > { %v3698_v39 = vpop.f32.mrb[7].mxu0  ;;  %v5019_v29 = vadd.f32 %v3696_v26, %v3420_v9  ;;  %v8225_v4 = vsel %vm3705_vm10, %v5017_v1, %v3713_v31  ;;  %vm4327_vm10 = vcmask 130048  }
 0x68d   : > { %3789 = vrot.lane.b32.xlu1 %v8179_v36, %s9091_s30  ;;  %3759 = vrot.lane.b32.xlu0 %v8183_v7, %s8980_s27  ;;  %v5020_v25 = vadd.f32 %v3698_v39, %v3420_v9  ;;  %v8249_v10 = vsel %vm3706_vm14, %v5018_v3, %v3714_v55 }
 0x68e   : > { %v3715_v33 = vmul.f32 0.01, %v5019_v29  ;;  %vm3707_vm11 = vcmp.ge.f32.partialorder %v5019_v29, 0.0 }
 0x68f   : > { %v3716_v54 = vmul.f32 0.01, %v5020_v25  ;;  %vm3708_vm0 = vcmp.ge.f32.partialorder %v5020_v25, 0.0 }
 0x690   : > { %v8231_v15 = vsel %vm3707_vm11, %v5019_v29, %v3715_v33 }
 0x691   : > { %3821 = vrot.lane.b32.xlu1 %v8179_v36, %s9092_s15  ;;  %3791 = vrot.lane.b32.xlu0 %v8183_v7, %s9091_s30  ;;  %v8255_v21 = vsel %vm3708_vm0, %v5020_v25, %v3716_v54 }
 0x695   : > { %3861 = vrot.lane.b32.xlu1 %v8179_v36, %s9032_s20  ;;  %3823 = vrot.lane.b32.xlu0 %v8183_v7, %s9092_s15 }
 0x699   : > { %3733 = vrot.lane.b32.xlu1 %v8201_v48, %s8982_s26  ;;  %3863 = vrot.lane.b32.xlu0 %v8183_v7, %s9032_s20 }
 0x69d   : > { %3765 = vrot.lane.b32.xlu1 %v8201_v48, %s8980_s27  ;;  %3735 = vrot.lane.b32.xlu0 %v8207_v16, %s8982_s26 }
 0x6a1   : > { %3797 = vrot.lane.b32.xlu1 %v8201_v48, %s9091_s30  ;;  %3767 = vrot.lane.b32.xlu0 %v8207_v16, %s8980_s27 }
 0x6a5   : > { %3829 = vrot.lane.b32.xlu1 %v8201_v48, %s9092_s15  ;;  %3799 = vrot.lane.b32.xlu0 %v8207_v16, %s9091_s30 }
 0x6a9   : > { %3869 = vrot.lane.b32.xlu1 %v8201_v48, %s9032_s20  ;;  %3831 = vrot.lane.b32.xlu0 %v8207_v16, %s9092_s15 }
 0x6ad   : > { %3729 = vrot.lane.b32.xlu1 %v8225_v4, %s8982_s26  ;;  %3871 = vrot.lane.b32.xlu0 %v8207_v16, %s9032_s20 }
 0x6b1   : > { %3761 = vrot.lane.b32.xlu1 %v8225_v4, %s8980_s27  ;;  %3731 = vrot.lane.b32.xlu0 %v8231_v15, %s8982_s26 }
 0x6b5   : > { %3793 = vrot.lane.b32.xlu1 %v8225_v4, %s9091_s30  ;;  %3763 = vrot.lane.b32.xlu0 %v8231_v15, %s8980_s27 }
 0x6b9   : > { %3825 = vrot.lane.b32.xlu1 %v8225_v4, %s9092_s15  ;;  %3795 = vrot.lane.b32.xlu0 %v8231_v15, %s9091_s30 }
 0x6bd   : > { %3865 = vrot.lane.b32.xlu1 %v8225_v4, %s9032_s20  ;;  %3827 = vrot.lane.b32.xlu0 %v8231_v15, %s9092_s15 }
 0x6c1   : > { %3737 = vrot.lane.b32.xlu1 %v8249_v10, %s8982_s26  ;;  %3867 = vrot.lane.b32.xlu0 %v8231_v15, %s9032_s20 }
 0x6c5   : > { %3893 = vrot.lane.b32.xlu1 %v8179_v36, %s9044_s17  ;;  %3739 = vrot.lane.b32.xlu0 %v8255_v21, %s8982_s26  ;;  %s9107_s26 = smov 16  }
 0x6c9   : > { %3769 = vrot.lane.b32.xlu1 %v8249_v10, %s8980_s27  ;;  %3895 = vrot.lane.b32.xlu0 %v8183_v7, %s9044_s17 }
 0x6cd   : > { %3801 = vrot.lane.b32.xlu1 %v8249_v10, %s9091_s30  ;;  %3771 = vrot.lane.b32.xlu0 %v8255_v21, %s8980_s27  ;;  %s399_s27 = sand.u32 1, %s5160_s21  }
 0x6ce   : > { %s4524_s23 = sshll.u32 %s399_s27, 5 }
 0x6d1   : > { %3833 = vrot.lane.b32.xlu1 %v8249_v10, %s9092_s15  ;;  %3903 = vrot.lane.b32.xlu0 %v8207_v16, %s9044_s17 }
 0x6d5   : > { %3873 = vrot.lane.b32.xlu1 %v8249_v10, %s9032_s20  ;;  %3803 = vrot.lane.b32.xlu0 %v8255_v21, %s9091_s30 }
 0x6d9   : > { %3901 = vrot.lane.b32.xlu1 %v8201_v48, %s9044_s17  ;;  %3899 = vrot.lane.b32.xlu0 %v8231_v15, %s9044_s17 }
 0x6dd   : > { %3897 = vrot.lane.b32.xlu1 %v8225_v4, %s9044_s17  ;;  %3835 = vrot.lane.b32.xlu0 %v8255_v21, %s9092_s15 }
 0x6e1   : > { %3905 = vrot.lane.b32.xlu1 %v8249_v10, %s9044_s17  ;;  %3927 = vrot.lane.b32.xlu0 %v8183_v7, %s8996_s13 }
 0x6e5   : > { %3925 = vrot.lane.b32.xlu1 %v8179_v36, %s8996_s13  ;;  %3935 = vrot.lane.b32.xlu0 %v8207_v16, %s8996_s13 }
 0x6e9   : > { %3933 = vrot.lane.b32.xlu1 %v8201_v48, %s8996_s13  ;;  %3931 = vrot.lane.b32.xlu0 %v8231_v15, %s8996_s13 }
 0x6ed   : > { %3929 = vrot.lane.b32.xlu1 %v8225_v4, %s8996_s13  ;;  %3875 = vrot.lane.b32.xlu0 %v8255_v21, %s9032_s20 }
 0x6f1   : > { %3937 = vrot.lane.b32.xlu1 %v8249_v10, %s8996_s13  ;;  %3959 = vrot.lane.b32.xlu0 %v8183_v7, %s9002_s14 }
 0x6f5   : > { %3957 = vrot.lane.b32.xlu1 %v8179_v36, %s9002_s14  ;;  %3907 = vrot.lane.b32.xlu0 %v8255_v21, %s9044_s17 }
 0x6f7   : > { %v3726_v14 = vpop.permute.xlu1 %3725 }
 0x6f9   : > { %3965 = vrot.lane.b32.xlu1 %v8201_v48, %s9002_s14  ;;  %3967 = vrot.lane.b32.xlu0 %v8207_v16, %s9002_s14 }
 0x6fb   : > { %v8316_v41 = vpop.permute.xlu1 %3757  ;;  %v3728_v40 = vpop.permute.xlu0 %3727 }
 0x6fd   : > { %3961 = vrot.lane.b32.xlu1 %v8225_v4, %s9002_s14  ;;  %3939 = vrot.lane.b32.xlu0 %v8255_v21, %s8996_s13 }
 0x6ff   : > { %v8322_v24 = vpop.permute.xlu1 %3789  ;;  %v8324_v38 = vpop.permute.xlu0 %3759 }
 0x701   : > { %3969 = vrot.lane.b32.xlu1 %v8249_v10, %s9002_s14  ;;  %3963 = vrot.lane.b32.xlu0 %v8231_v15, %s9002_s14 }
 0x703   : > { %v3822_v42 = vpop.permute.xlu1 %3821  ;;  %v8333_v8 = vpop.permute.xlu0 %3791 }
 0x705   : > { %3999 = vperm.xlu1 %5129, %v3995_v56   ;;  %3971 = vrot.lane.b32.xlu0 %v8255_v21, %s9002_s14 }
 0x707   : > { %v3862_v5 = vpop.permute.xlu1 %3861  ;;  %v3824_v47 = vpop.permute.xlu0 %3823 }
 0x709   : > { %4004 = vperm.xlu0 %5128, %v3996_v49  }
 0x70b   : > { %v3734_v61 = vpop.permute.xlu1 %3733  ;;  %v3864_v62 = vpop.permute.xlu0 %3863 }
 0x70c   : > { %v3741_v63 = vsel %vm688_vm7, %v3726_v14, %v3734_v61  ;;  %v3745_v32 = vsel %vm688_vm7, %v3734_v61, %v3726_v14 }
 0x70d   : > { %v3749_v26 = vmul.f32 %v3745_v32, %v9042_v53  ;;  %v3750_v39 = vmul.f32 %v3741_v63, %v5943_v6 }
 0x70f   : > { %v8344_v37 = vpop.permute.xlu1 %3765  ;;  %v3736_v23 = vpop.permute.xlu0 %3735 }
 0x710   : > { %v3742_v58 = vsel %vm688_vm7, %v3728_v40, %v3736_v23  ;;  %v3746_v43 = vsel %vm688_vm7, %v3736_v23, %v3728_v40 }
 0x711   : > { %v3751_v18 = vmul.f32 %v3746_v43, %v9042_v53  ;;  %v3752_v30 = vmul.f32 %v3742_v58, %v5943_v6 }
 0x713   : > { %v4891_v51 = vpack.c.bf16 %v3751_v18, %v3749_v26  ;;  %v8354_v0 = vpop.permute.xlu1 %3797  ;;  %v3768_v20 = vpop.permute.xlu0 %3767  ;;  %v4889_v1 = vpack.c.bf16 %v3752_v30, %v3750_v39 }
 0x714   : > { %v3809_v9 = vsel %vm774_vm9, %v8354_v0, %v8322_v24  ;;  %v3778_v14 = vsel %vm731_vm8, %v3768_v20, %v8324_v38 }
 0x715   : > { %4890 = vmatprep.subr.bf16.mxu0 %v4889_v1  ;;  %v8364_v3 = vmul.f32 %v3809_v9, %v6297_v27 }
 0x716   : > { %4892 = vmatpush1.bf16.msra.mxu0 %v4891_v51 }
 0x717   : > { %v3830_v31 = vpop.permute.xlu1 %3829  ;;  %v3800_v29 = vpop.permute.xlu0 %3799 }
 0x718   : > { %v3810_v33 = vsel %vm774_vm9, %v3800_v29, %v8333_v8  ;;  %v3837_v25 = vsel %vm903_vm12, %v3822_v42, %v3830_v31  ;;  %v3841_v54 = vsel %vm903_vm12, %v3830_v31, %v3822_v42 }
 0x719   : > { %v8367_v55 = vmul.f32 %v3810_v33, %v6297_v27  ;;  %v8380_v61 = vmul.f32 %v3841_v54, %v9056_v50  ;;  %v8383_v63 = vmul.f32 %v3837_v25, %v6388_v22 }
 0x71b   : > { %v3870_v57 = vpop.permute.xlu1 %3869  ;;  %v3832_v40 = vpop.permute.xlu0 %3831 }
 0x71c   : > { %v3838_v56 = vsel %vm903_vm12, %v3824_v47, %v3832_v40  ;;  %v3842_v49 = vsel %vm903_vm12, %v3832_v40, %v3824_v47  ;;  %v3877_v23 = vsel %vm952_vm13, %v3862_v5, %v3870_v57  ;;  %v3881_v58 = vsel %vm952_vm13, %v3870_v57, %v3862_v5 }
 0x71d   : > { %v8386_v32 = vmul.f32 %v3842_v49, %v9056_v50  ;;  %v8389_v42 = vmul.f32 %v3838_v56, %v6388_v22  ;;  %v8404_v51 = vmul.f32 %v3877_v23, %v9081_v2  ;;  %v8407_v1 = vmul.f32 %v3881_v58, %v9079_v17 }
 0x71f   : > { %v3730_v43 = vpop.permute.xlu1 %3729  ;;  %v3872_v26 = vpop.permute.xlu0 %3871  ;;  %9093 = vst [vmem:[#allocation5_spill] sm:$0xff] %v8404_v51 }
 0x720   : > { %v3878_v18 = vsel %vm952_vm13, %v3864_v62, %v3872_v26  ;;  %v3882_v30 = vsel %vm952_vm13, %v3872_v26, %v3864_v62  ;;  %v3773_v62 = vsel %vm731_vm8, %v8316_v41, %v8344_v37 }
 0x721   : > { %v8410_v5 = vmul.f32 %v3878_v18, %v9081_v2  ;;  %v8413_v9 = vmul.f32 %v3882_v30, %v9079_v17  ;;  %v3774_v18 = vsel %vm731_vm8, %v8324_v38, %v3768_v20  ;;  %v3777_v38 = vsel %vm731_vm8, %v8344_v37, %v8316_v41 }
 0x722   : > { %v3784_v34 = vmul.f32 %v3774_v18, %v6154_v46  ;;  %v3782_v20 = vmul.f32 %v3773_v62, %v6154_v46 }
 0x723   : > { %v3762_v33 = vpop.permute.xlu1 %3761  ;;  %v3732_v25 = vpop.permute.xlu0 %3731 }
 0x727   : > { %v3794_v54 = vpop.permute.xlu1 %3793  ;;  %v3764_v57 = vpop.permute.xlu0 %3763 }
 0x72b   : > { %v8419_v40 = vpop.permute.xlu1 %3825  ;;  %v3796_v56 = vpop.permute.xlu0 %3795 }
 0x72f   : > { %v8421_v49 = vpop.permute.xlu1 %3865  ;;  %v8423_v23 = vpop.permute.xlu0 %3827 }
 0x733   : > { %v3738_v58 = vpop.permute.xlu1 %3737  ;;  %v8425_v26 = vpop.permute.xlu0 %3867 }
 0x734   : > { %v3743_v30 = vsel %vm688_vm7, %v3730_v43, %v3738_v58  ;;  %v3747_v31 = vsel %vm688_vm7, %v3738_v58, %v3730_v43 }
 0x735   : > { %v3753_v58 = vmul.f32 %v3747_v31, %v9042_v53  ;;  %v3754_v44 = vmul.f32 %v3743_v30, %v5943_v6  ;;  %v3783_v31 = vmul.f32 %v3778_v14, %v6184_v59  ;;  %v3781_v30 = vmul.f32 %v3777_v38, %v6184_v59 }
 0x737   : > { %v8438_v47 = vpop.permute.xlu1 %3893  ;;  %v3740_v39 = vpop.permute.xlu0 %3739 }
 0x738   : > { %v3744_v35 = vsel %vm688_vm7, %v3732_v25, %v3740_v39  ;;  %v3748_v43 = vsel %vm688_vm7, %v3740_v39, %v3732_v25  ;;  %v3806_v25 = vsel %vm774_vm9, %v8333_v8, %v3800_v29  ;;  %v4899_v8 = vpack.c.bf16 %v3783_v31, %v3781_v30 }
 0x739   : > { %v3755_v60 = vmul.f32 %v3748_v43, %v9042_v53  ;;  %v3756_v52 = vmul.f32 %v3744_v35, %v5943_v6  ;;  %v4897_v35 = vpack.c.bf16 %v3784_v34, %v3782_v20  ;;  %v3816_v34 = vmul.f32 %v3806_v25, %v6256_v45 }
 0x73b   : > { %v4895_v18 = vpack.c.bf16 %v3755_v60, %v3753_v58  ;;  %v3770_v11 = vpop.permute.xlu1 %3769  ;;  %v8457_v51 = vpop.permute.xlu0 %3895  ;;  %v4893_v39 = vpack.c.bf16 %v3756_v52, %v3754_v44  ;;  %v3805_v52 = vsel %vm774_vm9, %v8322_v24, %v8354_v0 }
 0x73c   : > { %v3775_v41 = vsel %vm731_vm8, %v3762_v33, %v3770_v11  ;;  %v3779_v60 = vsel %vm731_vm8, %v3770_v11, %v3762_v33  ;;  %v3814_v0 = vmul.f32 %v3805_v52, %v6256_v45 }
 0x73d   : > { %4894 = vmatprep.subr.bf16.mxu0 %v4893_v39  ;;  %v3785_v11 = vmul.f32 %v3779_v60, %v6184_v59  ;;  %v3786_v33 = vmul.f32 %v3775_v41, %v6154_v46 }
 0x73e   : > { %4896 = vmatpush1.bf16.msra.mxu0 %v4895_v18  ;;  %v4905_v18 = vpack.c.bf16 %v3816_v34, %v3814_v0 }
 0x73f   : > { %v3802_v44 = vpop.permute.xlu1 %3801  ;;  %4898 = vmatprep.subr.bf16.mxu0 %v4897_v35  ;;  %v3772_v37 = vpop.permute.xlu0 %3771 }
 0x740   : > { %v3776_v29 = vsel %vm731_vm8, %v3764_v57, %v3772_v37  ;;  %v3780_v14 = vsel %vm731_vm8, %v3772_v37, %v3764_v57  ;;  %v3807_v57 = vsel %vm774_vm9, %v3794_v54, %v3802_v44  ;;  %v3811_v39 = vsel %vm774_vm9, %v3802_v44, %v3794_v54 }
 0x741   : > { %v3787_v62 = vmul.f32 %v3780_v14, %v6184_v59  ;;  %v3788_v24 = vmul.f32 %v3776_v29, %v6154_v46  ;;  %v3817_v41 = vmul.f32 %v3811_v39, %v6297_v27  ;;  %v3818_v60 = vmul.f32 %v3807_v57, %v6256_v45 }
 0x742   : > { %4900 = vmatpush1.bf16.msra.mxu0 %v4899_v8  ;;  %v9094_v54 = vpack.c.bf16 %v8367_v55, %v8364_v3  ;;  %v9095_v3 = vpack.c.bf16 %v8389_v42, %v8383_v63  ;;  %v9096_v42 = vpack.c.bf16 %v8386_v32, %v8380_v61  ;;  %v3855_v57 = vmul.f32 %v8183_v7, %v9067_v28 }
 0x743   : > { %v4903_v43 = vpack.c.bf16 %v3787_v62, %v3785_v11  ;;  %v3834_v58 = vpop.permute.xlu1 %3833  ;;  %v8482_v38 = vpop.permute.xlu0 %3903  ;;  %v4901_v20 = vpack.c.bf16 %v3788_v24, %v3786_v33  ;;  %v3856_v24 = vmul.f32 %v8207_v16, %v9064_v12  ;;  %v3854_v16 = vmul.f32 %v8201_v48, %v9064_v12 }
 0x744   : > { %v3843_v14 = vsel %vm903_vm12, %v3834_v58, %v8419_v40  ;;  %v3853_v61 = vmul.f32 %v8179_v36, %v9067_v28  ;;  %v3859_v48 = vmul.f32 %v8231_v15, %v9067_v28 }
 0x745   : > { %4902 = vmatprep.subr.bf16.mxu0 %v4901_v20  ;;  %v4921_v39 = vpack.c.bf16 %v3856_v24, %v3854_v16 }
 0x746   : > { %4904 = vmatpush1.bf16.msra.mxu0 %v4903_v43 }
 0x747   : > { %v3874_v31 = vpop.permute.xlu1 %3873  ;;  %4906 = vmatprep.subr.bf16.mxu0 %v4905_v18  ;;  %v3804_v25 = vpop.permute.xlu0 %3803 }
 0x748   : > { %v3808_v35 = vsel %vm774_vm9, %v3796_v56, %v3804_v25  ;;  %v3812_v30 = vsel %vm774_vm9, %v3804_v25, %v3796_v56  ;;  %v3839_v56 = vsel %vm903_vm12, %v8419_v40, %v3834_v58  ;;  %v3849_v40 = vmul.f32 %v3843_v14, %v9056_v50 }
 0x749   : > { %v3819_v52 = vmul.f32 %v3812_v30, %v6297_v27  ;;  %v3820_v37 = vmul.f32 %v3808_v35, %v6256_v45  ;;  %v3850_v0 = vmul.f32 %v3839_v56, %v6388_v22  ;;  %v3860_v25 = vmul.f32 %v8255_v21, %v9064_v12 }
 0x74a   : > { %4908 = vmatpush1.bf16.msra.mxu0 %v9094_v54  ;;  %v3858_v30 = vmul.f32 %v8249_v10, %v9064_v12  ;;  %v3883_v10 = vsel %vm952_vm13, %v3874_v31, %v8421_v49 }
 0x74b   : > { %v4911_v44 = vpack.c.bf16 %v3819_v52, %v3817_v41  ;;  %v3902_v8 = vpop.permute.xlu1 %3901  ;;  %v8499_v34 = vpop.permute.xlu0 %3899  ;;  %v4909_v29 = vpack.c.bf16 %v3820_v37, %v3818_v60  ;;  %v4923_v41 = vpack.c.bf16 %v3855_v57, %v3853_v61  ;;  %v3857_v60 = vmul.f32 %v8225_v4, %v9067_v28 }
 0x74c   : > { %v4925_v7 = vpack.c.bf16 %v3860_v25, %v3858_v30  ;;  %v3879_v37 = vsel %vm952_vm13, %v8421_v49, %v3874_v31  ;;  %v3913_v15 = vsel %vm1081_vm1, %v3902_v8, %v8438_v47  ;;  %v3914_v4 = vsel %vm1081_vm1, %v8482_v38, %v8457_v51 }
 0x74d   : > { %4910 = vmatprep.subr.bf16.mxu0 %v4909_v29  ;;  %v4927_v36 = vpack.c.bf16 %v3859_v48, %v3857_v60  ;;  %v3889_v56 = vmul.f32 %v3879_v37, %v9081_v2  ;;  %v3909_v49 = vsel %vm1081_vm1, %v8438_v47, %v3902_v8  ;;  %v3910_v47 = vsel %vm1081_vm1, %v8457_v51, %v8482_v38  ;;  %v9098_v8 = vld [vmem:[#allocation5_spill] sm:$0xff] }
 0x74e   : > { %4912 = vmatpush1.bf16.msra.mxu0 %v4911_v44  ;;  %v9097_v44 = vpack.c.bf16 %v8413_v9, %v8407_v1  ;;  %v3918_v1 = vmul.f32 %v3913_v15, %v9084_v19 }
 0x74f   : > { %v8507_v11 = vpop.permute.xlu1 %3897  ;;  %4914 = vmatprep.subr.bf16.mxu0 %v9095_v3  ;;  %v3836_v55 = vpop.permute.xlu0 %3835  ;;  %v3890_v3 = vmul.f32 %v3883_v10, %v9079_v17 }
 0x750   : > { %v3840_v33 = vsel %vm903_vm12, %v8423_v23, %v3836_v55  ;;  %v3844_v62 = vsel %vm903_vm12, %v3836_v55, %v8423_v23 }
 0x751   : > { %v3851_v43 = vmul.f32 %v3844_v62, %v9056_v50  ;;  %v3852_v63 = vmul.f32 %v3840_v33, %v6388_v22  ;;  %v9099_v33 = vpack.c.bf16 %v8410_v5, %v9098_v8  ;;  %v3920_v62 = vmul.f32 %v3914_v4, %v9084_v19 }
 0x752   : > { %4916 = vmatpush1.bf16.msra.mxu0 %v9096_v42 }
 0x753   : > { %v4919_v58 = vpack.c.bf16 %v3851_v43, %v3849_v40  ;;  %v3906_v20 = vpop.permute.xlu1 %3905  ;;  %v8527_v18 = vpop.permute.xlu0 %3927  ;;  %v4917_v23 = vpack.c.bf16 %v3852_v63, %v3850_v0  ;;  %v4937_v51 = vpack.c.bf16 %v3920_v62, %v3918_v1 }
 0x754   : > { %v3911_v42 = vsel %vm1081_vm1, %v8507_v11, %v3906_v20  ;;  %v3915_v5 = vsel %vm1081_vm1, %v3906_v20, %v8507_v11 }
 0x755   : > { %4918 = vmatprep.subr.bf16.mxu0 %v4917_v23  ;;  %v3922_v30 = vmul.f32 %v3915_v5, %v9084_v19 }
 0x756   : > { %4920 = vmatpush1.bf16.msra.mxu0 %v4919_v58 }
 0x757   : > { %v3926_v32 = vpop.permute.xlu1 %3925  ;;  %4922 = vmatprep.subr.bf16.mxu0 %v4921_v39  ;;  %v3936_v35 = vpop.permute.xlu0 %3935 }
 0x758   : > { %v3946_v25 = vsel %vm1124_vm2, %v3936_v35, %v8527_v18 }
 0x75a   : > { %4924 = vmatpush1.bf16.msra.mxu0 %v4923_v41  ;;  %v9101_v41 = vld [vmem:[#allocation9_spill] sm:$0xff] }
 0x75b   : > { %v3934_v21 = vpop.permute.xlu1 %3933  ;;  %4926 = vmatprep.subr.bf16.mxu0 %v4925_v7  ;;  %v8543_v52 = vpop.permute.xlu0 %3931 }
 0x75c   : > { %v3945_v38 = vsel %vm1124_vm2, %v3934_v21, %v3926_v32  ;;  %v3941_v61 = vsel %vm1124_vm2, %v3926_v32, %v3934_v21  ;;  %v3942_v32 = vsel %vm1124_vm2, %v8527_v18, %v3936_v35  ;;  %v3952_v21 = vmul.f32 %v3946_v25, %v9101_v41  ;;  %v3993_v25 = vld [vmem:[%s8891_s8 + $0x20] sm:$0xff] }
 0x75d   : > { %v3950_v48 = vmul.f32 %v3945_v38, %v9101_v41 }
 0x75e   : > { %4928 = vmatpush1.bf16.msra.mxu0 %v4927_v36  ;;  %v9102_v36 = vld [vmem:[#allocation16_spill] sm:$0xff] }
 0x75f   : > { %v3930_v54 = vpop.permute.xlu1 %3929  ;;  %4930 = vmatprep.subr.bf16.mxu0 %v9097_v44  ;;  %v3876_v29 = vpop.permute.xlu0 %3875  ;;  %v3949_v37 = vmul.f32 %v3941_v61, %v9102_v36 }
 0x760   : > { %v3880_v31 = vsel %vm952_vm13, %v8425_v26, %v3876_v29  ;;  %v3884_v14 = vsel %vm952_vm13, %v3876_v29, %v8425_v26  ;;  %v9100_v26 = vld [vmem:[#allocation11_spill] sm:$0xff] }
 0x761   : > { %v3891_v9 = vmul.f32 %v3880_v31, %v9081_v2  ;;  %v3892_v55 = vmul.f32 %v3884_v14, %v9079_v17  ;;  %v3917_v24 = vmul.f32 %v3909_v49, %v9100_v26  ;;  %v3919_v58 = vmul.f32 %v3910_v47, %v9100_v26 }
 0x762   : > { %4932 = vmatpush1.bf16.msra.mxu0 %v9099_v33  ;;  %v3921_v16 = vmul.f32 %v3911_v42, %v9100_v26  ;;  %v4945_v49 = vpack.c.bf16 %v3952_v21, %v3950_v48  ;;  %v9103_v33 = vld [vmem:[#allocation15_spill] sm:$0xff] }
 0x763   : > { %v4935_v40 = vpack.c.bf16 %v3891_v9, %v3889_v56  ;;  %v3938_v0 = vpop.permute.xlu1 %3937  ;;  %v3960_v43 = vpop.permute.xlu0 %3959  ;;  %v4933_v63 = vpack.c.bf16 %v3892_v55, %v3890_v3  ;;  %v4939_v23 = vpack.c.bf16 %v3919_v58, %v3917_v24  ;;  %v3951_v56 = vmul.f32 %v3942_v32, %v9102_v36  ;;  %v3992_v32 = vld [vmem:[%s8891_s8 + $0x18] sm:$0xff] }
 0x764   : > { %v3943_v44 = vsel %vm1124_vm2, %v3930_v54, %v3938_v0  ;;  %v3947_v29 = vsel %vm1124_vm2, %v3938_v0, %v3930_v54 }
 0x765   : > { %4934 = vmatprep.subr.bf16.mxu0 %v4933_v63  ;;  %v4947_v31 = vpack.c.bf16 %v3951_v56, %v3949_v37  ;;  %v3953_v14 = vmul.f32 %v3943_v44, %v9102_v36  ;;  %v3954_v3 = vmul.f32 %v3947_v29, %v9101_v41 }
 0x766   : > { %4936 = vmatpush1.bf16.msra.mxu0 %v4935_v40 }
 0x767   : > { %v3958_v57 = vpop.permute.xlu1 %3957  ;;  %4938 = vmatprep.subr.bf16.mxu0 %v4937_v51  ;;  %v3908_v39 = vpop.permute.xlu0 %3907  ;;  %v9104_v51 = vld [vmem:[#allocation14_spill] sm:$0xff] }
 0x768   : > { %v3912_v11 = vsel %vm1081_vm1, %v8499_v34, %v3908_v39  ;;  %v3916_v20 = vsel %vm1081_vm1, %v3908_v39, %v8499_v34 }
 0x769   : > { %v3923_v7 = vmul.f32 %v3912_v11, %v9100_v26  ;;  %v3924_v60 = vmul.f32 %v3916_v20, %v9084_v19 }
 0x76a   : > { %4940 = vmatpush1.bf16.msra.mxu0 %v4939_v23 }
 0x76b   : > { %v4943_v10 = vpack.c.bf16 %v3923_v7, %v3921_v16  ;;  %v3966_v15 = vpop.permute.xlu1 %3965  ;;  %v3968_v34 = vpop.permute.xlu0 %3967  ;;  %v4941_v4 = vpack.c.bf16 %v3924_v60, %v3922_v30 }
 0x76c   : > { %v3977_v18 = vsel %vm1167_vm3, %v3966_v15, %v3958_v57  ;;  %v3978_v35 = vsel %vm1167_vm3, %v3968_v34, %v3960_v43  ;;  %v3973_v54 = vsel %vm1167_vm3, %v3958_v57, %v3966_v15  ;;  %v3974_v55 = vsel %vm1167_vm3, %v3960_v43, %v3968_v34  ;;  %v3989_v57 = vld [vmem:[%s8891_s8] sm:$0xff]  ;;  %v3991_v15 = vld [vmem:[%s8891_s8 + $0x10] sm:$0xff]  ;;  %v3994_v34 = vld [vmem:[%s8891_s8 + $0x28] sm:$0xff] }
 0x76d   : > { %4942 = vmatprep.subr.bf16.mxu0 %v4941_v4  ;;  %v3982_v62 = vmul.f32 %v3977_v18, %v9103_v33  ;;  %v3984_v24 = vmul.f32 %v3978_v35, %v9103_v33  ;;  %v3981_v5 = vmul.f32 %v3973_v54, %v9104_v51  ;;  %v3983_v38 = vmul.f32 %v3974_v55, %v9104_v51 }
 0x76e   : > { %4944 = vmatpush1.bf16.msra.mxu0 %v4943_v10  ;;  %v9105_v10 = vmov 0.0  }
 0x76f   : > { %v3962_v1 = vpop.permute.xlu1 %3961  ;;  %4946 = vmatprep.subr.bf16.mxu0 %v4945_v49  ;;  %v3940_v9 = vpop.permute.xlu0 %3939  ;;  %v4953_v23 = vpack.c.bf16 %v3984_v24, %v3982_v62  ;;  %v4955_v61 = vpack.c.bf16 %v3983_v38, %v3981_v5  ;;  %v4316_v5 = vld [vmem:[%s8894_s11 + $0x8] sm:$0xff] }
 0x770   : > { %v3944_v47 = vsel %vm1124_vm2, %v8543_v52, %v3940_v9  ;;  %v3948_v8 = vsel %vm1124_vm2, %v3940_v9, %v8543_v52 }
 0x771   : > { %v3955_v40 = vmul.f32 %v3944_v47, %v9102_v36  ;;  %v3956_v0 = vmul.f32 %v3948_v8, %v9101_v41 }
 0x772   : > { %4948 = vmatpush1.bf16.msra.mxu0 %v4947_v31 }
 0x773   : > { %v4951_v63 = vpack.c.bf16 %v3955_v40, %v3953_v14  ;;  %v3970_v42 = vpop.permute.xlu1 %3969  ;;  %v3964_v43 = vpop.permute.xlu0 %3963  ;;  %v4949_v58 = vpack.c.bf16 %v3956_v0, %v3954_v3 }
 0x774   : > { %v3975_v52 = vsel %vm1167_vm3, %v3962_v1, %v3970_v42  ;;  %v3979_v16 = vsel %vm1167_vm3, %v3970_v42, %v3962_v1 }
 0x775   : > { %4950 = vmatprep.subr.bf16.mxu0 %v4949_v58  ;;  %v3985_v30 = vmul.f32 %v3975_v52, %v9104_v51  ;;  %v3986_v48 = vmul.f32 %v3979_v16, %v9103_v33 }
 0x776   : > { %4952 = vmatpush1.bf16.msra.mxu0 %v4951_v63 }
 0x777   : > { %4954 = vmatprep.subr.bf16.mxu0 %v4953_v23  ;;  %v3972_v39 = vpop.permute.xlu0 %3971 }
 0x778   : > { %v3976_v11 = vsel %vm1167_vm3, %v3964_v43, %v3972_v39  ;;  %v3980_v20 = vsel %vm1167_vm3, %v3972_v39, %v3964_v43 }
 0x779   : > { %v3987_v7 = vmul.f32 %v3976_v11, %v9104_v51  ;;  %v3988_v60 = vmul.f32 %v3980_v20, %v9103_v33  ;;  %4078 = vmatmul.mubr.f32.vlgmr.msra.gmra.mrb[8].mxu0 %v3989_v57 }
 0x77a   : > { %4956 = vmatpush1.bf16.msra.mxu0 %v4955_v61  ;;  %4083 = vmatprep.mubr.f32.mxu0 %v3993_v25 }
 0x77b   : > { %v4959_v21 = vpack.c.bf16 %v3987_v7, %v3985_v30  ;;  %v4957_v37 = vpack.c.bf16 %v3988_v60, %v3986_v48 }
 0x77d   : > { %4084 = vmatmul.mubr.f32.gmra.mrb[10].mxu0 %v3992_v32  ;;  %4958 = vmatprep.subr.bf16.mxu0 %v4957_v37 }
 0x77e   : > { %4960 = vmatpush1.bf16.msra.mxu0 %v4959_v21  ;;  %4154 = vmatprep.mubr.f32.mxu0 %v9105_v10 }
 0x781   : > { %4579 = vmatmul.mubr.msk.f32.vlgmr.msra.gmra.mrb[8].mxu0 %vm1528_vm15, %v3991_v15 }
 0x782   : > { %4160 = vmatprep.mubr.f32.mxu0 %v9105_v10 }
 0x784   : > { %v4000_v4 = vpop.permute.xlu1 %3999 }
 0x785   : > { %4580 = vmatmul.mubr.msk.f32.gmra.mrb[10].mxu0 %vm1528_vm15, %v3994_v34 }
 0x788   : > { %v4005_v35 = vpop.permute.xlu0 %4004 }
 0x854   : > { %v4156_v44 = vpop.f32.mrb[8].mxu0 }
 0x855   : > { %v5021_v29 = vadd.f32 %v4156_v44, %v4000_v4  ;;  %v4158_v56 = vpop.f32.mrb[9].mxu0 }
 0x856   : > { %v5022_v49 = vadd.f32 %v4158_v56, %v4000_v4 }
 0x857   : > { %vm4167_vm4 = vcmp.ge.f32.partialorder %v5021_v29, 0.0  ;;  %v4171_v18 = vmul.f32 0.01, %v5021_v29 }
 0x858   : > { %v4172_v31 = vmul.f32 0.01, %v5022_v49  ;;  %v4162_v14 = vpop.f32.mrb[10].mxu0  ;;  %vm4168_vm5 = vcmp.ge.f32.partialorder %v5022_v49, 0.0 }
 0x859   : > { %v4175_v3 = vsel %vm4167_vm4, %v5021_v29, %v4171_v18  ;;  %v5023_v1 = vadd.f32 %v4162_v14, %v4005_v35  ;;  %v4164_v9 = vpop.f32.mrb[11].mxu0 }
 0x85a   : > { %v5024_v54 = vadd.f32 %v4164_v9, %v4005_v35  ;;  %4179 = vrot.lane.b32.xlu1 %v4175_v3, %s9106_s16  ;;  %v4176_v47 = vsel %vm4168_vm5, %v5022_v49, %v4172_v31  ;;  %v8676_v40 = vmul.f32 %v4175_v3, %v9067_v28 }
 0x85b   : > { %vm4169_vm6 = vcmp.ge.f32.partialorder %v5023_v1, 0.0  ;;  %v4173_v55 = vmul.f32 0.01, %v5023_v1  ;;  %v8682_v63 = vmul.f32 %v4176_v47, %v9064_v12 }
 0x85c   : > { %vm4170_vm15 = vcmp.ge.f32.partialorder %v5024_v54, 0.0  ;;  %v4174_v8 = vmul.f32 0.01, %v5024_v54 }
 0x85d   : > { %v4177_v62 = vsel %vm4169_vm6, %v5023_v1, %v4173_v55 }
 0x85e   : > { %v4178_v24 = vsel %vm4170_vm15, %v5024_v54, %v4174_v8  ;;  %4195 = vrot.lane.b32.xlu1 %v4175_v3, %s9107_s26  ;;  %4181 = vrot.lane.b32.xlu0 %v4177_v62, %s9106_s16  ;;  %v8679_v0 = vmul.f32 %v4177_v62, %v9067_v28  ;;  %v4315_v28 = vld [vmem:[%s8894_s11] sm:$0xff] }
 0x85f   : > { %v8685_v42 = vmul.f32 %v4178_v24, %v9064_v12  ;;  %v4312_v12 = vld [vmem:[%s8893_s10 + $0x8] sm:$0xff] }
 0x860   : > { %v4979_v43 = vpack.c.bf16 %v8679_v0, %v8676_v40  ;;  %4581 = vmatprep.mubr.msk.f32.mxu1 %vm4327_vm10, %v4312_v12 }
 0x861   : > { %v4977_v58 = vpack.c.bf16 %v8685_v42, %v8682_v63 }
 0x862   : > { %4211 = vrot.lane.b32.xlu1 %v4175_v3, %s9091_s30  ;;  %4197 = vrot.lane.b32.xlu0 %v4177_v62, %s9107_s26 }
 0x866   : > { %4227 = vrot.lane.b32.xlu1 %v4175_v3, %s9092_s15  ;;  %4213 = vrot.lane.b32.xlu0 %v4177_v62, %s9091_s30 }
 0x86a   : > { %4247 = vrot.lane.b32.xlu1 %v4175_v3, %s9032_s20  ;;  %4229 = vrot.lane.b32.xlu0 %v4177_v62, %s9092_s15 }
 0x86e   : > { %4263 = vrot.lane.b32.xlu1 %v4175_v3, %s9044_s17  ;;  %4249 = vrot.lane.b32.xlu0 %v4177_v62, %s9032_s20 }
 0x872   : > { %4279 = vrot.lane.b32.xlu1 %v4175_v3, %s8996_s13  ;;  %4265 = vrot.lane.b32.xlu0 %v4177_v62, %s9044_s17 }
 0x876   : > { %4183 = vrot.lane.b32.xlu1 %v4176_v47, %s9106_s16  ;;  %4281 = vrot.lane.b32.xlu0 %v4177_v62, %s8996_s13 }
 0x87a   : > { %4199 = vrot.lane.b32.xlu1 %v4176_v47, %s9107_s26  ;;  %4185 = vrot.lane.b32.xlu0 %v4178_v24, %s9106_s16 }
 0x87e   : > { %4215 = vrot.lane.b32.xlu1 %v4176_v47, %s9091_s30  ;;  %4201 = vrot.lane.b32.xlu0 %v4178_v24, %s9107_s26 }
 0x882   : > { %4231 = vrot.lane.b32.xlu1 %v4176_v47, %s9092_s15  ;;  %4217 = vrot.lane.b32.xlu0 %v4178_v24, %s9091_s30  ;;  %s401_s30 = scalar_lea.vmem [#allocation3], %s4524_s23 }
 0x886   : > { %4295 = vrot.lane.b32.xlu1 %v4175_v3, %s9002_s14  ;;  %4233 = vrot.lane.b32.xlu0 %v4178_v24, %s9092_s15  ;;  %s4592_s15 = sshll.u32 (%p5287_p4), %s5275_s24, 4 }
 0x88a   : > { %4251 = vrot.lane.b32.xlu1 %v4176_v47, %s9032_s20  ;;  %4297 = vrot.lane.b32.xlu0 %v4177_v62, %s9002_s14 }
 0x88e   : > { %4267 = vrot.lane.b32.xlu1 %v4176_v47, %s9044_s17  ;;  %4253 = vrot.lane.b32.xlu0 %v4178_v24, %s9032_s20 }
 0x892   : > { %4283 = vrot.lane.b32.xlu1 %v4176_v47, %s8996_s13  ;;  %4269 = vrot.lane.b32.xlu0 %v4178_v24, %s9044_s17  ;;  %s4448_s17 = scalar_lea.vmem (%p5287_p4), %s8895_s12, %s4592_s15 }
 0x896   : > { %4299 = vrot.lane.b32.xlu1 %v4176_v47, %s9002_s14  ;;  %4285 = vrot.lane.b32.xlu0 %v4178_v24, %s8996_s13 }
 0x89a   : > { %4319 = vperm.xlu1 %5129, %v4315_v28   ;;  %4301 = vrot.lane.b32.xlu0 %v4178_v24, %s9002_s14 }
 0x89e   : > { %4324 = vperm.xlu0 %5128, %v4316_v5  }
 0x8cc   : > { %v4180_v38 = vpop.permute.xlu1 %4179 }
 0x8d0   : > { %v4196_v23 = vpop.permute.xlu1 %4195  ;;  %v4182_v52 = vpop.permute.xlu0 %4181 }
 0x8d4   : > { %v4212_v16 = vpop.permute.xlu1 %4211  ;;  %v4198_v57 = vpop.permute.xlu0 %4197 }
 0x8d8   : > { %v4228_v39 = vpop.permute.xlu1 %4227  ;;  %v4214_v25 = vpop.permute.xlu0 %4213 }
 0x8dc   : > { %v8730_v61 = vpop.permute.xlu1 %4247  ;;  %v4230_v11 = vpop.permute.xlu0 %4229 }
 0x8e0   : > { %v8732_v20 = vpop.permute.xlu1 %4263  ;;  %v8734_v30 = vpop.permute.xlu0 %4249 }
 0x8e4   : > { %v8736_v48 = vpop.permute.xlu1 %4279  ;;  %v8738_v7 = vpop.permute.xlu0 %4265 }
 0x8e8   : > { %v4184_v60 = vpop.permute.xlu1 %4183  ;;  %v8740_v32 = vpop.permute.xlu0 %4281 }
 0x8e9   : > { %v4187_v21 = vsel %vm688_vm7, %v4180_v38, %v4184_v60  ;;  %v4189_v37 = vsel %vm688_vm7, %v4184_v60, %v4180_v38 }
 0x8ea   : > { %v4191_v44 = vmul.f32 %v4189_v37, %v9042_v53  ;;  %v4192_v29 = vmul.f32 %v4187_v21, %v5943_v6 }
 0x8ec   : > { %v4200_v10 = vpop.permute.xlu1 %4199  ;;  %v4186_v15 = vpop.permute.xlu0 %4185 }
 0x8ed   : > { %v4188_v34 = vsel %vm688_vm7, %v4182_v52, %v4186_v15  ;;  %v4190_v4 = vsel %vm688_vm7, %v4186_v15, %v4182_v52  ;;  %v4203_v18 = vsel %vm731_vm8, %v4196_v23, %v4200_v10  ;;  %v4205_v35 = vsel %vm731_vm8, %v4200_v10, %v4196_v23 }
 0x8ee   : > { %v4193_v56 = vmul.f32 %v4190_v4, %v9042_v53  ;;  %v4194_v49 = vmul.f32 %v4188_v34, %v5943_v6  ;;  %v4207_v53 = vmul.f32 %v4205_v35, %v6184_v59  ;;  %v4208_v6 = vmul.f32 %v4203_v18, %v6154_v46 }
 0x8f0   : > { %v4963_v31 = vpack.c.bf16 %v4193_v56, %v4191_v44  ;;  %v4216_v14 = vpop.permute.xlu1 %4215  ;;  %v4202_v3 = vpop.permute.xlu0 %4201  ;;  %v4961_v1 = vpack.c.bf16 %v4194_v49, %v4192_v29 }
 0x8f1   : > { %v4204_v9 = vsel %vm731_vm8, %v4198_v57, %v4202_v3  ;;  %v4206_v54 = vsel %vm731_vm8, %v4202_v3, %v4198_v57  ;;  %v4219_v8 = vsel %vm774_vm9, %v4212_v16, %v4216_v14  ;;  %v4221_v62 = vsel %vm774_vm9, %v4216_v14, %v4212_v16 }
 0x8f2   : > { %v4209_v55 = vmul.f32 %v4206_v54, %v6184_v59  ;;  %v4210_v47 = vmul.f32 %v4204_v9, %v6154_v46  ;;  %4962 = vmatprep.subr.bf16.mxu1 %v4961_v1  ;;  %v4223_v46 = vmul.f32 %v4221_v62, %v6297_v27  ;;  %v4224_v23 = vmul.f32 %v4219_v8, %v6256_v45 }
 0x8f3   : > { %4964 = vmatpush1.bf16.msra.mxu1 %v4963_v31 }
 0x8f4   : > { %v4967_v24 = vpack.c.bf16 %v4209_v55, %v4207_v53  ;;  %v4232_v12 = vpop.permute.xlu1 %4231  ;;  %v4218_v28 = vpop.permute.xlu0 %4217  ;;  %v4965_v5 = vpack.c.bf16 %v4210_v47, %v4208_v6 }
 0x8f5   : > { %v4220_v38 = vsel %vm774_vm9, %v4214_v25, %v4218_v28  ;;  %v4222_v59 = vsel %vm774_vm9, %v4218_v28, %v4214_v25  ;;  %v4235_v16 = vsel %vm903_vm12, %v4228_v39, %v4232_v12  ;;  %v4237_v60 = vsel %vm903_vm12, %v4232_v12, %v4228_v39 }
 0x8f6   : > { %v4225_v52 = vmul.f32 %v4222_v59, %v6297_v27  ;;  %v4226_v57 = vmul.f32 %v4220_v38, %v6256_v45  ;;  %4966 = vmatprep.subr.bf16.mxu1 %v4965_v5  ;;  %v4239_v45 = vmul.f32 %v4237_v60, %v9056_v50  ;;  %v4240_v34 = vmul.f32 %v4235_v16, %v6388_v22 }
 0x8f7   : > { %4968 = vmatpush1.bf16.msra.mxu1 %v4967_v24 }
 0x8f8   : > { %v4971_v21 = vpack.c.bf16 %v4225_v52, %v4223_v46  ;;  %v4296_v37 = vpop.permute.xlu1 %4295  ;;  %v4234_v10 = vpop.permute.xlu0 %4233  ;;  %v4969_v25 = vpack.c.bf16 %v4226_v57, %v4224_v23 }
 0x8f9   : > { %v4236_v15 = vsel %vm903_vm12, %v4230_v11, %v4234_v10  ;;  %v4238_v27 = vsel %vm903_vm12, %v4234_v10, %v4230_v11 }
 0x8fa   : > { %v4241_v4 = vmul.f32 %v4238_v27, %v9056_v50  ;;  %v4242_v44 = vmul.f32 %v4236_v15, %v6388_v22  ;;  %4970 = vmatprep.subr.bf16.mxu1 %v4969_v25 }
 0x8fb   : > { %4972 = vmatpush1.bf16.msra.mxu1 %v4971_v21  ;;  %v4311_v21 = vld [vmem:[%s8893_s10] sm:$0xff] }
 0x8fc   : > { %v4975_v39 = vpack.c.bf16 %v4241_v4, %v4239_v45  ;;  %v4252_v29 = vpop.permute.xlu1 %4251  ;;  %v4298_v56 = vpop.permute.xlu0 %4297  ;;  %v4973_v49 = vpack.c.bf16 %v4242_v44, %v4240_v34 }
 0x8fd   : > { %v4255_v18 = vsel %vm952_vm13, %v8730_v61, %v4252_v29  ;;  %v4257_v11 = vsel %vm952_vm13, %v4252_v29, %v8730_v61 }
 0x8fe   : > { %4974 = vmatprep.subr.bf16.mxu1 %v4973_v49  ;;  %v4259_v14 = vmul.f32 %v4255_v18, %v9081_v2  ;;  %v4260_v3 = vmul.f32 %v4257_v11, %v9079_v17 }
 0x8ff   : > { %4976 = vmatpush1.bf16.msra.mxu1 %v4975_v39 }
 0x900   : > { %v4268_v35 = vpop.permute.xlu1 %4267  ;;  %4978 = vmatprep.subr.bf16.mxu1 %v4977_v58  ;;  %v4254_v22 = vpop.permute.xlu0 %4253 }
 0x901   : > { %v4256_v50 = vsel %vm952_vm13, %v8734_v30, %v4254_v22  ;;  %v4258_v31 = vsel %vm952_vm13, %v4254_v22, %v8734_v30  ;;  %v4271_v63 = vsel %vm1081_vm1, %v8732_v20, %v4268_v35  ;;  %v4273_v42 = vsel %vm1081_vm1, %v4268_v35, %v8732_v20 }
 0x902   : > { %v4261_v61 = vmul.f32 %v4256_v50, %v9081_v2  ;;  %v4262_v1 = vmul.f32 %v4258_v31, %v9079_v17  ;;  %v4275_v53 = vmul.f32 %v4271_v63, %v9100_v26  ;;  %v4276_v20 = vmul.f32 %v4273_v42, %v9084_v19 }
 0x903   : > { %4980 = vmatpush1.bf16.msra.mxu1 %v4979_v43 }
 0x904   : > { %v4983_v58 = vpack.c.bf16 %v4261_v61, %v4259_v14  ;;  %v4284_v30 = vpop.permute.xlu1 %4283  ;;  %v4270_v9 = vpop.permute.xlu0 %4269  ;;  %v4981_v54 = vpack.c.bf16 %v4262_v1, %v4260_v3 }
 0x905   : > { %v4272_v17 = vsel %vm1081_vm1, %v8738_v7, %v4270_v9  ;;  %v4274_v2 = vsel %vm1081_vm1, %v4270_v9, %v8738_v7  ;;  %v4287_v0 = vsel %vm1124_vm2, %v8736_v48, %v4284_v30  ;;  %v4289_v43 = vsel %vm1124_vm2, %v4284_v30, %v8736_v48 }
 0x906   : > { %v4277_v6 = vmul.f32 %v4272_v17, %v9100_v26  ;;  %v4278_v40 = vmul.f32 %v4274_v2, %v9084_v19  ;;  %4982 = vmatprep.subr.bf16.mxu1 %v4981_v54  ;;  %v4291_v62 = vmul.f32 %v4287_v0, %v9102_v36  ;;  %v4292_v24 = vmul.f32 %v4289_v43, %v9101_v41 }
 0x907   : > { %4984 = vmatpush1.bf16.msra.mxu1 %v4983_v58 }
 0x908   : > { %v4987_v55 = vpack.c.bf16 %v4277_v6, %v4275_v53  ;;  %v4300_v7 = vpop.permute.xlu1 %4299  ;;  %v4286_v47 = vpop.permute.xlu0 %4285  ;;  %v4985_v8 = vpack.c.bf16 %v4278_v40, %v4276_v20 }
 0x909   : > { %v4288_v26 = vsel %vm1124_vm2, %v8740_v32, %v4286_v47  ;;  %v4290_v19 = vsel %vm1124_vm2, %v4286_v47, %v8740_v32  ;;  %v4303_v28 = vsel %vm1167_vm3, %v4296_v37, %v4300_v7  ;;  %v4305_v5 = vsel %vm1167_vm3, %v4300_v7, %v4296_v37 }
 0x90a   : > { %v4293_v12 = vmul.f32 %v4288_v26, %v9102_v36  ;;  %v4294_v48 = vmul.f32 %v4290_v19, %v9101_v41  ;;  %4986 = vmatprep.subr.bf16.mxu1 %v4985_v8  ;;  %v4307_v36 = vmul.f32 %v4303_v28, %v9104_v51  ;;  %v4308_v41 = vmul.f32 %v4305_v5, %v9103_v33 }
 0x90b   : > { %4988 = vmatpush1.bf16.msra.mxu1 %v4987_v55 }
 0x90c   : > { %v4991_v38 = vpack.c.bf16 %v4293_v12, %v4291_v62  ;;  %v4302_v59 = vpop.permute.xlu0 %4301  ;;  %v4989_v46 = vpack.c.bf16 %v4294_v48, %v4292_v24 }
 0x90d   : > { %v4304_v32 = vsel %vm1167_vm3, %v4298_v56, %v4302_v59  ;;  %v4306_v23 = vsel %vm1167_vm3, %v4302_v59, %v4298_v56 }
 0x90e   : > { %v4309_v52 = vmul.f32 %v4304_v32, %v9104_v51  ;;  %v4310_v57 = vmul.f32 %v4306_v23, %v9103_v33  ;;  %4990 = vmatprep.subr.bf16.mxu1 %v4989_v46  ;;  %v4313_v33 = vld [vmem:[%s8893_s10 + $0x10] sm:$0xff] }
 0x90f   : > { %4992 = vmatpush1.bf16.msra.mxu1 %v4991_v38 }
 0x910   : > { %v4995_v16 = vpack.c.bf16 %v4309_v52, %v4307_v36  ;;  %v4993_v60 = vpack.c.bf16 %v4310_v57, %v4308_v41 }
 0x912   : > { %4994 = vmatprep.subr.bf16.mxu1 %v4993_v60 }
 0x913   : > { %4996 = vmatpush1.bf16.msra.mxu1 %v4995_v16 }
 0x916   : > { %4399 = vmatmul.mubr.f32.vlgmr.msra.gmra.mrb[32].mxu1 %v4311_v21 }
 0x917   : > { %4582 = vmatprep.mubr.msk.f32.mxu1 %vm4327_vm10, %v4314_v13 }
 0x919   : > { %v4320_v51 = vpop.permute.xlu1 %4319 }
 0x91a   : > { %4405 = vmatmul.mubr.f32.gmra.mrb[34].mxu1 %v4313_v33 }
 0x91d   : > { %v4325_v45 = vpop.permute.xlu0 %4324 }
 0x9e9   : > { %v4400_v37 = vpop.f32.mrb[32].mxu1 }
 0x9ea   : > { %v4401_v10 = vadd.f32 %v4400_v37, %v4320_v51  ;;  %v4402_v25 = vpop.f32.mrb[33].mxu1 }
 0x9eb   : > { %v4403_v15 = vadd.f32 %v4402_v25, %v4320_v51 }
 0x9ec   : > { %v4583_v27 = vmul.f32 -1.442695, %v4401_v10 }
 0x9ed   : > { %v4584_v34 = vmul.f32 -1.442695, %v4403_v15  ;;  %v4406_v4 = vpop.f32.mrb[34].mxu1 }
 0x9ee   : > { %5130 = vpow2.f32 %v4583_v27  ;;  %v4407_v44 = vadd.f32 %v4406_v4, %v4325_v45  ;;  %v4408_v39 = vpop.f32.mrb[35].mxu1 }
 0x9ef   : > { %5132 = vpow2.f32 %v4584_v34  ;;  %v4409_v29 = vadd.f32 %v4408_v39, %v4325_v45 }
 0x9f0   : > { %v4585_v56 = vmul.f32 -1.442695, %v4407_v44 }
 0x9f1   : > { %v4586_v49 = vmul.f32 -1.442695, %v4409_v29 }
 0x9f2   : > { %5134 = vpow2.f32 %v4585_v56 }
 0x9f3   : > { %5136 = vpow2.f32 %v4586_v49 }
 0x9f8   : > { %v5131_v18 = vpop.eup %5130 }
 0x9f9   : > { %v5133_v11 = vpop.eup %5132  ;;  %v4423_v35 = vadd.f32 1.0, %v5131_v18 }
 0x9fa   : > { %v4424_v22 = vadd.f32 1.0, %v5133_v11 }
 0x9fb   : > { %5138 = vrcp.f32 %v4423_v35 }
 0x9fc   : > { %v5135_v50 = vpop.eup %5134  ;;  %5140 = vrcp.f32 %v4424_v22 }
 0x9fd   : > { %v5137_v31 = vpop.eup %5136  ;;  %v4425_v14 = vadd.f32 1.0, %v5135_v50 }
 0x9fe   : > { %v4426_v3 = vadd.f32 1.0, %v5137_v31 }
 0x9ff   : > { %5142 = vrcp.f32 %v4425_v14 }
 0xa00   : > { %5144 = vrcp.f32 %v4426_v3 }
 0xa05   : > { %v5139_v61 = vpop.eup %5138  ;;  %4445 = sbr.rel (!%p5287_p4) target bundleno = 2580 (0xa14), region = 72 }
 0xa06   : > { %v5141_v1 = vpop.eup %5140  ;;  %4435 = vst [vmem:[%s401_s30] sm:$0xff] %v5139_v61 }
 0xa07   : > { %4436 = vst [vmem:[%s401_s30 + $0x8] sm:$0xff] %v5141_v1 }
 0xa09   : > { %v5143_v63 = vpop.eup %5142 }
 0xa0a   : > { %v5145_v42 = vpop.eup %5144  ;;  %4437 = vst [vmem:[%s401_s30 + $0x10] sm:$0xff] %v5143_v63 }
 0xa0b   : > { %4438 = vst [vmem:[%s401_s30 + $0x18] sm:$0xff] %v5145_v42 }
 0xa0d   : > { %v4461_v58 = vld [vmem:[%s401_s30] sm:$0xff] }
 0xa0e   : > { %v4463_v30 = vld [vmem:[%s401_s30 + $0x8] sm:$0xff]  ;;  %4462 = vst [vmem:[%s4448_s17] sm:$0xff] %v4461_v58 }
 0xa0f   : > { %4464 = vst [vmem:[%s4448_s17 + $0x8] sm:$0xff] %v4463_v30 }
 0xa11   : > { %v4465_v9 = vld [vmem:[%s401_s30 + $0x10] sm:$0xff] }
 0xa12   : > { %v4467_v54 = vld [vmem:[%s401_s30 + $0x18] sm:$0xff]  ;;  %4466 = vst [vmem:[%s4448_s17 + $0x20] sm:$0xff] %v4465_v9 }
 0xa13   : > { %4468 = vst [vmem:[%s4448_s17 + $0x28] sm:$0xff] %v4467_v54 }
 0xa14 PF: > { %p19_p8 = scmp.ge.s32.totalorder %s5277_s25, 4   ;;  %s9108_s21 = smov %s5164_s22 }
 0xa15   : > { %s9109_s22 = smov %s5285_s28  ;;  %s9110_s23 = smov %s5277_s25 }
 0xa16   :  { %21 = sbr.rel (!%p19_p8) target bundleno = 2 (0x2), region = 169 }

</bundles_post_ra>
